<compile_context>
chip_gen: v6e
topology: v6e:2x2x1
jax: 0.10.0
libtpu: 0.0.40
codegen_flags: <defaults>
</compile_context>

<pallas_src>
import jax
import jax.numpy as jnp
import numpy as np
from jax.experimental import pallas as pl
from jax.experimental.pallas import tpu as pltpu


# ---------------------------------------------------------------------------
# Pallas kernel: the full-resolution fused tail of SPBlock.
# ---------------------------------------------------------------------------
def spblock_pallas(x_flat, cat_flat, imask, fw, finw, finb,
                   m1w, m1b, m2w, m2b, *, H, W):
    """x_flat:  (N, c_out, Sp)   padded-flat image, zero halo
       cat_flat:(N, c_cat, Lp)   concatenated branches, zero halo + margins
       imask:   (1, Sp)          1.0 on interior pixels, 0.0 on the halo
       fw/m1w/m2w: (9, cout, cin) per-tap matrices; finw: (c_out, c_mid)
       biases:  (c, 1)
    """
    N, c_out, Sp = x_flat.shape
    c_cat, Lp = cat_flat.shape[1:]
    Wp = W + 2
    off = Wp + 1                       # margin so every tap window is in-bounds
    assert Sp == (H + 2) * Wp and Lp == Sp + 2 * off

    # tap k = (dy+1)*3 + (dx+1)  <->  flat-index shift dy*Wp + dx
    shifts = tuple(dy * Wp + dx for dy in (-1, 0, 1) for dx in (-1, 0, 1))

    def contract(w_k, win):
        # w_k: (cout, cin) value, win: (cin, Sp) value -> (cout, Sp) f32
        if w_k.shape[1] >= 32:
            # Production channel counts: put the contraction on the MXU.
            return jnp.dot(w_k, win, preferred_element_type=jnp.float32)
        # Toy channel counts (this test): MXU would be ~all padding -> a few
        # VPU broadcast-FMAs (outer-product accumulation), weights already
        # hoisted into `w_k`.
        acc = w_k[:, 0:1] * win[0:1, :]
        for ci in range(1, w_k.shape[1]):
            acc = acc + w_k[:, ci:ci + 1] * win[ci:ci + 1, :]
        return acc

    def conv3x3(window_of, w_ref):
        # 3x3 "same" conv in the padded-flat domain: 9 static lane-offset
        # windows, one tiny tap matrix each (loaded once per tap).
        acc = None
        for k, s in enumerate(shifts):
            c = contract(w_ref[k], window_of(s))
            acc = c if acc is None else acc + c
        return acc

    def sigmoid(v):
        # EUP-friendly sigmoid: tanh runs on the EUP slot, no VALU divide.
        return 0.5 * (1.0 + jnp.tanh(0.5 * v))

    def kernel(x_ref, cat_ref, imask_ref, fw_ref, finw_ref, finb_ref,
               m1w_ref, m1b_ref, m2w_ref, m2b_ref, out_ref, pad_ref):
        # Only the margins of the scratch ever need to be zero; the interior
        # [off, off+Sp) is fully overwritten before each read.  Done every step
        # so the batch axis can be safely "parallel" (per-core scratch).
        zeros_margin = jnp.zeros((c_out, off), jnp.float32)
        pad_ref[:, 0:off] = zeros_margin
        pad_ref[:, off + Sp:Lp] = zeros_margin

        # fuse_conv (3x3, no bias) -> relu   (windows read straight from cat)
        hx = jnp.maximum(
            conv3x3(lambda s: cat_ref[:, off + s: off + s + Sp], fw_ref), 0.0)

        # conv_final (1x1 + bias) -> sigmoid ; out1 = x * mask1
        mask1 = sigmoid(contract(finw_ref[...], hx) + finb_ref[...])
        out1 = x_ref[...] * mask1            # halo stays exactly zero (x halo is 0)

        # mask_conv_1 (3x3 + bias) -> relu
        pad_ref[:, off: off + Sp] = out1
        h1 = jnp.maximum(
            conv3x3(lambda s: pad_ref[:, off + s: off + s + Sp], m1w_ref)
            + m1b_ref[...], 0.0)

        # mask_conv_2 (3x3 + bias) -> sigmoid ; out = out1 * mask2
        pad_ref[:, off: off + Sp] = h1 * imask_ref[...]     # re-zero the halo
        mask2 = sigmoid(
            conv3x3(lambda s: pad_ref[:, off + s: off + s + Sp], m2w_ref)
            + m2b_ref[...])

        out_ref[...] = out1 * mask2

    def batch_spec(tail):
        nd = len(tail)
        return pl.BlockSpec((None,) + tail, lambda n, _nd=nd: (n,) + (0,) * _nd)

    def full_spec(shape):
        nd = len(shape)
        return pl.BlockSpec(shape, lambda n, _nd=nd: (0,) * _nd)

    in_specs = [
        batch_spec((c_out, Sp)),       # x (padded-flat)
        batch_spec((c_cat, Lp)),       # concatenated branches (+ margins)
        full_spec(imask.shape),        # interior mask
        full_spec(fw.shape),           # fuse_conv taps   (9, c_mid, c_cat)
        full_spec(finw.shape),         # conv_final       (c_out, c_mid)
        full_spec(finb.shape),         # conv_final bias  (c_out, 1)
        full_spec(m1w.shape),          # mask_conv_1 taps (9, c_out, c_out)
        full_spec(m1b.shape),
        full_spec(m2w.shape),          # mask_conv_2 taps
        full_spec(m2b.shape),
    ]

    # TODO(synk): at production resolutions (e.g. H=W~128, c_out~64-128), tile H
    # with a 1-row halo and process several batch elements per grid step so the
    # per-block working set stays a few MiB (v7x has only 64 MiB VMEM) and the
    # ~0.35us per-step overhead is amortized.
    return pl.pallas_call(
        kernel,
        out_shape=jax.ShapeDtypeStruct((N, c_out, Sp), jnp.float32),
        grid_spec=pltpu.PrefetchScalarGridSpec(
            num_scalar_prefetch=0,
            grid=(N,),
            in_specs=in_specs,
            out_specs=batch_spec((c_out, Sp)),
            scratch_shapes=[pltpu.VMEM((c_out, Lp), jnp.float32)],
        ),
        compiler_params=pltpu.CompilerParams(
            dimension_semantics=("parallel",)),   # batch is independent -> megacore
    )(x_flat, cat_flat, imask, fw, finw, finb, m1w, m1b, m2w, m2b)


# ---------------------------------------------------------------------------
# Plain-JAX glue: adaptive strip pooling, tiny strip convs, nearest upsample.
# ---------------------------------------------------------------------------
def adaptive_avg_pool_axis(x, axis, out_size):
    L = x.shape[axis]
    pieces = []
    for i in range(out_size):
        s = (i * L) // out_size
        e = -((-(i + 1) * L) // out_size)   # ceil((i+1)*L/out_size)
        sl = [slice(None)] * x.ndim
        sl[axis] = slice(s, e)
        pieces.append(jnp.mean(x[tuple(sl)], axis=axis, keepdims=True))
    return jnp.concatenate(pieces, axis=axis)


def conv2d_nchw(x, w, padding, b=None):
    out = jax.lax.conv_general_dilated(
        x, w, window_strides=(1, 1),
        padding=((padding[0], padding[0]), (padding[1], padding[1])),
        dimension_numbers=('NCHW', 'OIHW', 'NCHW'))
    if b is not None:
        out = out + b[None, :, None, None]
    return out


def interp_nearest(x, out_h, out_w):
    N, C, H, W = x.shape
    hi = (jnp.arange(out_h) * H) // out_h
    wi = (jnp.arange(out_w) * W) // out_w
    return x[:, :, hi[:, None], wi[None, :]]


def strip_branches(x, p):
    N, C, H, W = x.shape
    mid = p['fuse_conv'].shape[0]
    outs = []
    # k = 1 branches (pool to a single column / row, conv, broadcast-expand)
    xh = adaptive_avg_pool_axis(x, 3, 1)
    xh = conv2d_nchw(xh, p['conv_1_h'], (1, 0))
    xh = jnp.broadcast_to(xh, (N, mid, H, W))
    xw = adaptive_avg_pool_axis(x, 2, 1)
    xw = conv2d_nchw(xw, p['conv_1_w'], (0, 1))
    xw = jnp.broadcast_to(xw, (N, mid, H, W))
    outs.append(xh + xw)
    # k = 3, 5, 7 branches (adaptive pool, 3x3 conv, nearest upsample)
    for k in (3, 5, 7):
        xh = adaptive_avg_pool_axis(x, 3, k)
        xh = conv2d_nchw(xh, p['conv_%d_h' % k], (1, 1))
        xh = interp_nearest(xh, H, W)
        xw = adaptive_avg_pool_axis(x, 2, k)
        xw = conv2d_nchw(xw, p['conv_%d_w' % k], (1, 1))
        xw = interp_nearest(xw, H, W)
        outs.append(xh + xw)
    return jnp.concatenate(outs, axis=1)   # (N, 4*mid, H, W)


def spblock_forward(x, p):
    # x: (N, C_in, H, W) NCHW; like the original module, x * mask_1 requires
    # C_in == outplanes.  NCHW goes straight into the kernel (no NHWC transpose),
    # only a pad + flatten of the spatial dims.
    N, C, H, W = x.shape
    mid = p['fuse_conv'].shape[0]
    c_cat = 4 * mid
    c_out = p['conv_final_w'].shape[0]

    cat = strip_branches(x, p)                     # (N, 4*mid, H, W)

    Hp, Wp = H + 2, W + 2
    Sp = Hp * Wp
    off = Wp + 1
    x_flat = jnp.pad(x.astype(jnp.float32),
                     ((0, 0), (0, 0), (1, 1), (1, 1))).reshape(N, C, Sp)
    cat_flat = jnp.pad(cat.astype(jnp.float32),
                       ((0, 0), (0, 0), (1, 1), (1, 1))).reshape(N, c_cat, Sp)
    cat_flat = jnp.pad(cat_flat, ((0, 0), (0, 0), (off, off)))     # + margins
    imask = jnp.pad(jnp.ones((H, W), jnp.float32),
                    ((1, 1), (1, 1))).reshape(1, Sp)

    def w3x3(w):   # torch (cout, cin, 3, 3) -> (9, cout, cin), tap k = dy*3+dx
        cout, cin = w.shape[0], w.shape[1]
        return jnp.transpose(w, (2, 3, 0, 1)).reshape(9, cout, cin)

    fw = w3x3(p['fuse_conv'])
    finw = p['conv_final_w'][:, :, 0, 0]
    finb = p['conv_final_b'].reshape(-1, 1)
    m1w = w3x3(p['mask_conv_1_w'])
    m1b = p['mask_conv_1_b'].reshape(-1, 1)
    m2w = w3x3(p['mask_conv_2_w'])
    m2b = p['mask_conv_2_b'].reshape(-1, 1)

    out_flat = spblock_pallas(x_flat, cat_flat, imask, fw, finw, finb,
                              m1w, m1b, m2w, m2b, H=H, W=W)
    return out_flat.reshape(N, c_out, Hp, Wp)[:, :, 1:H + 1, 1:W + 1]


# ---------------------------------------------------------------------------
# Pure-JAX reference for validation.
# ---------------------------------------------------------------------------
def spblock_reference(x, p):
    cat = strip_branches(x, p)
    hx = jnp.maximum(conv2d_nchw(cat, p['fuse_conv'], (1, 1)), 0.0)
    mask1 = jax.nn.sigmoid(
        conv2d_nchw(hx, p['conv_final_w'], (0, 0), p['conv_final_b']))
    out1 = x * mask1
    h1 = jnp.maximum(
        conv2d_nchw(out1, p['mask_conv_1_w'], (1, 1), p['mask_conv_1_b']), 0.0)
    mask2 = jax.nn.sigmoid(
        conv2d_nchw(h1, p['mask_conv_2_w'], (1, 1), p['mask_conv_2_b']))
    return out1 * mask2


def init_params(key, inplanes, outplanes):
    mid = outplanes // 2
    shapes = {
        'conv_1_h': (mid, inplanes, 3, 1),
        'conv_1_w': (mid, inplanes, 1, 3),
        'conv_3_h': (mid, inplanes, 3, 3),
        'conv_3_w': (mid, inplanes, 3, 3),
        'conv_5_h': (mid, inplanes, 3, 3),
        'conv_5_w': (mid, inplanes, 3, 3),
        'conv_7_h': (mid, inplanes, 3, 3),
        'conv_7_w': (mid, inplanes, 3, 3),
        'fuse_conv': (mid, 4 * mid, 3, 3),
        'conv_final_w': (outplanes, mid, 1, 1),
        'conv_final_b': (outplanes,),
        'mask_conv_1_w': (outplanes, outplanes, 3, 3),
        'mask_conv_1_b': (outplanes,),
        'mask_conv_2_w': (outplanes, outplanes, 3, 3),
        'mask_conv_2_b': (outplanes,),
    }
    params = {}
    names = sorted(shapes)
    keys = jax.random.split(key, len(names))
    for k, name in zip(keys, names):
        params[name] = jax.random.normal(k, shapes[name], jnp.float32) * 0.1
    return params


if __name__ == "__main__":
    key = jax.random.PRNGKey(0)
    kx, kp = jax.random.split(key)
    N, C, H, W = 2, 4, 16, 16
    inplanes = outplanes = C      # x * mask_1 requires inplanes == outplanes
    x = jax.random.normal(kx, (N, C, H, W), jnp.float32)
    params = init_params(kp, inplanes, outplanes)

    out = jax.block_until_ready(jax.jit(spblock_forward)(x, params))
    ref = jax.block_until_ready(spblock_reference(x, params))
    np.testing.assert_allclose(np.asarray(out), np.asarray(ref),
                               atol=1e-4, rtol=1e-3)
    print("KERNEL_OK")
</pallas_src>

<mosaic_0001>
module attributes {stable_mosaic.version = 11 : i64} {
  func.func @kernel(%arg0: i32, %arg1: memref<1x4x324xf32, #tpu.memory_space<vmem>>, %arg2: memref<1x8x362xf32, #tpu.memory_space<vmem>>, %arg3: memref<1x324xf32, #tpu.memory_space<vmem>>, %arg4: memref<9x2x8xf32, #tpu.memory_space<vmem>>, %arg5: memref<4x2xf32, #tpu.memory_space<vmem>>, %arg6: memref<4x1xf32, #tpu.memory_space<vmem>>, %arg7: memref<9x4x4xf32, #tpu.memory_space<vmem>>, %arg8: memref<4x1xf32, #tpu.memory_space<vmem>>, %arg9: memref<9x4x4xf32, #tpu.memory_space<vmem>>, %arg10: memref<4x1xf32, #tpu.memory_space<vmem>>, %arg11: memref<1x4x324xf32, #tpu.memory_space<vmem>>, %arg12: memref<4x362xf32, #tpu.memory_space<vmem>>) attributes {dimension_semantics = [#tpu.dimension_semantics<parallel>], iteration_bounds = array<i64: 2>, scalar_prefetch = 0 : i64, scratch_operands = 1 : i64, tpu.core_type = #tpu.core_type<tc>, window_params = [{transform_indices = @transform_0, window_bounds = array<i64: 1, 4, 324>}, {transform_indices = @transform_1, window_bounds = array<i64: 1, 8, 362>}, {pipeline_mode = #tpu.pipeline_mode<synchronous>, transform_indices = @transform_2, window_bounds = array<i64: 1, 324>}, {pipeline_mode = #tpu.pipeline_mode<synchronous>, transform_indices = @transform_3, window_bounds = array<i64: 9, 2, 8>}, {pipeline_mode = #tpu.pipeline_mode<synchronous>, transform_indices = @transform_4, window_bounds = array<i64: 4, 2>}, {pipeline_mode = #tpu.pipeline_mode<synchronous>, transform_indices = @transform_5, window_bounds = array<i64: 4, 1>}, {pipeline_mode = #tpu.pipeline_mode<synchronous>, transform_indices = @transform_6, window_bounds = array<i64: 9, 4, 4>}, {pipeline_mode = #tpu.pipeline_mode<synchronous>, transform_indices = @transform_7, window_bounds = array<i64: 4, 1>}, {pipeline_mode = #tpu.pipeline_mode<synchronous>, transform_indices = @transform_8, window_bounds = array<i64: 9, 4, 4>}, {pipeline_mode = #tpu.pipeline_mode<synchronous>, transform_indices = @transform_9, window_bounds = array<i64: 4, 1>}, {transform_indices = @transform_10, window_bounds = array<i64: 1, 4, 324>}]} {
    %cst = arith.constant 0.000000e+00 : f32
    %0 = vector.broadcast %cst : f32 to vector<4x19xf32>
    %c0 = arith.constant 0 : index
    %c0_0 = arith.constant 0 : index
    %1 = vector.load %arg12[%c0, %c0_0] : memref<4x362xf32, #tpu.memory_space<vmem>>, vector<4x19xf32>
    tpu.vector_store %arg12[%c0, %c0_0], %0 {strides = array<i32>} : memref<4x362xf32, #tpu.memory_space<vmem>>, vector<4x19xf32>,
    %c0_1 = arith.constant 0 : index
    %c343 = arith.constant 343 : index
    %2 = vector.load %arg12[%c0_1, %c343] : memref<4x362xf32, #tpu.memory_space<vmem>>, vector<4x19xf32>
    tpu.vector_store %arg12[%c0_1, %c343], %0 {strides = array<i32>} : memref<4x362xf32, #tpu.memory_space<vmem>>, vector<4x19xf32>,
    %c0_2 = arith.constant 0 : index
    %c0_3 = arith.constant 0 : index
    %c0_4 = arith.constant 0 : index
    %3 = vector.load %arg4[%c0_2, %c0_3, %c0_4] : memref<9x2x8xf32, #tpu.memory_space<vmem>>, vector<1x2x8xf32>
    %4 = vector.shape_cast %3 : vector<1x2x8xf32> to vector<2x8xf32>
    %c0_5 = arith.constant 0 : index
    %c0_6 = arith.constant 0 : index
    %c0_7 = arith.constant 0 : index
    %5 = vector.load %arg2[%c0_5, %c0_6, %c0_7] : memref<1x8x362xf32, #tpu.memory_space<vmem>>, vector<1x8x324xf32>
    %6 = vector.shape_cast %5 : vector<1x8x324xf32> to vector<8x324xf32>
    %7 = vector.extract_strided_slice %4 {offsets = [0, 0], sizes = [2, 1], strides = [1, 1]} : vector<2x8xf32> to vector<2x1xf32>
    %8 = vector.extract_strided_slice %6 {offsets = [0, 0], sizes = [1, 324], strides = [1, 1]} : vector<8x324xf32> to vector<1x324xf32>
    %9 = vector.broadcast %7 : vector<2x1xf32> to vector<2x324xf32>
    %10 = vector.broadcast %8 : vector<1x324xf32> to vector<2x324xf32>
    %11 = arith.mulf %9, %10 : vector<2x324xf32>
    %12 = vector.extract_strided_slice %4 {offsets = [0, 1], sizes = [2, 1], strides = [1, 1]} : vector<2x8xf32> to vector<2x1xf32>
    %13 = vector.extract_strided_slice %6 {offsets = [1, 0], sizes = [1, 324], strides = [1, 1]} : vector<8x324xf32> to vector<1x324xf32>
    %14 = vector.broadcast %12 : vector<2x1xf32> to vector<2x324xf32>
    %15 = vector.broadcast %13 : vector<1x324xf32> to vector<2x324xf32>
    %16 = arith.mulf %14, %15 : vector<2x324xf32>
    %17 = arith.addf %11, %16 : vector<2x324xf32>
    %18 = vector.extract_strided_slice %4 {offsets = [0, 2], sizes = [2, 1], strides = [1, 1]} : vector<2x8xf32> to vector<2x1xf32>
    %19 = vector.extract_strided_slice %6 {offsets = [2, 0], sizes = [1, 324], strides = [1, 1]} : vector<8x324xf32> to vector<1x324xf32>
    %20 = vector.broadcast %18 : vector<2x1xf32> to vector<2x324xf32>
    %21 = vector.broadcast %19 : vector<1x324xf32> to vector<2x324xf32>
    %22 = arith.mulf %20, %21 : vector<2x324xf32>
    %23 = arith.addf %17, %22 : vector<2x324xf32>
    %24 = vector.extract_strided_slice %4 {offsets = [0, 3], sizes = [2, 1], strides = [1, 1]} : vector<2x8xf32> to vector<2x1xf32>
    %25 = vector.extract_strided_slice %6 {offsets = [3, 0], sizes = [1, 324], strides = [1, 1]} : vector<8x324xf32> to vector<1x324xf32>
    %26 = vector.broadcast %24 : vector<2x1xf32> to vector<2x324xf32>
    %27 = vector.broadcast %25 : vector<1x324xf32> to vector<2x324xf32>
    %28 = arith.mulf %26, %27 : vector<2x324xf32>
    %29 = arith.addf %23, %28 : vector<2x324xf32>
    %30 = vector.extract_strided_slice %4 {offsets = [0, 4], sizes = [2, 1], strides = [1, 1]} : vector<2x8xf32> to vector<2x1xf32>
    %31 = vector.extract_strided_slice %6 {offsets = [4, 0], sizes = [1, 324], strides = [1, 1]} : vector<8x324xf32> to vector<1x324xf32>
    %32 = vector.broadcast %30 : vector<2x1xf32> to vector<2x324xf32>
    %33 = vector.broadcast %31 : vector<1x324xf32> to vector<2x324xf32>
    %34 = arith.mulf %32, %33 : vector<2x324xf32>
    %35 = arith.addf %29, %34 : vector<2x324xf32>
    %36 = vector.extract_strided_slice %4 {offsets = [0, 5], sizes = [2, 1], strides = [1, 1]} : vector<2x8xf32> to vector<2x1xf32>
    %37 = vector.extract_strided_slice %6 {offsets = [5, 0], sizes = [1, 324], strides = [1, 1]} : vector<8x324xf32> to vector<1x324xf32>
    %38 = vector.broadcast %36 : vector<2x1xf32> to vector<2x324xf32>
    %39 = vector.broadcast %37 : vector<1x324xf32> to vector<2x324xf32>
    %40 = arith.mulf %38, %39 : vector<2x324xf32>
    %41 = arith.addf %35, %40 : vector<2x324xf32>
    %42 = vector.extract_strided_slice %4 {offsets = [0, 6], sizes = [2, 1], strides = [1, 1]} : vector<2x8xf32> to vector<2x1xf32>
    %43 = vector.extract_strided_slice %6 {offsets = [6, 0], sizes = [1, 324], strides = [1, 1]} : vector<8x324xf32> to vector<1x324xf32>
    %44 = vector.broadcast %42 : vector<2x1xf32> to vector<2x324xf32>
    %45 = vector.broadcast %43 : vector<1x324xf32> to vector<2x324xf32>
    %46 = arith.mulf %44, %45 : vector<2x324xf32>
    %47 = arith.addf %41, %46 : vector<2x324xf32>
    %48 = vector.extract_strided_slice %4 {offsets = [0, 7], sizes = [2, 1], strides = [1, 1]} : vector<2x8xf32> to vector<2x1xf32>
    %49 = vector.extract_strided_slice %6 {offsets = [7, 0], sizes = [1, 324], strides = [1, 1]} : vector<8x324xf32> to vector<1x324xf32>
    %50 = vector.broadcast %48 : vector<2x1xf32> to vector<2x324xf32>
    %51 = vector.broadcast %49 : vector<1x324xf32> to vector<2x324xf32>
    %52 = arith.mulf %50, %51 : vector<2x324xf32>
    %53 = arith.addf %47, %52 : vector<2x324xf32>
    %c1 = arith.constant 1 : index
    %c0_8 = arith.constant 0 : index
    %c0_9 = arith.constant 0 : index
    %54 = vector.load %arg4[%c1, %c0_8, %c0_9] : memref<9x2x8xf32, #tpu.memory_space<vmem>>, vector<1x2x8xf32>
    %55 = vector.shape_cast %54 : vector<1x2x8xf32> to vector<2x8xf32>
    %c0_10 = arith.constant 0 : index
    %c0_11 = arith.constant 0 : index
    %c1_12 = arith.constant 1 : index
    %56 = vector.load %arg2[%c0_10, %c0_11, %c1_12] : memref<1x8x362xf32, #tpu.memory_space<vmem>>, vector<1x8x324xf32>
    %57 = vector.shape_cast %56 : vector<1x8x324xf32> to vector<8x324xf32>
    %58 = vector.extract_strided_slice %55 {offsets = [0, 0], sizes = [2, 1], strides = [1, 1]} : vector<2x8xf32> to vector<2x1xf32>
    %59 = vector.extract_strided_slice %57 {offsets = [0, 0], sizes = [1, 324], strides = [1, 1]} : vector<8x324xf32> to vector<1x324xf32>
    %60 = vector.broadcast %58 : vector<2x1xf32> to vector<2x324xf32>
    %61 = vector.broadcast %59 : vector<1x324xf32> to vector<2x324xf32>
    %62 = arith.mulf %60, %61 : vector<2x324xf32>
    %63 = vector.extract_strided_slice %55 {offsets = [0, 1], sizes = [2, 1], strides = [1, 1]} : vector<2x8xf32> to vector<2x1xf32>
    %64 = vector.extract_strided_slice %57 {offsets = [1, 0], sizes = [1, 324], strides = [1, 1]} : vector<8x324xf32> to vector<1x324xf32>
    %65 = vector.broadcast %63 : vector<2x1xf32> to vector<2x324xf32>
    %66 = vector.broadcast %64 : vector<1x324xf32> to vector<2x324xf32>
    %67 = arith.mulf %65, %66 : vector<2x324xf32>
    %68 = arith.addf %62, %67 : vector<2x324xf32>
    %69 = vector.extract_strided_slice %55 {offsets = [0, 2], sizes = [2, 1], strides = [1, 1]} : vector<2x8xf32> to vector<2x1xf32>
    %70 = vector.extract_strided_slice %57 {offsets = [2, 0], sizes = [1, 324], strides = [1, 1]} : vector<8x324xf32> to vector<1x324xf32>
    %71 = vector.broadcast %69 : vector<2x1xf32> to vector<2x324xf32>
    %72 = vector.broadcast %70 : vector<1x324xf32> to vector<2x324xf32>
    %73 = arith.mulf %71, %72 : vector<2x324xf32>
    %74 = arith.addf %68, %73 : vector<2x324xf32>
    %75 = vector.extract_strided_slice %55 {offsets = [0, 3], sizes = [2, 1], strides = [1, 1]} : vector<2x8xf32> to vector<2x1xf32>
    %76 = vector.extract_strided_slice %57 {offsets = [3, 0], sizes = [1, 324], strides = [1, 1]} : vector<8x324xf32> to vector<1x324xf32>
    %77 = vector.broadcast %75 : vector<2x1xf32> to vector<2x324xf32>
    %78 = vector.broadcast %76 : vector<1x324xf32> to vector<2x324xf32>
    %79 = arith.mulf %77, %78 : vector<2x324xf32>
    %80 = arith.addf %74, %79 : vector<2x324xf32>
    %81 = vector.extract_strided_slice %55 {offsets = [0, 4], sizes = [2, 1], strides = [1, 1]} : vector<2x8xf32> to vector<2x1xf32>
    %82 = vector.extract_strided_slice %57 {offsets = [4, 0], sizes = [1, 324], strides = [1, 1]} : vector<8x324xf32> to vector<1x324xf32>
    %83 = vector.broadcast %81 : vector<2x1xf32> to vector<2x324xf32>
    %84 = vector.broadcast %82 : vector<1x324xf32> to vector<2x324xf32>
    %85 = arith.mulf %83, %84 : vector<2x324xf32>
    %86 = arith.addf %80, %85 : vector<2x324xf32>
    %87 = vector.extract_strided_slice %55 {offsets = [0, 5], sizes = [2, 1], strides = [1, 1]} : vector<2x8xf32> to vector<2x1xf32>
    %88 = vector.extract_strided_slice %57 {offsets = [5, 0], sizes = [1, 324], strides = [1, 1]} : vector<8x324xf32> to vector<1x324xf32>
    %89 = vector.broadcast %87 : vector<2x1xf32> to vector<2x324xf32>
    %90 = vector.broadcast %88 : vector<1x324xf32> to vector<2x324xf32>
    %91 = arith.mulf %89, %90 : vector<2x324xf32>
    %92 = arith.addf %86, %91 : vector<2x324xf32>
    %93 = vector.extract_strided_slice %55 {offsets = [0, 6], sizes = [2, 1], strides = [1, 1]} : vector<2x8xf32> to vector<2x1xf32>
    %94 = vector.extract_strided_slice %57 {offsets = [6, 0], sizes = [1, 324], strides = [1, 1]} : vector<8x324xf32> to vector<1x324xf32>
    %95 = vector.broadcast %93 : vector<2x1xf32> to vector<2x324xf32>
    %96 = vector.broadcast %94 : vector<1x324xf32> to vector<2x324xf32>
    %97 = arith.mulf %95, %96 : vector<2x324xf32>
    %98 = arith.addf %92, %97 : vector<2x324xf32>
    %99 = vector.extract_strided_slice %55 {offsets = [0, 7], sizes = [2, 1], strides = [1, 1]} : vector<2x8xf32> to vector<2x1xf32>
    %100 = vector.extract_strided_slice %57 {offsets = [7, 0], sizes = [1, 324], strides = [1, 1]} : vector<8x324xf32> to vector<1x324xf32>
    %101 = vector.broadcast %99 : vector<2x1xf32> to vector<2x324xf32>
    %102 = vector.broadcast %100 : vector<1x324xf32> to vector<2x324xf32>
    %103 = arith.mulf %101, %102 : vector<2x324xf32>
    %104 = arith.addf %98, %103 : vector<2x324xf32>
    %105 = arith.addf %53, %104 : vector<2x324xf32>
    %c2 = arith.constant 2 : index
    %c0_13 = arith.constant 0 : index
    %c0_14 = arith.constant 0 : index
    %106 = vector.load %arg4[%c2, %c0_13, %c0_14] : memref<9x2x8xf32, #tpu.memory_space<vmem>>, vector<1x2x8xf32>
    %107 = vector.shape_cast %106 : vector<1x2x8xf32> to vector<2x8xf32>
    %c0_15 = arith.constant 0 : index
    %c0_16 = arith.constant 0 : index
    %c2_17 = arith.constant 2 : index
    %108 = vector.load %arg2[%c0_15, %c0_16, %c2_17] : memref<1x8x362xf32, #tpu.memory_space<vmem>>, vector<1x8x324xf32>
    %109 = vector.shape_cast %108 : vector<1x8x324xf32> to vector<8x324xf32>
    %110 = vector.extract_strided_slice %107 {offsets = [0, 0], sizes = [2, 1], strides = [1, 1]} : vector<2x8xf32> to vector<2x1xf32>
    %111 = vector.extract_strided_slice %109 {offsets = [0, 0], sizes = [1, 324], strides = [1, 1]} : vector<8x324xf32> to vector<1x324xf32>
    %112 = vector.broadcast %110 : vector<2x1xf32> to vector<2x324xf32>
    %113 = vector.broadcast %111 : vector<1x324xf32> to vector<2x324xf32>
    %114 = arith.mulf %112, %113 : vector<2x324xf32>
    %115 = vector.extract_strided_slice %107 {offsets = [0, 1], sizes = [2, 1], strides = [1, 1]} : vector<2x8xf32> to vector<2x1xf32>
    %116 = vector.extract_strided_slice %109 {offsets = [1, 0], sizes = [1, 324], strides = [1, 1]} : vector<8x324xf32> to vector<1x324xf32>
    %117 = vector.broadcast %115 : vector<2x1xf32> to vector<2x324xf32>
    %118 = vector.broadcast %116 : vector<1x324xf32> to vector<2x324xf32>
    %119 = arith.mulf %117, %118 : vector<2x324xf32>
    %120 = arith.addf %114, %119 : vector<2x324xf32>
    %121 = vector.extract_strided_slice %107 {offsets = [0, 2], sizes = [2, 1], strides = [1, 1]} : vector<2x8xf32> to vector<2x1xf32>
    %122 = vector.extract_strided_slice %109 {offsets = [2, 0], sizes = [1, 324], strides = [1, 1]} : vector<8x324xf32> to vector<1x324xf32>
    %123 = vector.broadcast %121 : vector<2x1xf32> to vector<2x324xf32>
    %124 = vector.broadcast %122 : vector<1x324xf32> to vector<2x324xf32>
    %125 = arith.mulf %123, %124 : vector<2x324xf32>
    %126 = arith.addf %120, %125 : vector<2x324xf32>
    %127 = vector.extract_strided_slice %107 {offsets = [0, 3], sizes = [2, 1], strides = [1, 1]} : vector<2x8xf32> to vector<2x1xf32>
    %128 = vector.extract_strided_slice %109 {offsets = [3, 0], sizes = [1, 324], strides = [1, 1]} : vector<8x324xf32> to vector<1x324xf32>
    %129 = vector.broadcast %127 : vector<2x1xf32> to vector<2x324xf32>
    %130 = vector.broadcast %128 : vector<1x324xf32> to vector<2x324xf32>
    %131 = arith.mulf %129, %130 : vector<2x324xf32>
    %132 = arith.addf %126, %131 : vector<2x324xf32>
    %133 = vector.extract_strided_slice %107 {offsets = [0, 4], sizes = [2, 1], strides = [1, 1]} : vector<2x8xf32> to vector<2x1xf32>
    %134 = vector.extract_strided_slice %109 {offsets = [4, 0], sizes = [1, 324], strides = [1, 1]} : vector<8x324xf32> to vector<1x324xf32>
    %135 = vector.broadcast %133 : vector<2x1xf32> to vector<2x324xf32>
    %136 = vector.broadcast %134 : vector<1x324xf32> to vector<2x324xf32>
    %137 = arith.mulf %135, %136 : vector<2x324xf32>
    %138 = arith.addf %132, %137 : vector<2x324xf32>
    %139 = vector.extract_strided_slice %107 {offsets = [0, 5], sizes = [2, 1], strides = [1, 1]} : vector<2x8xf32> to vector<2x1xf32>
    %140 = vector.extract_strided_slice %109 {offsets = [5, 0], sizes = [1, 324], strides = [1, 1]} : vector<8x324xf32> to vector<1x324xf32>
    %141 = vector.broadcast %139 : vector<2x1xf32> to vector<2x324xf32>
    %142 = vector.broadcast %140 : vector<1x324xf32> to vector<2x324xf32>
    %143 = arith.mulf %141, %142 : vector<2x324xf32>
    %144 = arith.addf %138, %143 : vector<2x324xf32>
    %145 = vector.extract_strided_slice %107 {offsets = [0, 6], sizes = [2, 1], strides = [1, 1]} : vector<2x8xf32> to vector<2x1xf32>
    %146 = vector.extract_strided_slice %109 {offsets = [6, 0], sizes = [1, 324], strides = [1, 1]} : vector<8x324xf32> to vector<1x324xf32>
    %147 = vector.broadcast %145 : vector<2x1xf32> to vector<2x324xf32>
    %148 = vector.broadcast %146 : vector<1x324xf32> to vector<2x324xf32>
    %149 = arith.mulf %147, %148 : vector<2x324xf32>
    %150 = arith.addf %144, %149 : vector<2x324xf32>
    %151 = vector.extract_strided_slice %107 {offsets = [0, 7], sizes = [2, 1], strides = [1, 1]} : vector<2x8xf32> to vector<2x1xf32>
    %152 = vector.extract_strided_slice %109 {offsets = [7, 0], sizes = [1, 324], strides = [1, 1]} : vector<8x324xf32> to vector<1x324xf32>
    %153 = vector.broadcast %151 : vector<2x1xf32> to vector<2x324xf32>
    %154 = vector.broadcast %152 : vector<1x324xf32> to vector<2x324xf32>
    %155 = arith.mulf %153, %154 : vector<2x324xf32>
    %156 = arith.addf %150, %155 : vector<2x324xf32>
    %157 = arith.addf %105, %156 : vector<2x324xf32>
    %c3 = arith.constant 3 : index
    %c0_18 = arith.constant 0 : index
    %c0_19 = arith.constant 0 : index
    %158 = vector.load %arg4[%c3, %c0_18, %c0_19] : memref<9x2x8xf32, #tpu.memory_space<vmem>>, vector<1x2x8xf32>
    %159 = vector.shape_cast %158 : vector<1x2x8xf32> to vector<2x8xf32>
    %c0_20 = arith.constant 0 : index
    %c0_21 = arith.constant 0 : index
    %c18 = arith.constant 18 : index
    %160 = vector.load %arg2[%c0_20, %c0_21, %c18] : memref<1x8x362xf32, #tpu.memory_space<vmem>>, vector<1x8x324xf32>
    %161 = vector.shape_cast %160 : vector<1x8x324xf32> to vector<8x324xf32>
    %162 = vector.extract_strided_slice %159 {offsets = [0, 0], sizes = [2, 1], strides = [1, 1]} : vector<2x8xf32> to vector<2x1xf32>
    %163 = vector.extract_strided_slice %161 {offsets = [0, 0], sizes = [1, 324], strides = [1, 1]} : vector<8x324xf32> to vector<1x324xf32>
    %164 = vector.broadcast %162 : vector<2x1xf32> to vector<2x324xf32>
    %165 = vector.broadcast %163 : vector<1x324xf32> to vector<2x324xf32>
    %166 = arith.mulf %164, %165 : vector<2x324xf32>
    %167 = vector.extract_strided_slice %159 {offsets = [0, 1], sizes = [2, 1], strides = [1, 1]} : vector<2x8xf32> to vector<2x1xf32>
    %168 = vector.extract_strided_slice %161 {offsets = [1, 0], sizes = [1, 324], strides = [1, 1]} : vector<8x324xf32> to vector<1x324xf32>
    %169 = vector.broadcast %167 : vector<2x1xf32> to vector<2x324xf32>
    %170 = vector.broadcast %168 : vector<1x324xf32> to vector<2x324xf32>
    %171 = arith.mulf %169, %170 : vector<2x324xf32>
    %172 = arith.addf %166, %171 : vector<2x324xf32>
    %173 = vector.extract_strided_slice %159 {offsets = [0, 2], sizes = [2, 1], strides = [1, 1]} : vector<2x8xf32> to vector<2x1xf32>
    %174 = vector.extract_strided_slice %161 {offsets = [2, 0], sizes = [1, 324], strides = [1, 1]} : vector<8x324xf32> to vector<1x324xf32>
    %175 = vector.broadcast %173 : vector<2x1xf32> to vector<2x324xf32>
    %176 = vector.broadcast %174 : vector<1x324xf32> to vector<2x324xf32>
    %177 = arith.mulf %175, %176 : vector<2x324xf32>
    %178 = arith.addf %172, %177 : vector<2x324xf32>
    %179 = vector.extract_strided_slice %159 {offsets = [0, 3], sizes = [2, 1], strides = [1, 1]} : vector<2x8xf32> to vector<2x1xf32>
    %180 = vector.extract_strided_slice %161 {offsets = [3, 0], sizes = [1, 324], strides = [1, 1]} : vector<8x324xf32> to vector<1x324xf32>
    %181 = vector.broadcast %179 : vector<2x1xf32> to vector<2x324xf32>
    %182 = vector.broadcast %180 : vector<1x324xf32> to vector<2x324xf32>
    %183 = arith.mulf %181, %182 : vector<2x324xf32>
    %184 = arith.addf %178, %183 : vector<2x324xf32>
    %185 = vector.extract_strided_slice %159 {offsets = [0, 4], sizes = [2, 1], strides = [1, 1]} : vector<2x8xf32> to vector<2x1xf32>
    %186 = vector.extract_strided_slice %161 {offsets = [4, 0], sizes = [1, 324], strides = [1, 1]} : vector<8x324xf32> to vector<1x324xf32>
    %187 = vector.broadcast %185 : vector<2x1xf32> to vector<2x324xf32>
    %188 = vector.broadcast %186 : vector<1x324xf32> to vector<2x324xf32>
    %189 = arith.mulf %187, %188 : vector<2x324xf32>
    %190 = arith.addf %184, %189 : vector<2x324xf32>
    %191 = vector.extract_strided_slice %159 {offsets = [0, 5], sizes = [2, 1], strides = [1, 1]} : vector<2x8xf32> to vector<2x1xf32>
    %192 = vector.extract_strided_slice %161 {offsets = [5, 0], sizes = [1, 324], strides = [1, 1]} : vector<8x324xf32> to vector<1x324xf32>
    %193 = vector.broadcast %191 : vector<2x1xf32> to vector<2x324xf32>
    %194 = vector.broadcast %192 : vector<1x324xf32> to vector<2x324xf32>
    %195 = arith.mulf %193, %194 : vector<2x324xf32>
    %196 = arith.addf %190, %195 : vector<2x324xf32>
    %197 = vector.extract_strided_slice %159 {offsets = [0, 6], sizes = [2, 1], strides = [1, 1]} : vector<2x8xf32> to vector<2x1xf32>
    %198 = vector.extract_strided_slice %161 {offsets = [6, 0], sizes = [1, 324], strides = [1, 1]} : vector<8x324xf32> to vector<1x324xf32>
    %199 = vector.broadcast %197 : vector<2x1xf32> to vector<2x324xf32>
    %200 = vector.broadcast %198 : vector<1x324xf32> to vector<2x324xf32>
    %201 = arith.mulf %199, %200 : vector<2x324xf32>
    %202 = arith.addf %196, %201 : vector<2x324xf32>
    %203 = vector.extract_strided_slice %159 {offsets = [0, 7], sizes = [2, 1], strides = [1, 1]} : vector<2x8xf32> to vector<2x1xf32>
    %204 = vector.extract_strided_slice %161 {offsets = [7, 0], sizes = [1, 324], strides = [1, 1]} : vector<8x324xf32> to vector<1x324xf32>
    %205 = vector.broadcast %203 : vector<2x1xf32> to vector<2x324xf32>
    %206 = vector.broadcast %204 : vector<1x324xf32> to vector<2x324xf32>
    %207 = arith.mulf %205, %206 : vector<2x324xf32>
    %208 = arith.addf %202, %207 : vector<2x324xf32>
    %209 = arith.addf %157, %208 : vector<2x324xf32>
    %c4 = arith.constant 4 : index
    %c0_22 = arith.constant 0 : index
    %c0_23 = arith.constant 0 : index
    %210 = vector.load %arg4[%c4, %c0_22, %c0_23] : memref<9x2x8xf32, #tpu.memory_space<vmem>>, vector<1x2x8xf32>
    %211 = vector.shape_cast %210 : vector<1x2x8xf32> to vector<2x8xf32>
    %c0_24 = arith.constant 0 : index
    %c0_25 = arith.constant 0 : index
    %c19 = arith.constant 19 : index
    %212 = vector.load %arg2[%c0_24, %c0_25, %c19] : memref<1x8x362xf32, #tpu.memory_space<vmem>>, vector<1x8x324xf32>
    %213 = vector.shape_cast %212 : vector<1x8x324xf32> to vector<8x324xf32>
    %214 = vector.extract_strided_slice %211 {offsets = [0, 0], sizes = [2, 1], strides = [1, 1]} : vector<2x8xf32> to vector<2x1xf32>
    %215 = vector.extract_strided_slice %213 {offsets = [0, 0], sizes = [1, 324], strides = [1, 1]} : vector<8x324xf32> to vector<1x324xf32>
    %216 = vector.broadcast %214 : vector<2x1xf32> to vector<2x324xf32>
    %217 = vector.broadcast %215 : vector<1x324xf32> to vector<2x324xf32>
    %218 = arith.mulf %216, %217 : vector<2x324xf32>
    %219 = vector.extract_strided_slice %211 {offsets = [0, 1], sizes = [2, 1], strides = [1, 1]} : vector<2x8xf32> to vector<2x1xf32>
    %220 = vector.extract_strided_slice %213 {offsets = [1, 0], sizes = [1, 324], strides = [1, 1]} : vector<8x324xf32> to vector<1x324xf32>
    %221 = vector.broadcast %219 : vector<2x1xf32> to vector<2x324xf32>
    %222 = vector.broadcast %220 : vector<1x324xf32> to vector<2x324xf32>
    %223 = arith.mulf %221, %222 : vector<2x324xf32>
    %224 = arith.addf %218, %223 : vector<2x324xf32>
    %225 = vector.extract_strided_slice %211 {offsets = [0, 2], sizes = [2, 1], strides = [1, 1]} : vector<2x8xf32> to vector<2x1xf32>
    %226 = vector.extract_strided_slice %213 {offsets = [2, 0], sizes = [1, 324], strides = [1, 1]} : vector<8x324xf32> to vector<1x324xf32>
    %227 = vector.broadcast %225 : vector<2x1xf32> to vector<2x324xf32>
    %228 = vector.broadcast %226 : vector<1x324xf32> to vector<2x324xf32>
    %229 = arith.mulf %227, %228 : vector<2x324xf32>
    %230 = arith.addf %224, %229 : vector<2x324xf32>
    %231 = vector.extract_strided_slice %211 {offsets = [0, 3], sizes = [2, 1], strides = [1, 1]} : vector<2x8xf32> to vector<2x1xf32>
    %232 = vector.extract_strided_slice %213 {offsets = [3, 0], sizes = [1, 324], strides = [1, 1]} : vector<8x324xf32> to vector<1x324xf32>
    %233 = vector.broadcast %231 : vector<2x1xf32> to vector<2x324xf32>
    %234 = vector.broadcast %232 : vector<1x324xf32> to vector<2x324xf32>
    %235 = arith.mulf %233, %234 : vector<2x324xf32>
    %236 = arith.addf %230, %235 : vector<2x324xf32>
    %237 = vector.extract_strided_slice %211 {offsets = [0, 4], sizes = [2, 1], strides = [1, 1]} : vector<2x8xf32> to vector<2x1xf32>
    %238 = vector.extract_strided_slice %213 {offsets = [4, 0], sizes = [1, 324], strides = [1, 1]} : vector<8x324xf32> to vector<1x324xf32>
    %239 = vector.broadcast %237 : vector<2x1xf32> to vector<2x324xf32>
    %240 = vector.broadcast %238 : vector<1x324xf32> to vector<2x324xf32>
    %241 = arith.mulf %239, %240 : vector<2x324xf32>
    %242 = arith.addf %236, %241 : vector<2x324xf32>
    %243 = vector.extract_strided_slice %211 {offsets = [0, 5], sizes = [2, 1], strides = [1, 1]} : vector<2x8xf32> to vector<2x1xf32>
    %244 = vector.extract_strided_slice %213 {offsets = [5, 0], sizes = [1, 324], strides = [1, 1]} : vector<8x324xf32> to vector<1x324xf32>
    %245 = vector.broadcast %243 : vector<2x1xf32> to vector<2x324xf32>
    %246 = vector.broadcast %244 : vector<1x324xf32> to vector<2x324xf32>
    %247 = arith.mulf %245, %246 : vector<2x324xf32>
    %248 = arith.addf %242, %247 : vector<2x324xf32>
    %249 = vector.extract_strided_slice %211 {offsets = [0, 6], sizes = [2, 1], strides = [1, 1]} : vector<2x8xf32> to vector<2x1xf32>
    %250 = vector.extract_strided_slice %213 {offsets = [6, 0], sizes = [1, 324], strides = [1, 1]} : vector<8x324xf32> to vector<1x324xf32>
    %251 = vector.broadcast %249 : vector<2x1xf32> to vector<2x324xf32>
    %252 = vector.broadcast %250 : vector<1x324xf32> to vector<2x324xf32>
    %253 = arith.mulf %251, %252 : vector<2x324xf32>
    %254 = arith.addf %248, %253 : vector<2x324xf32>
    %255 = vector.extract_strided_slice %211 {offsets = [0, 7], sizes = [2, 1], strides = [1, 1]} : vector<2x8xf32> to vector<2x1xf32>
    %256 = vector.extract_strided_slice %213 {offsets = [7, 0], sizes = [1, 324], strides = [1, 1]} : vector<8x324xf32> to vector<1x324xf32>
    %257 = vector.broadcast %255 : vector<2x1xf32> to vector<2x324xf32>
    %258 = vector.broadcast %256 : vector<1x324xf32> to vector<2x324xf32>
    %259 = arith.mulf %257, %258 : vector<2x324xf32>
    %260 = arith.addf %254, %259 : vector<2x324xf32>
    %261 = arith.addf %209, %260 : vector<2x324xf32>
    %c5 = arith.constant 5 : index
    %c0_26 = arith.constant 0 : index
    %c0_27 = arith.constant 0 : index
    %262 = vector.load %arg4[%c5, %c0_26, %c0_27] : memref<9x2x8xf32, #tpu.memory_space<vmem>>, vector<1x2x8xf32>
    %263 = vector.shape_cast %262 : vector<1x2x8xf32> to vector<2x8xf32>
    %c0_28 = arith.constant 0 : index
    %c0_29 = arith.constant 0 : index
    %c20 = arith.constant 20 : index
    %264 = vector.load %arg2[%c0_28, %c0_29, %c20] : memref<1x8x362xf32, #tpu.memory_space<vmem>>, vector<1x8x324xf32>
    %265 = vector.shape_cast %264 : vector<1x8x324xf32> to vector<8x324xf32>
    %266 = vector.extract_strided_slice %263 {offsets = [0, 0], sizes = [2, 1], strides = [1, 1]} : vector<2x8xf32> to vector<2x1xf32>
    %267 = vector.extract_strided_slice %265 {offsets = [0, 0], sizes = [1, 324], strides = [1, 1]} : vector<8x324xf32> to vector<1x324xf32>
    %268 = vector.broadcast %266 : vector<2x1xf32> to vector<2x324xf32>
    %269 = vector.broadcast %267 : vector<1x324xf32> to vector<2x324xf32>
    %270 = arith.mulf %268, %269 : vector<2x324xf32>
    %271 = vector.extract_strided_slice %263 {offsets = [0, 1], sizes = [2, 1], strides = [1, 1]} : vector<2x8xf32> to vector<2x1xf32>
    %272 = vector.extract_strided_slice %265 {offsets = [1, 0], sizes = [1, 324], strides = [1, 1]} : vector<8x324xf32> to vector<1x324xf32>
    %273 = vector.broadcast %271 : vector<2x1xf32> to vector<2x324xf32>
    %274 = vector.broadcast %272 : vector<1x324xf32> to vector<2x324xf32>
    %275 = arith.mulf %273, %274 : vector<2x324xf32>
    %276 = arith.addf %270, %275 : vector<2x324xf32>
    %277 = vector.extract_strided_slice %263 {offsets = [0, 2], sizes = [2, 1], strides = [1, 1]} : vector<2x8xf32> to vector<2x1xf32>
    %278 = vector.extract_strided_slice %265 {offsets = [2, 0], sizes = [1, 324], strides = [1, 1]} : vector<8x324xf32> to vector<1x324xf32>
    %279 = vector.broadcast %277 : vector<2x1xf32> to vector<2x324xf32>
    %280 = vector.broadcast %278 : vector<1x324xf32> to vector<2x324xf32>
    %281 = arith.mulf %279, %280 : vector<2x324xf32>
    %282 = arith.addf %276, %281 : vector<2x324xf32>
    %283 = vector.extract_strided_slice %263 {offsets = [0, 3], sizes = [2, 1], strides = [1, 1]} : vector<2x8xf32> to vector<2x1xf32>
    %284 = vector.extract_strided_slice %265 {offsets = [3, 0], sizes = [1, 324], strides = [1, 1]} : vector<8x324xf32> to vector<1x324xf32>
    %285 = vector.broadcast %283 : vector<2x1xf32> to vector<2x324xf32>
    %286 = vector.broadcast %284 : vector<1x324xf32> to vector<2x324xf32>
    %287 = arith.mulf %285, %286 : vector<2x324xf32>
    %288 = arith.addf %282, %287 : vector<2x324xf32>
    %289 = vector.extract_strided_slice %263 {offsets = [0, 4], sizes = [2, 1], strides = [1, 1]} : vector<2x8xf32> to vector<2x1xf32>
    %290 = vector.extract_strided_slice %265 {offsets = [4, 0], sizes = [1, 324], strides = [1, 1]} : vector<8x324xf32> to vector<1x324xf32>
    %291 = vector.broadcast %289 : vector<2x1xf32> to vector<2x324xf32>
    %292 = vector.broadcast %290 : vector<1x324xf32> to vector<2x324xf32>
    %293 = arith.mulf %291, %292 : vector<2x324xf32>
    %294 = arith.addf %288, %293 : vector<2x324xf32>
    %295 = vector.extract_strided_slice %263 {offsets = [0, 5], sizes = [2, 1], strides = [1, 1]} : vector<2x8xf32> to vector<2x1xf32>
    %296 = vector.extract_strided_slice %265 {offsets = [5, 0], sizes = [1, 324], strides = [1, 1]} : vector<8x324xf32> to vector<1x324xf32>
    %297 = vector.broadcast %295 : vector<2x1xf32> to vector<2x324xf32>
    %298 = vector.broadcast %296 : vector<1x324xf32> to vector<2x324xf32>
    %299 = arith.mulf %297, %298 : vector<2x324xf32>
    %300 = arith.addf %294, %299 : vector<2x324xf32>
    %301 = vector.extract_strided_slice %263 {offsets = [0, 6], sizes = [2, 1], strides = [1, 1]} : vector<2x8xf32> to vector<2x1xf32>
    %302 = vector.extract_strided_slice %265 {offsets = [6, 0], sizes = [1, 324], strides = [1, 1]} : vector<8x324xf32> to vector<1x324xf32>
    %303 = vector.broadcast %301 : vector<2x1xf32> to vector<2x324xf32>
    %304 = vector.broadcast %302 : vector<1x324xf32> to vector<2x324xf32>
    %305 = arith.mulf %303, %304 : vector<2x324xf32>
    %306 = arith.addf %300, %305 : vector<2x324xf32>
    %307 = vector.extract_strided_slice %263 {offsets = [0, 7], sizes = [2, 1], strides = [1, 1]} : vector<2x8xf32> to vector<2x1xf32>
    %308 = vector.extract_strided_slice %265 {offsets = [7, 0], sizes = [1, 324], strides = [1, 1]} : vector<8x324xf32> to vector<1x324xf32>
    %309 = vector.broadcast %307 : vector<2x1xf32> to vector<2x324xf32>
    %310 = vector.broadcast %308 : vector<1x324xf32> to vector<2x324xf32>
    %311 = arith.mulf %309, %310 : vector<2x324xf32>
    %312 = arith.addf %306, %311 : vector<2x324xf32>
    %313 = arith.addf %261, %312 : vector<2x324xf32>
    %c6 = arith.constant 6 : index
    %c0_30 = arith.constant 0 : index
    %c0_31 = arith.constant 0 : index
    %314 = vector.load %arg4[%c6, %c0_30, %c0_31] : memref<9x2x8xf32, #tpu.memory_space<vmem>>, vector<1x2x8xf32>
    %315 = vector.shape_cast %314 : vector<1x2x8xf32> to vector<2x8xf32>
    %c0_32 = arith.constant 0 : index
    %c0_33 = arith.constant 0 : index
    %c36 = arith.constant 36 : index
    %316 = vector.load %arg2[%c0_32, %c0_33, %c36] : memref<1x8x362xf32, #tpu.memory_space<vmem>>, vector<1x8x324xf32>
    %317 = vector.shape_cast %316 : vector<1x8x324xf32> to vector<8x324xf32>
    %318 = vector.extract_strided_slice %315 {offsets = [0, 0], sizes = [2, 1], strides = [1, 1]} : vector<2x8xf32> to vector<2x1xf32>
    %319 = vector.extract_strided_slice %317 {offsets = [0, 0], sizes = [1, 324], strides = [1, 1]} : vector<8x324xf32> to vector<1x324xf32>
    %320 = vector.broadcast %318 : vector<2x1xf32> to vector<2x324xf32>
    %321 = vector.broadcast %319 : vector<1x324xf32> to vector<2x324xf32>
    %322 = arith.mulf %320, %321 : vector<2x324xf32>
    %323 = vector.extract_strided_slice %315 {offsets = [0, 1], sizes = [2, 1], strides = [1, 1]} : vector<2x8xf32> to vector<2x1xf32>
    %324 = vector.extract_strided_slice %317 {offsets = [1, 0], sizes = [1, 324], strides = [1, 1]} : vector<8x324xf32> to vector<1x324xf32>
    %325 = vector.broadcast %323 : vector<2x1xf32> to vector<2x324xf32>
    %326 = vector.broadcast %324 : vector<1x324xf32> to vector<2x324xf32>
    %327 = arith.mulf %325, %326 : vector<2x324xf32>
    %328 = arith.addf %322, %327 : vector<2x324xf32>
    %329 = vector.extract_strided_slice %315 {offsets = [0, 2], sizes = [2, 1], strides = [1, 1]} : vector<2x8xf32> to vector<2x1xf32>
    %330 = vector.extract_strided_slice %317 {offsets = [2, 0], sizes = [1, 324], strides = [1, 1]} : vector<8x324xf32> to vector<1x324xf32>
    %331 = vector.broadcast %329 : vector<2x1xf32> to vector<2x324xf32>
    %332 = vector.broadcast %330 : vector<1x324xf32> to vector<2x324xf32>
    %333 = arith.mulf %331, %332 : vector<2x324xf32>
    %334 = arith.addf %328, %333 : vector<2x324xf32>
    %335 = vector.extract_strided_slice %315 {offsets = [0, 3], sizes = [2, 1], strides = [1, 1]} : vector<2x8xf32> to vector<2x1xf32>
    %336 = vector.extract_strided_slice %317 {offsets = [3, 0], sizes = [1, 324], strides = [1, 1]} : vector<8x324xf32> to vector<1x324xf32>
    %337 = vector.broadcast %335 : vector<2x1xf32> to vector<2x324xf32>
    %338 = vector.broadcast %336 : vector<1x324xf32> to vector<2x324xf32>
    %339 = arith.mulf %337, %338 : vector<2x324xf32>
    %340 = arith.addf %334, %339 : vector<2x324xf32>
    %341 = vector.extract_strided_slice %315 {offsets = [0, 4], sizes = [2, 1], strides = [1, 1]} : vector<2x8xf32> to vector<2x1xf32>
    %342 = vector.extract_strided_slice %317 {offsets = [4, 0], sizes = [1, 324], strides = [1, 1]} : vector<8x324xf32> to vector<1x324xf32>
    %343 = vector.broadcast %341 : vector<2x1xf32> to vector<2x324xf32>
    %344 = vector.broadcast %342 : vector<1x324xf32> to vector<2x324xf32>
    %345 = arith.mulf %343, %344 : vector<2x324xf32>
    %346 = arith.addf %340, %345 : vector<2x324xf32>
    %347 = vector.extract_strided_slice %315 {offsets = [0, 5], sizes = [2, 1], strides = [1, 1]} : vector<2x8xf32> to vector<2x1xf32>
    %348 = vector.extract_strided_slice %317 {offsets = [5, 0], sizes = [1, 324], strides = [1, 1]} : vector<8x324xf32> to vector<1x324xf32>
    %349 = vector.broadcast %347 : vector<2x1xf32> to vector<2x324xf32>
    %350 = vector.broadcast %348 : vector<1x324xf32> to vector<2x324xf32>
    %351 = arith.mulf %349, %350 : vector<2x324xf32>
    %352 = arith.addf %346, %351 : vector<2x324xf32>
    %353 = vector.extract_strided_slice %315 {offsets = [0, 6], sizes = [2, 1], strides = [1, 1]} : vector<2x8xf32> to vector<2x1xf32>
    %354 = vector.extract_strided_slice %317 {offsets = [6, 0], sizes = [1, 324], strides = [1, 1]} : vector<8x324xf32> to vector<1x324xf32>
    %355 = vector.broadcast %353 : vector<2x1xf32> to vector<2x324xf32>
    %356 = vector.broadcast %354 : vector<1x324xf32> to vector<2x324xf32>
    %357 = arith.mulf %355, %356 : vector<2x324xf32>
    %358 = arith.addf %352, %357 : vector<2x324xf32>
    %359 = vector.extract_strided_slice %315 {offsets = [0, 7], sizes = [2, 1], strides = [1, 1]} : vector<2x8xf32> to vector<2x1xf32>
    %360 = vector.extract_strided_slice %317 {offsets = [7, 0], sizes = [1, 324], strides = [1, 1]} : vector<8x324xf32> to vector<1x324xf32>
    %361 = vector.broadcast %359 : vector<2x1xf32> to vector<2x324xf32>
    %362 = vector.broadcast %360 : vector<1x324xf32> to vector<2x324xf32>
    %363 = arith.mulf %361, %362 : vector<2x324xf32>
    %364 = arith.addf %358, %363 : vector<2x324xf32>
    %365 = arith.addf %313, %364 : vector<2x324xf32>
    %c7 = arith.constant 7 : index
    %c0_34 = arith.constant 0 : index
    %c0_35 = arith.constant 0 : index
    %366 = vector.load %arg4[%c7, %c0_34, %c0_35] : memref<9x2x8xf32, #tpu.memory_space<vmem>>, vector<1x2x8xf32>
    %367 = vector.shape_cast %366 : vector<1x2x8xf32> to vector<2x8xf32>
    %c0_36 = arith.constant 0 : index
    %c0_37 = arith.constant 0 : index
    %c37 = arith.constant 37 : index
    %368 = vector.load %arg2[%c0_36, %c0_37, %c37] : memref<1x8x362xf32, #tpu.memory_space<vmem>>, vector<1x8x324xf32>
    %369 = vector.shape_cast %368 : vector<1x8x324xf32> to vector<8x324xf32>
    %370 = vector.extract_strided_slice %367 {offsets = [0, 0], sizes = [2, 1], strides = [1, 1]} : vector<2x8xf32> to vector<2x1xf32>
    %371 = vector.extract_strided_slice %369 {offsets = [0, 0], sizes = [1, 324], strides = [1, 1]} : vector<8x324xf32> to vector<1x324xf32>
    %372 = vector.broadcast %370 : vector<2x1xf32> to vector<2x324xf32>
    %373 = vector.broadcast %371 : vector<1x324xf32> to vector<2x324xf32>
    %374 = arith.mulf %372, %373 : vector<2x324xf32>
    %375 = vector.extract_strided_slice %367 {offsets = [0, 1], sizes = [2, 1], strides = [1, 1]} : vector<2x8xf32> to vector<2x1xf32>
    %376 = vector.extract_strided_slice %369 {offsets = [1, 0], sizes = [1, 324], strides = [1, 1]} : vector<8x324xf32> to vector<1x324xf32>
    %377 = vector.broadcast %375 : vector<2x1xf32> to vector<2x324xf32>
    %378 = vector.broadcast %376 : vector<1x324xf32> to vector<2x324xf32>
    %379 = arith.mulf %377, %378 : vector<2x324xf32>
    %380 = arith.addf %374, %379 : vector<2x324xf32>
    %381 = vector.extract_strided_slice %367 {offsets = [0, 2], sizes = [2, 1], strides = [1, 1]} : vector<2x8xf32> to vector<2x1xf32>
    %382 = vector.extract_strided_slice %369 {offsets = [2, 0], sizes = [1, 324], strides = [1, 1]} : vector<8x324xf32> to vector<1x324xf32>
    %383 = vector.broadcast %381 : vector<2x1xf32> to vector<2x324xf32>
    %384 = vector.broadcast %382 : vector<1x324xf32> to vector<2x324xf32>
    %385 = arith.mulf %383, %384 : vector<2x324xf32>
    %386 = arith.addf %380, %385 : vector<2x324xf32>
    %387 = vector.extract_strided_slice %367 {offsets = [0, 3], sizes = [2, 1], strides = [1, 1]} : vector<2x8xf32> to vector<2x1xf32>
    %388 = vector.extract_strided_slice %369 {offsets = [3, 0], sizes = [1, 324], strides = [1, 1]} : vector<8x324xf32> to vector<1x324xf32>
    %389 = vector.broadcast %387 : vector<2x1xf32> to vector<2x324xf32>
    %390 = vector.broadcast %388 : vector<1x324xf32> to vector<2x324xf32>
    %391 = arith.mulf %389, %390 : vector<2x324xf32>
    %392 = arith.addf %386, %391 : vector<2x324xf32>
    %393 = vector.extract_strided_slice %367 {offsets = [0, 4], sizes = [2, 1], strides = [1, 1]} : vector<2x8xf32> to vector<2x1xf32>
    %394 = vector.extract_strided_slice %369 {offsets = [4, 0], sizes = [1, 324], strides = [1, 1]} : vector<8x324xf32> to vector<1x324xf32>
    %395 = vector.broadcast %393 : vector<2x1xf32> to vector<2x324xf32>
    %396 = vector.broadcast %394 : vector<1x324xf32> to vector<2x324xf32>
    %397 = arith.mulf %395, %396 : vector<2x324xf32>
    %398 = arith.addf %392, %397 : vector<2x324xf32>
    %399 = vector.extract_strided_slice %367 {offsets = [0, 5], sizes = [2, 1], strides = [1, 1]} : vector<2x8xf32> to vector<2x1xf32>
    %400 = vector.extract_strided_slice %369 {offsets = [5, 0], sizes = [1, 324], strides = [1, 1]} : vector<8x324xf32> to vector<1x324xf32>
    %401 = vector.broadcast %399 : vector<2x1xf32> to vector<2x324xf32>
    %402 = vector.broadcast %400 : vector<1x324xf32> to vector<2x324xf32>
    %403 = arith.mulf %401, %402 : vector<2x324xf32>
    %404 = arith.addf %398, %403 : vector<2x324xf32>
    %405 = vector.extract_strided_slice %367 {offsets = [0, 6], sizes = [2, 1], strides = [1, 1]} : vector<2x8xf32> to vector<2x1xf32>
    %406 = vector.extract_strided_slice %369 {offsets = [6, 0], sizes = [1, 324], strides = [1, 1]} : vector<8x324xf32> to vector<1x324xf32>
    %407 = vector.broadcast %405 : vector<2x1xf32> to vector<2x324xf32>
    %408 = vector.broadcast %406 : vector<1x324xf32> to vector<2x324xf32>
    %409 = arith.mulf %407, %408 : vector<2x324xf32>
    %410 = arith.addf %404, %409 : vector<2x324xf32>
    %411 = vector.extract_strided_slice %367 {offsets = [0, 7], sizes = [2, 1], strides = [1, 1]} : vector<2x8xf32> to vector<2x1xf32>
    %412 = vector.extract_strided_slice %369 {offsets = [7, 0], sizes = [1, 324], strides = [1, 1]} : vector<8x324xf32> to vector<1x324xf32>
    %413 = vector.broadcast %411 : vector<2x1xf32> to vector<2x324xf32>
    %414 = vector.broadcast %412 : vector<1x324xf32> to vector<2x324xf32>
    %415 = arith.mulf %413, %414 : vector<2x324xf32>
    %416 = arith.addf %410, %415 : vector<2x324xf32>
    %417 = arith.addf %365, %416 : vector<2x324xf32>
    %c8 = arith.constant 8 : index
    %c0_38 = arith.constant 0 : index
    %c0_39 = arith.constant 0 : index
    %418 = vector.load %arg4[%c8, %c0_38, %c0_39] : memref<9x2x8xf32, #tpu.memory_space<vmem>>, vector<1x2x8xf32>
    %419 = vector.shape_cast %418 : vector<1x2x8xf32> to vector<2x8xf32>
    %c0_40 = arith.constant 0 : index
    %c0_41 = arith.constant 0 : index
    %c38 = arith.constant 38 : index
    %420 = vector.load %arg2[%c0_40, %c0_41, %c38] : memref<1x8x362xf32, #tpu.memory_space<vmem>>, vector<1x8x324xf32>
    %421 = vector.shape_cast %420 : vector<1x8x324xf32> to vector<8x324xf32>
    %422 = vector.extract_strided_slice %419 {offsets = [0, 0], sizes = [2, 1], strides = [1, 1]} : vector<2x8xf32> to vector<2x1xf32>
    %423 = vector.extract_strided_slice %421 {offsets = [0, 0], sizes = [1, 324], strides = [1, 1]} : vector<8x324xf32> to vector<1x324xf32>
    %424 = vector.broadcast %422 : vector<2x1xf32> to vector<2x324xf32>
    %425 = vector.broadcast %423 : vector<1x324xf32> to vector<2x324xf32>
    %426 = arith.mulf %424, %425 : vector<2x324xf32>
    %427 = vector.extract_strided_slice %419 {offsets = [0, 1], sizes = [2, 1], strides = [1, 1]} : vector<2x8xf32> to vector<2x1xf32>
    %428 = vector.extract_strided_slice %421 {offsets = [1, 0], sizes = [1, 324], strides = [1, 1]} : vector<8x324xf32> to vector<1x324xf32>
    %429 = vector.broadcast %427 : vector<2x1xf32> to vector<2x324xf32>
    %430 = vector.broadcast %428 : vector<1x324xf32> to vector<2x324xf32>
    %431 = arith.mulf %429, %430 : vector<2x324xf32>
    %432 = arith.addf %426, %431 : vector<2x324xf32>
    %433 = vector.extract_strided_slice %419 {offsets = [0, 2], sizes = [2, 1], strides = [1, 1]} : vector<2x8xf32> to vector<2x1xf32>
    %434 = vector.extract_strided_slice %421 {offsets = [2, 0], sizes = [1, 324], strides = [1, 1]} : vector<8x324xf32> to vector<1x324xf32>
    %435 = vector.broadcast %433 : vector<2x1xf32> to vector<2x324xf32>
    %436 = vector.broadcast %434 : vector<1x324xf32> to vector<2x324xf32>
    %437 = arith.mulf %435, %436 : vector<2x324xf32>
    %438 = arith.addf %432, %437 : vector<2x324xf32>
    %439 = vector.extract_strided_slice %419 {offsets = [0, 3], sizes = [2, 1], strides = [1, 1]} : vector<2x8xf32> to vector<2x1xf32>
    %440 = vector.extract_strided_slice %421 {offsets = [3, 0], sizes = [1, 324], strides = [1, 1]} : vector<8x324xf32> to vector<1x324xf32>
    %441 = vector.broadcast %439 : vector<2x1xf32> to vector<2x324xf32>
    %442 = vector.broadcast %440 : vector<1x324xf32> to vector<2x324xf32>
    %443 = arith.mulf %441, %442 : vector<2x324xf32>
    %444 = arith.addf %438, %443 : vector<2x324xf32>
    %445 = vector.extract_strided_slice %419 {offsets = [0, 4], sizes = [2, 1], strides = [1, 1]} : vector<2x8xf32> to vector<2x1xf32>
    %446 = vector.extract_strided_slice %421 {offsets = [4, 0], sizes = [1, 324], strides = [1, 1]} : vector<8x324xf32> to vector<1x324xf32>
    %447 = vector.broadcast %445 : vector<2x1xf32> to vector<2x324xf32>
    %448 = vector.broadcast %446 : vector<1x324xf32> to vector<2x324xf32>
    %449 = arith.mulf %447, %448 : vector<2x324xf32>
    %450 = arith.addf %444, %449 : vector<2x324xf32>
    %451 = vector.extract_strided_slice %419 {offsets = [0, 5], sizes = [2, 1], strides = [1, 1]} : vector<2x8xf32> to vector<2x1xf32>
    %452 = vector.extract_strided_slice %421 {offsets = [5, 0], sizes = [1, 324], strides = [1, 1]} : vector<8x324xf32> to vector<1x324xf32>
    %453 = vector.broadcast %451 : vector<2x1xf32> to vector<2x324xf32>
    %454 = vector.broadcast %452 : vector<1x324xf32> to vector<2x324xf32>
    %455 = arith.mulf %453, %454 : vector<2x324xf32>
    %456 = arith.addf %450, %455 : vector<2x324xf32>
    %457 = vector.extract_strided_slice %419 {offsets = [0, 6], sizes = [2, 1], strides = [1, 1]} : vector<2x8xf32> to vector<2x1xf32>
    %458 = vector.extract_strided_slice %421 {offsets = [6, 0], sizes = [1, 324], strides = [1, 1]} : vector<8x324xf32> to vector<1x324xf32>
    %459 = vector.broadcast %457 : vector<2x1xf32> to vector<2x324xf32>
    %460 = vector.broadcast %458 : vector<1x324xf32> to vector<2x324xf32>
    %461 = arith.mulf %459, %460 : vector<2x324xf32>
    %462 = arith.addf %456, %461 : vector<2x324xf32>
    %463 = vector.extract_strided_slice %419 {offsets = [0, 7], sizes = [2, 1], strides = [1, 1]} : vector<2x8xf32> to vector<2x1xf32>
    %464 = vector.extract_strided_slice %421 {offsets = [7, 0], sizes = [1, 324], strides = [1, 1]} : vector<8x324xf32> to vector<1x324xf32>
    %465 = vector.broadcast %463 : vector<2x1xf32> to vector<2x324xf32>
    %466 = vector.broadcast %464 : vector<1x324xf32> to vector<2x324xf32>
    %467 = arith.mulf %465, %466 : vector<2x324xf32>
    %468 = arith.addf %462, %467 : vector<2x324xf32>
    %469 = arith.addf %417, %468 : vector<2x324xf32>
    %cst_42 = arith.constant 0.000000e+00 : f32
    %470 = vector.broadcast %cst_42 : f32 to vector<2x324xf32>
    %471 = arith.maximumf %469, %470 : vector<2x324xf32>
    %c0_43 = arith.constant 0 : index
    %c0_44 = arith.constant 0 : index
    %472 = vector.load %arg5[%c0_43, %c0_44] : memref<4x2xf32, #tpu.memory_space<vmem>>, vector<4x2xf32>
    %473 = vector.extract_strided_slice %472 {offsets = [0, 0], sizes = [4, 1], strides = [1, 1]} : vector<4x2xf32> to vector<4x1xf32>
    %474 = vector.extract_strided_slice %471 {offsets = [0, 0], sizes = [1, 324], strides = [1, 1]} : vector<2x324xf32> to vector<1x324xf32>
    %475 = vector.broadcast %473 : vector<4x1xf32> to vector<4x324xf32>
    %476 = vector.broadcast %474 : vector<1x324xf32> to vector<4x324xf32>
    %477 = arith.mulf %475, %476 : vector<4x324xf32>
    %478 = vector.extract_strided_slice %472 {offsets = [0, 1], sizes = [4, 1], strides = [1, 1]} : vector<4x2xf32> to vector<4x1xf32>
    %479 = vector.extract_strided_slice %471 {offsets = [1, 0], sizes = [1, 324], strides = [1, 1]} : vector<2x324xf32> to vector<1x324xf32>
    %480 = vector.broadcast %478 : vector<4x1xf32> to vector<4x324xf32>
    %481 = vector.broadcast %479 : vector<1x324xf32> to vector<4x324xf32>
    %482 = arith.mulf %480, %481 : vector<4x324xf32>
    %483 = arith.addf %477, %482 : vector<4x324xf32>
    %c0_45 = arith.constant 0 : index
    %c0_46 = arith.constant 0 : index
    %484 = vector.load %arg6[%c0_45, %c0_46] : memref<4x1xf32, #tpu.memory_space<vmem>>, vector<4x1xf32>
    %485 = vector.broadcast %484 : vector<4x1xf32> to vector<4x324xf32>
    %486 = arith.addf %483, %485 : vector<4x324xf32>
    %cst_47 = arith.constant 5.000000e-01 : f32
    %487 = vector.broadcast %cst_47 : f32 to vector<4x324xf32>
    %488 = arith.mulf %487, %486 : vector<4x324xf32>
    %489 = math.tanh %488 : vector<4x324xf32>
    %cst_48 = arith.constant 1.000000e+00 : f32
    %490 = vector.broadcast %cst_48 : f32 to vector<4x324xf32>
    %491 = arith.addf %490, %489 : vector<4x324xf32>
    %cst_49 = arith.constant 5.000000e-01 : f32
    %492 = vector.broadcast %cst_49 : f32 to vector<4x324xf32>
    %493 = arith.mulf %492, %491 : vector<4x324xf32>
    %c0_50 = arith.constant 0 : index
    %c0_51 = arith.constant 0 : index
    %c0_52 = arith.constant 0 : index
    %494 = vector.load %arg1[%c0_50, %c0_51, %c0_52] : memref<1x4x324xf32, #tpu.memory_space<vmem>>, vector<1x4x324xf32>
    %495 = vector.shape_cast %494 : vector<1x4x324xf32> to vector<4x324xf32>
    %496 = arith.mulf %495, %493 : vector<4x324xf32>
    %c0_53 = arith.constant 0 : index
    %c19_54 = arith.constant 19 : index
    %497 = vector.load %arg12[%c0_53, %c19_54] : memref<4x362xf32, #tpu.memory_space<vmem>>, vector<4x324xf32>
    tpu.vector_store %arg12[%c0_53, %c19_54], %496 {strides = array<i32>} : memref<4x362xf32, #tpu.memory_space<vmem>>, vector<4x324xf32>,
    %c0_55 = arith.constant 0 : index
    %c0_56 = arith.constant 0 : index
    %c0_57 = arith.constant 0 : index
    %498 = vector.load %arg7[%c0_55, %c0_56, %c0_57] : memref<9x4x4xf32, #tpu.memory_space<vmem>>, vector<1x4x4xf32>
    %499 = vector.shape_cast %498 : vector<1x4x4xf32> to vector<4x4xf32>
    %c0_58 = arith.constant 0 : index
    %c0_59 = arith.constant 0 : index
    %500 = vector.load %arg12[%c0_58, %c0_59] : memref<4x362xf32, #tpu.memory_space<vmem>>, vector<4x324xf32>
    %501 = vector.extract_strided_slice %499 {offsets = [0, 0], sizes = [4, 1], strides = [1, 1]} : vector<4x4xf32> to vector<4x1xf32>
    %502 = vector.extract_strided_slice %500 {offsets = [0, 0], sizes = [1, 324], strides = [1, 1]} : vector<4x324xf32> to vector<1x324xf32>
    %503 = vector.broadcast %501 : vector<4x1xf32> to vector<4x324xf32>
    %504 = vector.broadcast %502 : vector<1x324xf32> to vector<4x324xf32>
    %505 = arith.mulf %503, %504 : vector<4x324xf32>
    %506 = vector.extract_strided_slice %499 {offsets = [0, 1], sizes = [4, 1], strides = [1, 1]} : vector<4x4xf32> to vector<4x1xf32>
    %507 = vector.extract_strided_slice %500 {offsets = [1, 0], sizes = [1, 324], strides = [1, 1]} : vector<4x324xf32> to vector<1x324xf32>
    %508 = vector.broadcast %506 : vector<4x1xf32> to vector<4x324xf32>
    %509 = vector.broadcast %507 : vector<1x324xf32> to vector<4x324xf32>
    %510 = arith.mulf %508, %509 : vector<4x324xf32>
    %511 = arith.addf %505, %510 : vector<4x324xf32>
    %512 = vector.extract_strided_slice %499 {offsets = [0, 2], sizes = [4, 1], strides = [1, 1]} : vector<4x4xf32> to vector<4x1xf32>
    %513 = vector.extract_strided_slice %500 {offsets = [2, 0], sizes = [1, 324], strides = [1, 1]} : vector<4x324xf32> to vector<1x324xf32>
    %514 = vector.broadcast %512 : vector<4x1xf32> to vector<4x324xf32>
    %515 = vector.broadcast %513 : vector<1x324xf32> to vector<4x324xf32>
    %516 = arith.mulf %514, %515 : vector<4x324xf32>
    %517 = arith.addf %511, %516 : vector<4x324xf32>
    %518 = vector.extract_strided_slice %499 {offsets = [0, 3], sizes = [4, 1], strides = [1, 1]} : vector<4x4xf32> to vector<4x1xf32>
    %519 = vector.extract_strided_slice %500 {offsets = [3, 0], sizes = [1, 324], strides = [1, 1]} : vector<4x324xf32> to vector<1x324xf32>
    %520 = vector.broadcast %518 : vector<4x1xf32> to vector<4x324xf32>
    %521 = vector.broadcast %519 : vector<1x324xf32> to vector<4x324xf32>
    %522 = arith.mulf %520, %521 : vector<4x324xf32>
    %523 = arith.addf %517, %522 : vector<4x324xf32>
    %c1_60 = arith.constant 1 : index
    %c0_61 = arith.constant 0 : index
    %c0_62 = arith.constant 0 : index
    %524 = vector.load %arg7[%c1_60, %c0_61, %c0_62] : memref<9x4x4xf32, #tpu.memory_space<vmem>>, vector<1x4x4xf32>
    %525 = vector.shape_cast %524 : vector<1x4x4xf32> to vector<4x4xf32>
    %c0_63 = arith.constant 0 : index
    %c1_64 = arith.constant 1 : index
    %526 = vector.load %arg12[%c0_63, %c1_64] : memref<4x362xf32, #tpu.memory_space<vmem>>, vector<4x324xf32>
    %527 = vector.extract_strided_slice %525 {offsets = [0, 0], sizes = [4, 1], strides = [1, 1]} : vector<4x4xf32> to vector<4x1xf32>
    %528 = vector.extract_strided_slice %526 {offsets = [0, 0], sizes = [1, 324], strides = [1, 1]} : vector<4x324xf32> to vector<1x324xf32>
    %529 = vector.broadcast %527 : vector<4x1xf32> to vector<4x324xf32>
    %530 = vector.broadcast %528 : vector<1x324xf32> to vector<4x324xf32>
    %531 = arith.mulf %529, %530 : vector<4x324xf32>
    %532 = vector.extract_strided_slice %525 {offsets = [0, 1], sizes = [4, 1], strides = [1, 1]} : vector<4x4xf32> to vector<4x1xf32>
    %533 = vector.extract_strided_slice %526 {offsets = [1, 0], sizes = [1, 324], strides = [1, 1]} : vector<4x324xf32> to vector<1x324xf32>
    %534 = vector.broadcast %532 : vector<4x1xf32> to vector<4x324xf32>
    %535 = vector.broadcast %533 : vector<1x324xf32> to vector<4x324xf32>
    %536 = arith.mulf %534, %535 : vector<4x324xf32>
    %537 = arith.addf %531, %536 : vector<4x324xf32>
    %538 = vector.extract_strided_slice %525 {offsets = [0, 2], sizes = [4, 1], strides = [1, 1]} : vector<4x4xf32> to vector<4x1xf32>
    %539 = vector.extract_strided_slice %526 {offsets = [2, 0], sizes = [1, 324], strides = [1, 1]} : vector<4x324xf32> to vector<1x324xf32>
    %540 = vector.broadcast %538 : vector<4x1xf32> to vector<4x324xf32>
    %541 = vector.broadcast %539 : vector<1x324xf32> to vector<4x324xf32>
    %542 = arith.mulf %540, %541 : vector<4x324xf32>
    %543 = arith.addf %537, %542 : vector<4x324xf32>
    %544 = vector.extract_strided_slice %525 {offsets = [0, 3], sizes = [4, 1], strides = [1, 1]} : vector<4x4xf32> to vector<4x1xf32>
    %545 = vector.extract_strided_slice %526 {offsets = [3, 0], sizes = [1, 324], strides = [1, 1]} : vector<4x324xf32> to vector<1x324xf32>
    %546 = vector.broadcast %544 : vector<4x1xf32> to vector<4x324xf32>
    %547 = vector.broadcast %545 : vector<1x324xf32> to vector<4x324xf32>
    %548 = arith.mulf %546, %547 : vector<4x324xf32>
    %549 = arith.addf %543, %548 : vector<4x324xf32>
    %550 = arith.addf %523, %549 : vector<4x324xf32>
    %c2_65 = arith.constant 2 : index
    %c0_66 = arith.constant 0 : index
    %c0_67 = arith.constant 0 : index
    %551 = vector.load %arg7[%c2_65, %c0_66, %c0_67] : memref<9x4x4xf32, #tpu.memory_space<vmem>>, vector<1x4x4xf32>
    %552 = vector.shape_cast %551 : vector<1x4x4xf32> to vector<4x4xf32>
    %c0_68 = arith.constant 0 : index
    %c2_69 = arith.constant 2 : index
    %553 = vector.load %arg12[%c0_68, %c2_69] : memref<4x362xf32, #tpu.memory_space<vmem>>, vector<4x324xf32>
    %554 = vector.extract_strided_slice %552 {offsets = [0, 0], sizes = [4, 1], strides = [1, 1]} : vector<4x4xf32> to vector<4x1xf32>
    %555 = vector.extract_strided_slice %553 {offsets = [0, 0], sizes = [1, 324], strides = [1, 1]} : vector<4x324xf32> to vector<1x324xf32>
    %556 = vector.broadcast %554 : vector<4x1xf32> to vector<4x324xf32>
    %557 = vector.broadcast %555 : vector<1x324xf32> to vector<4x324xf32>
    %558 = arith.mulf %556, %557 : vector<4x324xf32>
    %559 = vector.extract_strided_slice %552 {offsets = [0, 1], sizes = [4, 1], strides = [1, 1]} : vector<4x4xf32> to vector<4x1xf32>
    %560 = vector.extract_strided_slice %553 {offsets = [1, 0], sizes = [1, 324], strides = [1, 1]} : vector<4x324xf32> to vector<1x324xf32>
    %561 = vector.broadcast %559 : vector<4x1xf32> to vector<4x324xf32>
    %562 = vector.broadcast %560 : vector<1x324xf32> to vector<4x324xf32>
    %563 = arith.mulf %561, %562 : vector<4x324xf32>
    %564 = arith.addf %558, %563 : vector<4x324xf32>
    %565 = vector.extract_strided_slice %552 {offsets = [0, 2], sizes = [4, 1], strides = [1, 1]} : vector<4x4xf32> to vector<4x1xf32>
    %566 = vector.extract_strided_slice %553 {offsets = [2, 0], sizes = [1, 324], strides = [1, 1]} : vector<4x324xf32> to vector<1x324xf32>
    %567 = vector.broadcast %565 : vector<4x1xf32> to vector<4x324xf32>
    %568 = vector.broadcast %566 : vector<1x324xf32> to vector<4x324xf32>
    %569 = arith.mulf %567, %568 : vector<4x324xf32>
    %570 = arith.addf %564, %569 : vector<4x324xf32>
    %571 = vector.extract_strided_slice %552 {offsets = [0, 3], sizes = [4, 1], strides = [1, 1]} : vector<4x4xf32> to vector<4x1xf32>
    %572 = vector.extract_strided_slice %553 {offsets = [3, 0], sizes = [1, 324], strides = [1, 1]} : vector<4x324xf32> to vector<1x324xf32>
    %573 = vector.broadcast %571 : vector<4x1xf32> to vector<4x324xf32>
    %574 = vector.broadcast %572 : vector<1x324xf32> to vector<4x324xf32>
    %575 = arith.mulf %573, %574 : vector<4x324xf32>
    %576 = arith.addf %570, %575 : vector<4x324xf32>
    %577 = arith.addf %550, %576 : vector<4x324xf32>
    %c3_70 = arith.constant 3 : index
    %c0_71 = arith.constant 0 : index
    %c0_72 = arith.constant 0 : index
    %578 = vector.load %arg7[%c3_70, %c0_71, %c0_72] : memref<9x4x4xf32, #tpu.memory_space<vmem>>, vector<1x4x4xf32>
    %579 = vector.shape_cast %578 : vector<1x4x4xf32> to vector<4x4xf32>
    %c0_73 = arith.constant 0 : index
    %c18_74 = arith.constant 18 : index
    %580 = vector.load %arg12[%c0_73, %c18_74] : memref<4x362xf32, #tpu.memory_space<vmem>>, vector<4x324xf32>
    %581 = vector.extract_strided_slice %579 {offsets = [0, 0], sizes = [4, 1], strides = [1, 1]} : vector<4x4xf32> to vector<4x1xf32>
    %582 = vector.extract_strided_slice %580 {offsets = [0, 0], sizes = [1, 324], strides = [1, 1]} : vector<4x324xf32> to vector<1x324xf32>
    %583 = vector.broadcast %581 : vector<4x1xf32> to vector<4x324xf32>
    %584 = vector.broadcast %582 : vector<1x324xf32> to vector<4x324xf32>
    %585 = arith.mulf %583, %584 : vector<4x324xf32>
    %586 = vector.extract_strided_slice %579 {offsets = [0, 1], sizes = [4, 1], strides = [1, 1]} : vector<4x4xf32> to vector<4x1xf32>
    %587 = vector.extract_strided_slice %580 {offsets = [1, 0], sizes = [1, 324], strides = [1, 1]} : vector<4x324xf32> to vector<1x324xf32>
    %588 = vector.broadcast %586 : vector<4x1xf32> to vector<4x324xf32>
    %589 = vector.broadcast %587 : vector<1x324xf32> to vector<4x324xf32>
    %590 = arith.mulf %588, %589 : vector<4x324xf32>
    %591 = arith.addf %585, %590 : vector<4x324xf32>
    %592 = vector.extract_strided_slice %579 {offsets = [0, 2], sizes = [4, 1], strides = [1, 1]} : vector<4x4xf32> to vector<4x1xf32>
    %593 = vector.extract_strided_slice %580 {offsets = [2, 0], sizes = [1, 324], strides = [1, 1]} : vector<4x324xf32> to vector<1x324xf32>
    %594 = vector.broadcast %592 : vector<4x1xf32> to vector<4x324xf32>
    %595 = vector.broadcast %593 : vector<1x324xf32> to vector<4x324xf32>
    %596 = arith.mulf %594, %595 : vector<4x324xf32>
    %597 = arith.addf %591, %596 : vector<4x324xf32>
    %598 = vector.extract_strided_slice %579 {offsets = [0, 3], sizes = [4, 1], strides = [1, 1]} : vector<4x4xf32> to vector<4x1xf32>
    %599 = vector.extract_strided_slice %580 {offsets = [3, 0], sizes = [1, 324], strides = [1, 1]} : vector<4x324xf32> to vector<1x324xf32>
    %600 = vector.broadcast %598 : vector<4x1xf32> to vector<4x324xf32>
    %601 = vector.broadcast %599 : vector<1x324xf32> to vector<4x324xf32>
    %602 = arith.mulf %600, %601 : vector<4x324xf32>
    %603 = arith.addf %597, %602 : vector<4x324xf32>
    %604 = arith.addf %577, %603 : vector<4x324xf32>
    %c4_75 = arith.constant 4 : index
    %c0_76 = arith.constant 0 : index
    %c0_77 = arith.constant 0 : index
    %605 = vector.load %arg7[%c4_75, %c0_76, %c0_77] : memref<9x4x4xf32, #tpu.memory_space<vmem>>, vector<1x4x4xf32>
    %606 = vector.shape_cast %605 : vector<1x4x4xf32> to vector<4x4xf32>
    %c0_78 = arith.constant 0 : index
    %c19_79 = arith.constant 19 : index
    %607 = vector.load %arg12[%c0_78, %c19_79] : memref<4x362xf32, #tpu.memory_space<vmem>>, vector<4x324xf32>
    %608 = vector.extract_strided_slice %606 {offsets = [0, 0], sizes = [4, 1], strides = [1, 1]} : vector<4x4xf32> to vector<4x1xf32>
    %609 = vector.extract_strided_slice %607 {offsets = [0, 0], sizes = [1, 324], strides = [1, 1]} : vector<4x324xf32> to vector<1x324xf32>
    %610 = vector.broadcast %608 : vector<4x1xf32> to vector<4x324xf32>
    %611 = vector.broadcast %609 : vector<1x324xf32> to vector<4x324xf32>
    %612 = arith.mulf %610, %611 : vector<4x324xf32>
    %613 = vector.extract_strided_slice %606 {offsets = [0, 1], sizes = [4, 1], strides = [1, 1]} : vector<4x4xf32> to vector<4x1xf32>
    %614 = vector.extract_strided_slice %607 {offsets = [1, 0], sizes = [1, 324], strides = [1, 1]} : vector<4x324xf32> to vector<1x324xf32>
    %615 = vector.broadcast %613 : vector<4x1xf32> to vector<4x324xf32>
    %616 = vector.broadcast %614 : vector<1x324xf32> to vector<4x324xf32>
    %617 = arith.mulf %615, %616 : vector<4x324xf32>
    %618 = arith.addf %612, %617 : vector<4x324xf32>
    %619 = vector.extract_strided_slice %606 {offsets = [0, 2], sizes = [4, 1], strides = [1, 1]} : vector<4x4xf32> to vector<4x1xf32>
    %620 = vector.extract_strided_slice %607 {offsets = [2, 0], sizes = [1, 324], strides = [1, 1]} : vector<4x324xf32> to vector<1x324xf32>
    %621 = vector.broadcast %619 : vector<4x1xf32> to vector<4x324xf32>
    %622 = vector.broadcast %620 : vector<1x324xf32> to vector<4x324xf32>
    %623 = arith.mulf %621, %622 : vector<4x324xf32>
    %624 = arith.addf %618, %623 : vector<4x324xf32>
    %625 = vector.extract_strided_slice %606 {offsets = [0, 3], sizes = [4, 1], strides = [1, 1]} : vector<4x4xf32> to vector<4x1xf32>
    %626 = vector.extract_strided_slice %607 {offsets = [3, 0], sizes = [1, 324], strides = [1, 1]} : vector<4x324xf32> to vector<1x324xf32>
    %627 = vector.broadcast %625 : vector<4x1xf32> to vector<4x324xf32>
    %628 = vector.broadcast %626 : vector<1x324xf32> to vector<4x324xf32>
    %629 = arith.mulf %627, %628 : vector<4x324xf32>
    %630 = arith.addf %624, %629 : vector<4x324xf32>
    %631 = arith.addf %604, %630 : vector<4x324xf32>
    %c5_80 = arith.constant 5 : index
    %c0_81 = arith.constant 0 : index
    %c0_82 = arith.constant 0 : index
    %632 = vector.load %arg7[%c5_80, %c0_81, %c0_82] : memref<9x4x4xf32, #tpu.memory_space<vmem>>, vector<1x4x4xf32>
    %633 = vector.shape_cast %632 : vector<1x4x4xf32> to vector<4x4xf32>
    %c0_83 = arith.constant 0 : index
    %c20_84 = arith.constant 20 : index
    %634 = vector.load %arg12[%c0_83, %c20_84] : memref<4x362xf32, #tpu.memory_space<vmem>>, vector<4x324xf32>
    %635 = vector.extract_strided_slice %633 {offsets = [0, 0], sizes = [4, 1], strides = [1, 1]} : vector<4x4xf32> to vector<4x1xf32>
    %636 = vector.extract_strided_slice %634 {offsets = [0, 0], sizes = [1, 324], strides = [1, 1]} : vector<4x324xf32> to vector<1x324xf32>
    %637 = vector.broadcast %635 : vector<4x1xf32> to vector<4x324xf32>
    %638 = vector.broadcast %636 : vector<1x324xf32> to vector<4x324xf32>
    %639 = arith.mulf %637, %638 : vector<4x324xf32>
    %640 = vector.extract_strided_slice %633 {offsets = [0, 1], sizes = [4, 1], strides = [1, 1]} : vector<4x4xf32> to vector<4x1xf32>
    %641 = vector.extract_strided_slice %634 {offsets = [1, 0], sizes = [1, 324], strides = [1, 1]} : vector<4x324xf32> to vector<1x324xf32>
    %642 = vector.broadcast %640 : vector<4x1xf32> to vector<4x324xf32>
    %643 = vector.broadcast %641 : vector<1x324xf32> to vector<4x324xf32>
    %644 = arith.mulf %642, %643 : vector<4x324xf32>
    %645 = arith.addf %639, %644 : vector<4x324xf32>
    %646 = vector.extract_strided_slice %633 {offsets = [0, 2], sizes = [4, 1], strides = [1, 1]} : vector<4x4xf32> to vector<4x1xf32>
    %647 = vector.extract_strided_slice %634 {offsets = [2, 0], sizes = [1, 324], strides = [1, 1]} : vector<4x324xf32> to vector<1x324xf32>
    %648 = vector.broadcast %646 : vector<4x1xf32> to vector<4x324xf32>
    %649 = vector.broadcast %647 : vector<1x324xf32> to vector<4x324xf32>
    %650 = arith.mulf %648, %649 : vector<4x324xf32>
    %651 = arith.addf %645, %650 : vector<4x324xf32>
    %652 = vector.extract_strided_slice %633 {offsets = [0, 3], sizes = [4, 1], strides = [1, 1]} : vector<4x4xf32> to vector<4x1xf32>
    %653 = vector.extract_strided_slice %634 {offsets = [3, 0], sizes = [1, 324], strides = [1, 1]} : vector<4x324xf32> to vector<1x324xf32>
    %654 = vector.broadcast %652 : vector<4x1xf32> to vector<4x324xf32>
    %655 = vector.broadcast %653 : vector<1x324xf32> to vector<4x324xf32>
    %656 = arith.mulf %654, %655 : vector<4x324xf32>
    %657 = arith.addf %651, %656 : vector<4x324xf32>
    %658 = arith.addf %631, %657 : vector<4x324xf32>
    %c6_85 = arith.constant 6 : index
    %c0_86 = arith.constant 0 : index
    %c0_87 = arith.constant 0 : index
    %659 = vector.load %arg7[%c6_85, %c0_86, %c0_87] : memref<9x4x4xf32, #tpu.memory_space<vmem>>, vector<1x4x4xf32>
    %660 = vector.shape_cast %659 : vector<1x4x4xf32> to vector<4x4xf32>
    %c0_88 = arith.constant 0 : index
    %c36_89 = arith.constant 36 : index
    %661 = vector.load %arg12[%c0_88, %c36_89] : memref<4x362xf32, #tpu.memory_space<vmem>>, vector<4x324xf32>
    %662 = vector.extract_strided_slice %660 {offsets = [0, 0], sizes = [4, 1], strides = [1, 1]} : vector<4x4xf32> to vector<4x1xf32>
    %663 = vector.extract_strided_slice %661 {offsets = [0, 0], sizes = [1, 324], strides = [1, 1]} : vector<4x324xf32> to vector<1x324xf32>
    %664 = vector.broadcast %662 : vector<4x1xf32> to vector<4x324xf32>
    %665 = vector.broadcast %663 : vector<1x324xf32> to vector<4x324xf32>
    %666 = arith.mulf %664, %665 : vector<4x324xf32>
    %667 = vector.extract_strided_slice %660 {offsets = [0, 1], sizes = [4, 1], strides = [1, 1]} : vector<4x4xf32> to vector<4x1xf32>
    %668 = vector.extract_strided_slice %661 {offsets = [1, 0], sizes = [1, 324], strides = [1, 1]} : vector<4x324xf32> to vector<1x324xf32>
    %669 = vector.broadcast %667 : vector<4x1xf32> to vector<4x324xf32>
    %670 = vector.broadcast %668 : vector<1x324xf32> to vector<4x324xf32>
    %671 = arith.mulf %669, %670 : vector<4x324xf32>
    %672 = arith.addf %666, %671 : vector<4x324xf32>
    %673 = vector.extract_strided_slice %660 {offsets = [0, 2], sizes = [4, 1], strides = [1, 1]} : vector<4x4xf32> to vector<4x1xf32>
    %674 = vector.extract_strided_slice %661 {offsets = [2, 0], sizes = [1, 324], strides = [1, 1]} : vector<4x324xf32> to vector<1x324xf32>
    %675 = vector.broadcast %673 : vector<4x1xf32> to vector<4x324xf32>
    %676 = vector.broadcast %674 : vector<1x324xf32> to vector<4x324xf32>
    %677 = arith.mulf %675, %676 : vector<4x324xf32>
    %678 = arith.addf %672, %677 : vector<4x324xf32>
    %679 = vector.extract_strided_slice %660 {offsets = [0, 3], sizes = [4, 1], strides = [1, 1]} : vector<4x4xf32> to vector<4x1xf32>
    %680 = vector.extract_strided_slice %661 {offsets = [3, 0], sizes = [1, 324], strides = [1, 1]} : vector<4x324xf32> to vector<1x324xf32>
    %681 = vector.broadcast %679 : vector<4x1xf32> to vector<4x324xf32>
    %682 = vector.broadcast %680 : vector<1x324xf32> to vector<4x324xf32>
    %683 = arith.mulf %681, %682 : vector<4x324xf32>
    %684 = arith.addf %678, %683 : vector<4x324xf32>
    %685 = arith.addf %658, %684 : vector<4x324xf32>
    %c7_90 = arith.constant 7 : index
    %c0_91 = arith.constant 0 : index
    %c0_92 = arith.constant 0 : index
    %686 = vector.load %arg7[%c7_90, %c0_91, %c0_92] : memref<9x4x4xf32, #tpu.memory_space<vmem>>, vector<1x4x4xf32>
    %687 = vector.shape_cast %686 : vector<1x4x4xf32> to vector<4x4xf32>
    %c0_93 = arith.constant 0 : index
    %c37_94 = arith.constant 37 : index
    %688 = vector.load %arg12[%c0_93, %c37_94] : memref<4x362xf32, #tpu.memory_space<vmem>>, vector<4x324xf32>
    %689 = vector.extract_strided_slice %687 {offsets = [0, 0], sizes = [4, 1], strides = [1, 1]} : vector<4x4xf32> to vector<4x1xf32>
    %690 = vector.extract_strided_slice %688 {offsets = [0, 0], sizes = [1, 324], strides = [1, 1]} : vector<4x324xf32> to vector<1x324xf32>
    %691 = vector.broadcast %689 : vector<4x1xf32> to vector<4x324xf32>
    %692 = vector.broadcast %690 : vector<1x324xf32> to vector<4x324xf32>
    %693 = arith.mulf %691, %692 : vector<4x324xf32>
    %694 = vector.extract_strided_slice %687 {offsets = [0, 1], sizes = [4, 1], strides = [1, 1]} : vector<4x4xf32> to vector<4x1xf32>
    %695 = vector.extract_strided_slice %688 {offsets = [1, 0], sizes = [1, 324], strides = [1, 1]} : vector<4x324xf32> to vector<1x324xf32>
    %696 = vector.broadcast %694 : vector<4x1xf32> to vector<4x324xf32>
    %697 = vector.broadcast %695 : vector<1x324xf32> to vector<4x324xf32>
    %698 = arith.mulf %696, %697 : vector<4x324xf32>
    %699 = arith.addf %693, %698 : vector<4x324xf32>
    %700 = vector.extract_strided_slice %687 {offsets = [0, 2], sizes = [4, 1], strides = [1, 1]} : vector<4x4xf32> to vector<4x1xf32>
    %701 = vector.extract_strided_slice %688 {offsets = [2, 0], sizes = [1, 324], strides = [1, 1]} : vector<4x324xf32> to vector<1x324xf32>
    %702 = vector.broadcast %700 : vector<4x1xf32> to vector<4x324xf32>
    %703 = vector.broadcast %701 : vector<1x324xf32> to vector<4x324xf32>
    %704 = arith.mulf %702, %703 : vector<4x324xf32>
    %705 = arith.addf %699, %704 : vector<4x324xf32>
    %706 = vector.extract_strided_slice %687 {offsets = [0, 3], sizes = [4, 1], strides = [1, 1]} : vector<4x4xf32> to vector<4x1xf32>
    %707 = vector.extract_strided_slice %688 {offsets = [3, 0], sizes = [1, 324], strides = [1, 1]} : vector<4x324xf32> to vector<1x324xf32>
    %708 = vector.broadcast %706 : vector<4x1xf32> to vector<4x324xf32>
    %709 = vector.broadcast %707 : vector<1x324xf32> to vector<4x324xf32>
    %710 = arith.mulf %708, %709 : vector<4x324xf32>
    %711 = arith.addf %705, %710 : vector<4x324xf32>
    %712 = arith.addf %685, %711 : vector<4x324xf32>
    %c8_95 = arith.constant 8 : index
    %c0_96 = arith.constant 0 : index
    %c0_97 = arith.constant 0 : index
    %713 = vector.load %arg7[%c8_95, %c0_96, %c0_97] : memref<9x4x4xf32, #tpu.memory_space<vmem>>, vector<1x4x4xf32>
    %714 = vector.shape_cast %713 : vector<1x4x4xf32> to vector<4x4xf32>
    %c0_98 = arith.constant 0 : index
    %c38_99 = arith.constant 38 : index
    %715 = vector.load %arg12[%c0_98, %c38_99] : memref<4x362xf32, #tpu.memory_space<vmem>>, vector<4x324xf32>
    %716 = vector.extract_strided_slice %714 {offsets = [0, 0], sizes = [4, 1], strides = [1, 1]} : vector<4x4xf32> to vector<4x1xf32>
    %717 = vector.extract_strided_slice %715 {offsets = [0, 0], sizes = [1, 324], strides = [1, 1]} : vector<4x324xf32> to vector<1x324xf32>
    %718 = vector.broadcast %716 : vector<4x1xf32> to vector<4x324xf32>
    %719 = vector.broadcast %717 : vector<1x324xf32> to vector<4x324xf32>
    %720 = arith.mulf %718, %719 : vector<4x324xf32>
    %721 = vector.extract_strided_slice %714 {offsets = [0, 1], sizes = [4, 1], strides = [1, 1]} : vector<4x4xf32> to vector<4x1xf32>
    %722 = vector.extract_strided_slice %715 {offsets = [1, 0], sizes = [1, 324], strides = [1, 1]} : vector<4x324xf32> to vector<1x324xf32>
    %723 = vector.broadcast %721 : vector<4x1xf32> to vector<4x324xf32>
    %724 = vector.broadcast %722 : vector<1x324xf32> to vector<4x324xf32>
    %725 = arith.mulf %723, %724 : vector<4x324xf32>
    %726 = arith.addf %720, %725 : vector<4x324xf32>
    %727 = vector.extract_strided_slice %714 {offsets = [0, 2], sizes = [4, 1], strides = [1, 1]} : vector<4x4xf32> to vector<4x1xf32>
    %728 = vector.extract_strided_slice %715 {offsets = [2, 0], sizes = [1, 324], strides = [1, 1]} : vector<4x324xf32> to vector<1x324xf32>
    %729 = vector.broadcast %727 : vector<4x1xf32> to vector<4x324xf32>
    %730 = vector.broadcast %728 : vector<1x324xf32> to vector<4x324xf32>
    %731 = arith.mulf %729, %730 : vector<4x324xf32>
    %732 = arith.addf %726, %731 : vector<4x324xf32>
    %733 = vector.extract_strided_slice %714 {offsets = [0, 3], sizes = [4, 1], strides = [1, 1]} : vector<4x4xf32> to vector<4x1xf32>
    %734 = vector.extract_strided_slice %715 {offsets = [3, 0], sizes = [1, 324], strides = [1, 1]} : vector<4x324xf32> to vector<1x324xf32>
    %735 = vector.broadcast %733 : vector<4x1xf32> to vector<4x324xf32>
    %736 = vector.broadcast %734 : vector<1x324xf32> to vector<4x324xf32>
    %737 = arith.mulf %735, %736 : vector<4x324xf32>
    %738 = arith.addf %732, %737 : vector<4x324xf32>
    %739 = arith.addf %712, %738 : vector<4x324xf32>
    %c0_100 = arith.constant 0 : index
    %c0_101 = arith.constant 0 : index
    %740 = vector.load %arg8[%c0_100, %c0_101] : memref<4x1xf32, #tpu.memory_space<vmem>>, vector<4x1xf32>
    %741 = vector.broadcast %740 : vector<4x1xf32> to vector<4x324xf32>
    %742 = arith.addf %739, %741 : vector<4x324xf32>
    %cst_102 = arith.constant 0.000000e+00 : f32
    %743 = vector.broadcast %cst_102 : f32 to vector<4x324xf32>
    %744 = arith.maximumf %742, %743 : vector<4x324xf32>
    %c0_103 = arith.constant 0 : index
    %c0_104 = arith.constant 0 : index
    %745 = vector.load %arg3[%c0_103, %c0_104] : memref<1x324xf32, #tpu.memory_space<vmem>>, vector<1x324xf32>
    %746 = vector.broadcast %745 : vector<1x324xf32> to vector<4x324xf32>
    %747 = arith.mulf %744, %746 : vector<4x324xf32>
    %c0_105 = arith.constant 0 : index
    %c19_106 = arith.constant 19 : index
    %748 = vector.load %arg12[%c0_105, %c19_106] : memref<4x362xf32, #tpu.memory_space<vmem>>, vector<4x324xf32>
    tpu.vector_store %arg12[%c0_105, %c19_106], %747 {strides = array<i32>} : memref<4x362xf32, #tpu.memory_space<vmem>>, vector<4x324xf32>,
    %c0_107 = arith.constant 0 : index
    %c0_108 = arith.constant 0 : index
    %c0_109 = arith.constant 0 : index
    %749 = vector.load %arg9[%c0_107, %c0_108, %c0_109] : memref<9x4x4xf32, #tpu.memory_space<vmem>>, vector<1x4x4xf32>
    %750 = vector.shape_cast %749 : vector<1x4x4xf32> to vector<4x4xf32>
    %c0_110 = arith.constant 0 : index
    %c0_111 = arith.constant 0 : index
    %751 = vector.load %arg12[%c0_110, %c0_111] : memref<4x362xf32, #tpu.memory_space<vmem>>, vector<4x324xf32>
    %752 = vector.extract_strided_slice %750 {offsets = [0, 0], sizes = [4, 1], strides = [1, 1]} : vector<4x4xf32> to vector<4x1xf32>
    %753 = vector.extract_strided_slice %751 {offsets = [0, 0], sizes = [1, 324], strides = [1, 1]} : vector<4x324xf32> to vector<1x324xf32>
    %754 = vector.broadcast %752 : vector<4x1xf32> to vector<4x324xf32>
    %755 = vector.broadcast %753 : vector<1x324xf32> to vector<4x324xf32>
    %756 = arith.mulf %754, %755 : vector<4x324xf32>
    %757 = vector.extract_strided_slice %750 {offsets = [0, 1], sizes = [4, 1], strides = [1, 1]} : vector<4x4xf32> to vector<4x1xf32>
    %758 = vector.extract_strided_slice %751 {offsets = [1, 0], sizes = [1, 324], strides = [1, 1]} : vector<4x324xf32> to vector<1x324xf32>
    %759 = vector.broadcast %757 : vector<4x1xf32> to vector<4x324xf32>
    %760 = vector.broadcast %758 : vector<1x324xf32> to vector<4x324xf32>
    %761 = arith.mulf %759, %760 : vector<4x324xf32>
    %762 = arith.addf %756, %761 : vector<4x324xf32>
    %763 = vector.extract_strided_slice %750 {offsets = [0, 2], sizes = [4, 1], strides = [1, 1]} : vector<4x4xf32> to vector<4x1xf32>
    %764 = vector.extract_strided_slice %751 {offsets = [2, 0], sizes = [1, 324], strides = [1, 1]} : vector<4x324xf32> to vector<1x324xf32>
    %765 = vector.broadcast %763 : vector<4x1xf32> to vector<4x324xf32>
    %766 = vector.broadcast %764 : vector<1x324xf32> to vector<4x324xf32>
    %767 = arith.mulf %765, %766 : vector<4x324xf32>
    %768 = arith.addf %762, %767 : vector<4x324xf32>
    %769 = vector.extract_strided_slice %750 {offsets = [0, 3], sizes = [4, 1], strides = [1, 1]} : vector<4x4xf32> to vector<4x1xf32>
    %770 = vector.extract_strided_slice %751 {offsets = [3, 0], sizes = [1, 324], strides = [1, 1]} : vector<4x324xf32> to vector<1x324xf32>
    %771 = vector.broadcast %769 : vector<4x1xf32> to vector<4x324xf32>
    %772 = vector.broadcast %770 : vector<1x324xf32> to vector<4x324xf32>
    %773 = arith.mulf %771, %772 : vector<4x324xf32>
    %774 = arith.addf %768, %773 : vector<4x324xf32>
    %c1_112 = arith.constant 1 : index
    %c0_113 = arith.constant 0 : index
    %c0_114 = arith.constant 0 : index
    %775 = vector.load %arg9[%c1_112, %c0_113, %c0_114] : memref<9x4x4xf32, #tpu.memory_space<vmem>>, vector<1x4x4xf32>
    %776 = vector.shape_cast %775 : vector<1x4x4xf32> to vector<4x4xf32>
    %c0_115 = arith.constant 0 : index
    %c1_116 = arith.constant 1 : index
    %777 = vector.load %arg12[%c0_115, %c1_116] : memref<4x362xf32, #tpu.memory_space<vmem>>, vector<4x324xf32>
    %778 = vector.extract_strided_slice %776 {offsets = [0, 0], sizes = [4, 1], strides = [1, 1]} : vector<4x4xf32> to vector<4x1xf32>
    %779 = vector.extract_strided_slice %777 {offsets = [0, 0], sizes = [1, 324], strides = [1, 1]} : vector<4x324xf32> to vector<1x324xf32>
    %780 = vector.broadcast %778 : vector<4x1xf32> to vector<4x324xf32>
    %781 = vector.broadcast %779 : vector<1x324xf32> to vector<4x324xf32>
    %782 = arith.mulf %780, %781 : vector<4x324xf32>
    %783 = vector.extract_strided_slice %776 {offsets = [0, 1], sizes = [4, 1], strides = [1, 1]} : vector<4x4xf32> to vector<4x1xf32>
    %784 = vector.extract_strided_slice %777 {offsets = [1, 0], sizes = [1, 324], strides = [1, 1]} : vector<4x324xf32> to vector<1x324xf32>
    %785 = vector.broadcast %783 : vector<4x1xf32> to vector<4x324xf32>
    %786 = vector.broadcast %784 : vector<1x324xf32> to vector<4x324xf32>
    %787 = arith.mulf %785, %786 : vector<4x324xf32>
    %788 = arith.addf %782, %787 : vector<4x324xf32>
    %789 = vector.extract_strided_slice %776 {offsets = [0, 2], sizes = [4, 1], strides = [1, 1]} : vector<4x4xf32> to vector<4x1xf32>
    %790 = vector.extract_strided_slice %777 {offsets = [2, 0], sizes = [1, 324], strides = [1, 1]} : vector<4x324xf32> to vector<1x324xf32>
    %791 = vector.broadcast %789 : vector<4x1xf32> to vector<4x324xf32>
    %792 = vector.broadcast %790 : vector<1x324xf32> to vector<4x324xf32>
    %793 = arith.mulf %791, %792 : vector<4x324xf32>
    %794 = arith.addf %788, %793 : vector<4x324xf32>
    %795 = vector.extract_strided_slice %776 {offsets = [0, 3], sizes = [4, 1], strides = [1, 1]} : vector<4x4xf32> to vector<4x1xf32>
    %796 = vector.extract_strided_slice %777 {offsets = [3, 0], sizes = [1, 324], strides = [1, 1]} : vector<4x324xf32> to vector<1x324xf32>
    %797 = vector.broadcast %795 : vector<4x1xf32> to vector<4x324xf32>
    %798 = vector.broadcast %796 : vector<1x324xf32> to vector<4x324xf32>
    %799 = arith.mulf %797, %798 : vector<4x324xf32>
    %800 = arith.addf %794, %799 : vector<4x324xf32>
    %801 = arith.addf %774, %800 : vector<4x324xf32>
    %c2_117 = arith.constant 2 : index
    %c0_118 = arith.constant 0 : index
    %c0_119 = arith.constant 0 : index
    %802 = vector.load %arg9[%c2_117, %c0_118, %c0_119] : memref<9x4x4xf32, #tpu.memory_space<vmem>>, vector<1x4x4xf32>
    %803 = vector.shape_cast %802 : vector<1x4x4xf32> to vector<4x4xf32>
    %c0_120 = arith.constant 0 : index
    %c2_121 = arith.constant 2 : index
    %804 = vector.load %arg12[%c0_120, %c2_121] : memref<4x362xf32, #tpu.memory_space<vmem>>, vector<4x324xf32>
    %805 = vector.extract_strided_slice %803 {offsets = [0, 0], sizes = [4, 1], strides = [1, 1]} : vector<4x4xf32> to vector<4x1xf32>
    %806 = vector.extract_strided_slice %804 {offsets = [0, 0], sizes = [1, 324], strides = [1, 1]} : vector<4x324xf32> to vector<1x324xf32>
    %807 = vector.broadcast %805 : vector<4x1xf32> to vector<4x324xf32>
    %808 = vector.broadcast %806 : vector<1x324xf32> to vector<4x324xf32>
    %809 = arith.mulf %807, %808 : vector<4x324xf32>
    %810 = vector.extract_strided_slice %803 {offsets = [0, 1], sizes = [4, 1], strides = [1, 1]} : vector<4x4xf32> to vector<4x1xf32>
    %811 = vector.extract_strided_slice %804 {offsets = [1, 0], sizes = [1, 324], strides = [1, 1]} : vector<4x324xf32> to vector<1x324xf32>
    %812 = vector.broadcast %810 : vector<4x1xf32> to vector<4x324xf32>
    %813 = vector.broadcast %811 : vector<1x324xf32> to vector<4x324xf32>
    %814 = arith.mulf %812, %813 : vector<4x324xf32>
    %815 = arith.addf %809, %814 : vector<4x324xf32>
    %816 = vector.extract_strided_slice %803 {offsets = [0, 2], sizes = [4, 1], strides = [1, 1]} : vector<4x4xf32> to vector<4x1xf32>
    %817 = vector.extract_strided_slice %804 {offsets = [2, 0], sizes = [1, 324], strides = [1, 1]} : vector<4x324xf32> to vector<1x324xf32>
    %818 = vector.broadcast %816 : vector<4x1xf32> to vector<4x324xf32>
    %819 = vector.broadcast %817 : vector<1x324xf32> to vector<4x324xf32>
    %820 = arith.mulf %818, %819 : vector<4x324xf32>
    %821 = arith.addf %815, %820 : vector<4x324xf32>
    %822 = vector.extract_strided_slice %803 {offsets = [0, 3], sizes = [4, 1], strides = [1, 1]} : vector<4x4xf32> to vector<4x1xf32>
    %823 = vector.extract_strided_slice %804 {offsets = [3, 0], sizes = [1, 324], strides = [1, 1]} : vector<4x324xf32> to vector<1x324xf32>
    %824 = vector.broadcast %822 : vector<4x1xf32> to vector<4x324xf32>
    %825 = vector.broadcast %823 : vector<1x324xf32> to vector<4x324xf32>
    %826 = arith.mulf %824, %825 : vector<4x324xf32>
    %827 = arith.addf %821, %826 : vector<4x324xf32>
    %828 = arith.addf %801, %827 : vector<4x324xf32>
    %c3_122 = arith.constant 3 : index
    %c0_123 = arith.constant 0 : index
    %c0_124 = arith.constant 0 : index
    %829 = vector.load %arg9[%c3_122, %c0_123, %c0_124] : memref<9x4x4xf32, #tpu.memory_space<vmem>>, vector<1x4x4xf32>
    %830 = vector.shape_cast %829 : vector<1x4x4xf32> to vector<4x4xf32>
    %c0_125 = arith.constant 0 : index
    %c18_126 = arith.constant 18 : index
    %831 = vector.load %arg12[%c0_125, %c18_126] : memref<4x362xf32, #tpu.memory_space<vmem>>, vector<4x324xf32>
    %832 = vector.extract_strided_slice %830 {offsets = [0, 0], sizes = [4, 1], strides = [1, 1]} : vector<4x4xf32> to vector<4x1xf32>
    %833 = vector.extract_strided_slice %831 {offsets = [0, 0], sizes = [1, 324], strides = [1, 1]} : vector<4x324xf32> to vector<1x324xf32>
    %834 = vector.broadcast %832 : vector<4x1xf32> to vector<4x324xf32>
    %835 = vector.broadcast %833 : vector<1x324xf32> to vector<4x324xf32>
    %836 = arith.mulf %834, %835 : vector<4x324xf32>
    %837 = vector.extract_strided_slice %830 {offsets = [0, 1], sizes = [4, 1], strides = [1, 1]} : vector<4x4xf32> to vector<4x1xf32>
    %838 = vector.extract_strided_slice %831 {offsets = [1, 0], sizes = [1, 324], strides = [1, 1]} : vector<4x324xf32> to vector<1x324xf32>
    %839 = vector.broadcast %837 : vector<4x1xf32> to vector<4x324xf32>
    %840 = vector.broadcast %838 : vector<1x324xf32> to vector<4x324xf32>
    %841 = arith.mulf %839, %840 : vector<4x324xf32>
    %842 = arith.addf %836, %841 : vector<4x324xf32>
    %843 = vector.extract_strided_slice %830 {offsets = [0, 2], sizes = [4, 1], strides = [1, 1]} : vector<4x4xf32> to vector<4x1xf32>
    %844 = vector.extract_strided_slice %831 {offsets = [2, 0], sizes = [1, 324], strides = [1, 1]} : vector<4x324xf32> to vector<1x324xf32>
    %845 = vector.broadcast %843 : vector<4x1xf32> to vector<4x324xf32>
    %846 = vector.broadcast %844 : vector<1x324xf32> to vector<4x324xf32>
    %847 = arith.mulf %845, %846 : vector<4x324xf32>
    %848 = arith.addf %842, %847 : vector<4x324xf32>
    %849 = vector.extract_strided_slice %830 {offsets = [0, 3], sizes = [4, 1], strides = [1, 1]} : vector<4x4xf32> to vector<4x1xf32>
    %850 = vector.extract_strided_slice %831 {offsets = [3, 0], sizes = [1, 324], strides = [1, 1]} : vector<4x324xf32> to vector<1x324xf32>
    %851 = vector.broadcast %849 : vector<4x1xf32> to vector<4x324xf32>
    %852 = vector.broadcast %850 : vector<1x324xf32> to vector<4x324xf32>
    %853 = arith.mulf %851, %852 : vector<4x324xf32>
    %854 = arith.addf %848, %853 : vector<4x324xf32>
    %855 = arith.addf %828, %854 : vector<4x324xf32>
    %c4_127 = arith.constant 4 : index
    %c0_128 = arith.constant 0 : index
    %c0_129 = arith.constant 0 : index
    %856 = vector.load %arg9[%c4_127, %c0_128, %c0_129] : memref<9x4x4xf32, #tpu.memory_space<vmem>>, vector<1x4x4xf32>
    %857 = vector.shape_cast %856 : vector<1x4x4xf32> to vector<4x4xf32>
    %c0_130 = arith.constant 0 : index
    %c19_131 = arith.constant 19 : index
    %858 = vector.load %arg12[%c0_130, %c19_131] : memref<4x362xf32, #tpu.memory_space<vmem>>, vector<4x324xf32>
    %859 = vector.extract_strided_slice %857 {offsets = [0, 0], sizes = [4, 1], strides = [1, 1]} : vector<4x4xf32> to vector<4x1xf32>
    %860 = vector.extract_strided_slice %858 {offsets = [0, 0], sizes = [1, 324], strides = [1, 1]} : vector<4x324xf32> to vector<1x324xf32>
    %861 = vector.broadcast %859 : vector<4x1xf32> to vector<4x324xf32>
    %862 = vector.broadcast %860 : vector<1x324xf32> to vector<4x324xf32>
    %863 = arith.mulf %861, %862 : vector<4x324xf32>
    %864 = vector.extract_strided_slice %857 {offsets = [0, 1], sizes = [4, 1], strides = [1, 1]} : vector<4x4xf32> to vector<4x1xf32>
    %865 = vector.extract_strided_slice %858 {offsets = [1, 0], sizes = [1, 324], strides = [1, 1]} : vector<4x324xf32> to vector<1x324xf32>
    %866 = vector.broadcast %864 : vector<4x1xf32> to vector<4x324xf32>
    %867 = vector.broadcast %865 : vector<1x324xf32> to vector<4x324xf32>
    %868 = arith.mulf %866, %867 : vector<4x324xf32>
    %869 = arith.addf %863, %868 : vector<4x324xf32>
    %870 = vector.extract_strided_slice %857 {offsets = [0, 2], sizes = [4, 1], strides = [1, 1]} : vector<4x4xf32> to vector<4x1xf32>
    %871 = vector.extract_strided_slice %858 {offsets = [2, 0], sizes = [1, 324], strides = [1, 1]} : vector<4x324xf32> to vector<1x324xf32>
    %872 = vector.broadcast %870 : vector<4x1xf32> to vector<4x324xf32>
    %873 = vector.broadcast %871 : vector<1x324xf32> to vector<4x324xf32>
    %874 = arith.mulf %872, %873 : vector<4x324xf32>
    %875 = arith.addf %869, %874 : vector<4x324xf32>
    %876 = vector.extract_strided_slice %857 {offsets = [0, 3], sizes = [4, 1], strides = [1, 1]} : vector<4x4xf32> to vector<4x1xf32>
    %877 = vector.extract_strided_slice %858 {offsets = [3, 0], sizes = [1, 324], strides = [1, 1]} : vector<4x324xf32> to vector<1x324xf32>
    %878 = vector.broadcast %876 : vector<4x1xf32> to vector<4x324xf32>
    %879 = vector.broadcast %877 : vector<1x324xf32> to vector<4x324xf32>
    %880 = arith.mulf %878, %879 : vector<4x324xf32>
    %881 = arith.addf %875, %880 : vector<4x324xf32>
    %882 = arith.addf %855, %881 : vector<4x324xf32>
    %c5_132 = arith.constant 5 : index
    %c0_133 = arith.constant 0 : index
    %c0_134 = arith.constant 0 : index
    %883 = vector.load %arg9[%c5_132, %c0_133, %c0_134] : memref<9x4x4xf32, #tpu.memory_space<vmem>>, vector<1x4x4xf32>
    %884 = vector.shape_cast %883 : vector<1x4x4xf32> to vector<4x4xf32>
    %c0_135 = arith.constant 0 : index
    %c20_136 = arith.constant 20 : index
    %885 = vector.load %arg12[%c0_135, %c20_136] : memref<4x362xf32, #tpu.memory_space<vmem>>, vector<4x324xf32>
    %886 = vector.extract_strided_slice %884 {offsets = [0, 0], sizes = [4, 1], strides = [1, 1]} : vector<4x4xf32> to vector<4x1xf32>
    %887 = vector.extract_strided_slice %885 {offsets = [0, 0], sizes = [1, 324], strides = [1, 1]} : vector<4x324xf32> to vector<1x324xf32>
    %888 = vector.broadcast %886 : vector<4x1xf32> to vector<4x324xf32>
    %889 = vector.broadcast %887 : vector<1x324xf32> to vector<4x324xf32>
    %890 = arith.mulf %888, %889 : vector<4x324xf32>
    %891 = vector.extract_strided_slice %884 {offsets = [0, 1], sizes = [4, 1], strides = [1, 1]} : vector<4x4xf32> to vector<4x1xf32>
    %892 = vector.extract_strided_slice %885 {offsets = [1, 0], sizes = [1, 324], strides = [1, 1]} : vector<4x324xf32> to vector<1x324xf32>
    %893 = vector.broadcast %891 : vector<4x1xf32> to vector<4x324xf32>
    %894 = vector.broadcast %892 : vector<1x324xf32> to vector<4x324xf32>
    %895 = arith.mulf %893, %894 : vector<4x324xf32>
    %896 = arith.addf %890, %895 : vector<4x324xf32>
    %897 = vector.extract_strided_slice %884 {offsets = [0, 2], sizes = [4, 1], strides = [1, 1]} : vector<4x4xf32> to vector<4x1xf32>
    %898 = vector.extract_strided_slice %885 {offsets = [2, 0], sizes = [1, 324], strides = [1, 1]} : vector<4x324xf32> to vector<1x324xf32>
    %899 = vector.broadcast %897 : vector<4x1xf32> to vector<4x324xf32>
    %900 = vector.broadcast %898 : vector<1x324xf32> to vector<4x324xf32>
    %901 = arith.mulf %899, %900 : vector<4x324xf32>
    %902 = arith.addf %896, %901 : vector<4x324xf32>
    %903 = vector.extract_strided_slice %884 {offsets = [0, 3], sizes = [4, 1], strides = [1, 1]} : vector<4x4xf32> to vector<4x1xf32>
    %904 = vector.extract_strided_slice %885 {offsets = [3, 0], sizes = [1, 324], strides = [1, 1]} : vector<4x324xf32> to vector<1x324xf32>
    %905 = vector.broadcast %903 : vector<4x1xf32> to vector<4x324xf32>
    %906 = vector.broadcast %904 : vector<1x324xf32> to vector<4x324xf32>
    %907 = arith.mulf %905, %906 : vector<4x324xf32>
    %908 = arith.addf %902, %907 : vector<4x324xf32>
    %909 = arith.addf %882, %908 : vector<4x324xf32>
    %c6_137 = arith.constant 6 : index
    %c0_138 = arith.constant 0 : index
    %c0_139 = arith.constant 0 : index
    %910 = vector.load %arg9[%c6_137, %c0_138, %c0_139] : memref<9x4x4xf32, #tpu.memory_space<vmem>>, vector<1x4x4xf32>
    %911 = vector.shape_cast %910 : vector<1x4x4xf32> to vector<4x4xf32>
    %c0_140 = arith.constant 0 : index
    %c36_141 = arith.constant 36 : index
    %912 = vector.load %arg12[%c0_140, %c36_141] : memref<4x362xf32, #tpu.memory_space<vmem>>, vector<4x324xf32>
    %913 = vector.extract_strided_slice %911 {offsets = [0, 0], sizes = [4, 1], strides = [1, 1]} : vector<4x4xf32> to vector<4x1xf32>
    %914 = vector.extract_strided_slice %912 {offsets = [0, 0], sizes = [1, 324], strides = [1, 1]} : vector<4x324xf32> to vector<1x324xf32>
    %915 = vector.broadcast %913 : vector<4x1xf32> to vector<4x324xf32>
    %916 = vector.broadcast %914 : vector<1x324xf32> to vector<4x324xf32>
    %917 = arith.mulf %915, %916 : vector<4x324xf32>
    %918 = vector.extract_strided_slice %911 {offsets = [0, 1], sizes = [4, 1], strides = [1, 1]} : vector<4x4xf32> to vector<4x1xf32>
    %919 = vector.extract_strided_slice %912 {offsets = [1, 0], sizes = [1, 324], strides = [1, 1]} : vector<4x324xf32> to vector<1x324xf32>
    %920 = vector.broadcast %918 : vector<4x1xf32> to vector<4x324xf32>
    %921 = vector.broadcast %919 : vector<1x324xf32> to vector<4x324xf32>
    %922 = arith.mulf %920, %921 : vector<4x324xf32>
    %923 = arith.addf %917, %922 : vector<4x324xf32>
    %924 = vector.extract_strided_slice %911 {offsets = [0, 2], sizes = [4, 1], strides = [1, 1]} : vector<4x4xf32> to vector<4x1xf32>
    %925 = vector.extract_strided_slice %912 {offsets = [2, 0], sizes = [1, 324], strides = [1, 1]} : vector<4x324xf32> to vector<1x324xf32>
    %926 = vector.broadcast %924 : vector<4x1xf32> to vector<4x324xf32>
    %927 = vector.broadcast %925 : vector<1x324xf32> to vector<4x324xf32>
    %928 = arith.mulf %926, %927 : vector<4x324xf32>
    %929 = arith.addf %923, %928 : vector<4x324xf32>
    %930 = vector.extract_strided_slice %911 {offsets = [0, 3], sizes = [4, 1], strides = [1, 1]} : vector<4x4xf32> to vector<4x1xf32>
    %931 = vector.extract_strided_slice %912 {offsets = [3, 0], sizes = [1, 324], strides = [1, 1]} : vector<4x324xf32> to vector<1x324xf32>
    %932 = vector.broadcast %930 : vector<4x1xf32> to vector<4x324xf32>
    %933 = vector.broadcast %931 : vector<1x324xf32> to vector<4x324xf32>
    %934 = arith.mulf %932, %933 : vector<4x324xf32>
    %935 = arith.addf %929, %934 : vector<4x324xf32>
    %936 = arith.addf %909, %935 : vector<4x324xf32>
    %c7_142 = arith.constant 7 : index
    %c0_143 = arith.constant 0 : index
    %c0_144 = arith.constant 0 : index
    %937 = vector.load %arg9[%c7_142, %c0_143, %c0_144] : memref<9x4x4xf32, #tpu.memory_space<vmem>>, vector<1x4x4xf32>
    %938 = vector.shape_cast %937 : vector<1x4x4xf32> to vector<4x4xf32>
    %c0_145 = arith.constant 0 : index
    %c37_146 = arith.constant 37 : index
    %939 = vector.load %arg12[%c0_145, %c37_146] : memref<4x362xf32, #tpu.memory_space<vmem>>, vector<4x324xf32>
    %940 = vector.extract_strided_slice %938 {offsets = [0, 0], sizes = [4, 1], strides = [1, 1]} : vector<4x4xf32> to vector<4x1xf32>
    %941 = vector.extract_strided_slice %939 {offsets = [0, 0], sizes = [1, 324], strides = [1, 1]} : vector<4x324xf32> to vector<1x324xf32>
    %942 = vector.broadcast %940 : vector<4x1xf32> to vector<4x324xf32>
    %943 = vector.broadcast %941 : vector<1x324xf32> to vector<4x324xf32>
    %944 = arith.mulf %942, %943 : vector<4x324xf32>
    %945 = vector.extract_strided_slice %938 {offsets = [0, 1], sizes = [4, 1], strides = [1, 1]} : vector<4x4xf32> to vector<4x1xf32>
    %946 = vector.extract_strided_slice %939 {offsets = [1, 0], sizes = [1, 324], strides = [1, 1]} : vector<4x324xf32> to vector<1x324xf32>
    %947 = vector.broadcast %945 : vector<4x1xf32> to vector<4x324xf32>
    %948 = vector.broadcast %946 : vector<1x324xf32> to vector<4x324xf32>
    %949 = arith.mulf %947, %948 : vector<4x324xf32>
    %950 = arith.addf %944, %949 : vector<4x324xf32>
    %951 = vector.extract_strided_slice %938 {offsets = [0, 2], sizes = [4, 1], strides = [1, 1]} : vector<4x4xf32> to vector<4x1xf32>
    %952 = vector.extract_strided_slice %939 {offsets = [2, 0], sizes = [1, 324], strides = [1, 1]} : vector<4x324xf32> to vector<1x324xf32>
    %953 = vector.broadcast %951 : vector<4x1xf32> to vector<4x324xf32>
    %954 = vector.broadcast %952 : vector<1x324xf32> to vector<4x324xf32>
    %955 = arith.mulf %953, %954 : vector<4x324xf32>
    %956 = arith.addf %950, %955 : vector<4x324xf32>
    %957 = vector.extract_strided_slice %938 {offsets = [0, 3], sizes = [4, 1], strides = [1, 1]} : vector<4x4xf32> to vector<4x1xf32>
    %958 = vector.extract_strided_slice %939 {offsets = [3, 0], sizes = [1, 324], strides = [1, 1]} : vector<4x324xf32> to vector<1x324xf32>
    %959 = vector.broadcast %957 : vector<4x1xf32> to vector<4x324xf32>
    %960 = vector.broadcast %958 : vector<1x324xf32> to vector<4x324xf32>
    %961 = arith.mulf %959, %960 : vector<4x324xf32>
    %962 = arith.addf %956, %961 : vector<4x324xf32>
    %963 = arith.addf %936, %962 : vector<4x324xf32>
    %c8_147 = arith.constant 8 : index
    %c0_148 = arith.constant 0 : index
    %c0_149 = arith.constant 0 : index
    %964 = vector.load %arg9[%c8_147, %c0_148, %c0_149] : memref<9x4x4xf32, #tpu.memory_space<vmem>>, vector<1x4x4xf32>
    %965 = vector.shape_cast %964 : vector<1x4x4xf32> to vector<4x4xf32>
    %c0_150 = arith.constant 0 : index
    %c38_151 = arith.constant 38 : index
    %966 = vector.load %arg12[%c0_150, %c38_151] : memref<4x362xf32, #tpu.memory_space<vmem>>, vector<4x324xf32>
    %967 = vector.extract_strided_slice %965 {offsets = [0, 0], sizes = [4, 1], strides = [1, 1]} : vector<4x4xf32> to vector<4x1xf32>
    %968 = vector.extract_strided_slice %966 {offsets = [0, 0], sizes = [1, 324], strides = [1, 1]} : vector<4x324xf32> to vector<1x324xf32>
    %969 = vector.broadcast %967 : vector<4x1xf32> to vector<4x324xf32>
    %970 = vector.broadcast %968 : vector<1x324xf32> to vector<4x324xf32>
    %971 = arith.mulf %969, %970 : vector<4x324xf32>
    %972 = vector.extract_strided_slice %965 {offsets = [0, 1], sizes = [4, 1], strides = [1, 1]} : vector<4x4xf32> to vector<4x1xf32>
    %973 = vector.extract_strided_slice %966 {offsets = [1, 0], sizes = [1, 324], strides = [1, 1]} : vector<4x324xf32> to vector<1x324xf32>
    %974 = vector.broadcast %972 : vector<4x1xf32> to vector<4x324xf32>
    %975 = vector.broadcast %973 : vector<1x324xf32> to vector<4x324xf32>
    %976 = arith.mulf %974, %975 : vector<4x324xf32>
    %977 = arith.addf %971, %976 : vector<4x324xf32>
    %978 = vector.extract_strided_slice %965 {offsets = [0, 2], sizes = [4, 1], strides = [1, 1]} : vector<4x4xf32> to vector<4x1xf32>
    %979 = vector.extract_strided_slice %966 {offsets = [2, 0], sizes = [1, 324], strides = [1, 1]} : vector<4x324xf32> to vector<1x324xf32>
    %980 = vector.broadcast %978 : vector<4x1xf32> to vector<4x324xf32>
    %981 = vector.broadcast %979 : vector<1x324xf32> to vector<4x324xf32>
    %982 = arith.mulf %980, %981 : vector<4x324xf32>
    %983 = arith.addf %977, %982 : vector<4x324xf32>
    %984 = vector.extract_strided_slice %965 {offsets = [0, 3], sizes = [4, 1], strides = [1, 1]} : vector<4x4xf32> to vector<4x1xf32>
    %985 = vector.extract_strided_slice %966 {offsets = [3, 0], sizes = [1, 324], strides = [1, 1]} : vector<4x324xf32> to vector<1x324xf32>
    %986 = vector.broadcast %984 : vector<4x1xf32> to vector<4x324xf32>
    %987 = vector.broadcast %985 : vector<1x324xf32> to vector<4x324xf32>
    %988 = arith.mulf %986, %987 : vector<4x324xf32>
    %989 = arith.addf %983, %988 : vector<4x324xf32>
    %990 = arith.addf %963, %989 : vector<4x324xf32>
    %c0_152 = arith.constant 0 : index
    %c0_153 = arith.constant 0 : index
    %991 = vector.load %arg10[%c0_152, %c0_153] : memref<4x1xf32, #tpu.memory_space<vmem>>, vector<4x1xf32>
    %992 = vector.broadcast %991 : vector<4x1xf32> to vector<4x324xf32>
    %993 = arith.addf %990, %992 : vector<4x324xf32>
    %cst_154 = arith.constant 5.000000e-01 : f32
    %994 = vector.broadcast %cst_154 : f32 to vector<4x324xf32>
    %995 = arith.mulf %994, %993 : vector<4x324xf32>
    %996 = math.tanh %995 : vector<4x324xf32>
    %cst_155 = arith.constant 1.000000e+00 : f32
    %997 = vector.broadcast %cst_155 : f32 to vector<4x324xf32>
    %998 = arith.addf %997, %996 : vector<4x324xf32>
    %cst_156 = arith.constant 5.000000e-01 : f32
    %999 = vector.broadcast %cst_156 : f32 to vector<4x324xf32>
    %1000 = arith.mulf %999, %998 : vector<4x324xf32>
    %1001 = arith.mulf %496, %1000 : vector<4x324xf32>
    %c0_157 = arith.constant 0 : index
    %c0_158 = arith.constant 0 : index
    %c0_159 = arith.constant 0 : index
    %1002 = vector.load %arg11[%c0_157, %c0_158, %c0_159] : memref<1x4x324xf32, #tpu.memory_space<vmem>>, vector<1x4x324xf32>
    %1003 = vector.shape_cast %1002 : vector<1x4x324xf32> to vector<4x324xf32>
    %1004 = vector.shape_cast %1001 : vector<4x324xf32> to vector<1x4x324xf32>
    tpu.vector_store %arg11[%c0_157, %c0_158, %c0_159], %1004 {strides = array<i32>} : memref<1x4x324xf32, #tpu.memory_space<vmem>>, vector<1x4x324xf32>,
    return
  }
  func.func @transform_0(%arg0: i32) -> (i32, i32, i32) {
    %c0_i32 = arith.constant 0 : i32
    %c0_i32_0 = arith.constant 0 : i32
    %c0_i32_1 = arith.constant 0 : i32
    return %arg0, %c0_i32, %c0_i32_0 : i32, i32, i32
  }
  func.func @transform_1(%arg0: i32) -> (i32, i32, i32) {
    %c0_i32 = arith.constant 0 : i32
    %c0_i32_0 = arith.constant 0 : i32
    %c0_i32_1 = arith.constant 0 : i32
    return %arg0, %c0_i32, %c0_i32_0 : i32, i32, i32
  }
  func.func @transform_2(%arg0: i32) -> (i32, i32) {
    %c0_i32 = arith.constant 0 : i32
    %c0_i32_0 = arith.constant 0 : i32
    %c0_i32_1 = arith.constant 0 : i32
    return %c0_i32, %c0_i32_0 : i32, i32
  }
  func.func @transform_3(%arg0: i32) -> (i32, i32, i32) {
    %c0_i32 = arith.constant 0 : i32
    %c0_i32_0 = arith.constant 0 : i32
    %c0_i32_1 = arith.constant 0 : i32
    %c0_i32_2 = arith.constant 0 : i32
    return %c0_i32, %c0_i32_0, %c0_i32_1 : i32, i32, i32
  }
  func.func @transform_4(%arg0: i32) -> (i32, i32) {
    %c0_i32 = arith.constant 0 : i32
    %c0_i32_0 = arith.constant 0 : i32
    %c0_i32_1 = arith.constant 0 : i32
    return %c0_i32, %c0_i32_0 : i32, i32
  }
  func.func @transform_5(%arg0: i32) -> (i32, i32) {
    %c0_i32 = arith.constant 0 : i32
    %c0_i32_0 = arith.constant 0 : i32
    %c0_i32_1 = arith.constant 0 : i32
    return %c0_i32, %c0_i32_0 : i32, i32
  }
  func.func @transform_6(%arg0: i32) -> (i32, i32, i32) {
    %c0_i32 = arith.constant 0 : i32
    %c0_i32_0 = arith.constant 0 : i32
    %c0_i32_1 = arith.constant 0 : i32
    %c0_i32_2 = arith.constant 0 : i32
    return %c0_i32, %c0_i32_0, %c0_i32_1 : i32, i32, i32
  }
  func.func @transform_7(%arg0: i32) -> (i32, i32) {
    %c0_i32 = arith.constant 0 : i32
    %c0_i32_0 = arith.constant 0 : i32
    %c0_i32_1 = arith.constant 0 : i32
    return %c0_i32, %c0_i32_0 : i32, i32
  }
  func.func @transform_8(%arg0: i32) -> (i32, i32, i32) {
    %c0_i32 = arith.constant 0 : i32
    %c0_i32_0 = arith.constant 0 : i32
    %c0_i32_1 = arith.constant 0 : i32
    %c0_i32_2 = arith.constant 0 : i32
    return %c0_i32, %c0_i32_0, %c0_i32_1 : i32, i32, i32
  }
  func.func @transform_9(%arg0: i32) -> (i32, i32) {
    %c0_i32 = arith.constant 0 : i32
    %c0_i32_0 = arith.constant 0 : i32
    %c0_i32_1 = arith.constant 0 : i32
    return %c0_i32, %c0_i32_0 : i32, i32
  }
  func.func @transform_10(%arg0: i32) -> (i32, i32, i32) {
    %c0_i32 = arith.constant 0 : i32
    %c0_i32_0 = arith.constant 0 : i32
    %c0_i32_1 = arith.constant 0 : i32
    return %arg0, %c0_i32, %c0_i32_0 : i32, i32, i32
  }
}

</mosaic_0001>

<bundles_post_ra>
// kernel: spblock_forward.1
= control target key start
LH: loop header
LB: loop body
LE: loop exit
PB: predicated region body
PF: predicated region fallthrough
CT: control target
= control target key end

     0   :  { %s3066_s13 = smov 0   ;;  %s4695_s0 = inlined_call_operand.vmem [shape: f32[2,4,324], index: 0, kind: input, shape index: {}]   ;;  %s4696_s1 = inlined_call_operand.vmem [shape: f32[2,8,362], index: 1, kind: input, shape index: {}]   ;;  %s4697_s2 = inlined_call_operand.vmem [shape: f32[1,324], index: 2, kind: input, shape index: {}]   ;;  %s4698_s3 = inlined_call_operand.vmem [shape: f32[9,2,8], index: 3, kind: input, shape index: {}]   ;;  %s4699_s4 = inlined_call_operand.vmem [shape: f32[4,2], index: 4, kind: input, shape index: {}]   ;;  %s4700_s5 = inlined_call_operand.vmem [shape: f32[4,1], index: 5, kind: input, shape index: {}]   ;;  %s4701_s6 = inlined_call_operand.vmem [shape: f32[9,4,4], index: 6, kind: input, shape index: {}]   ;;  %s4702_s7 = inlined_call_operand.vmem [shape: f32[4,1], index: 7, kind: input, shape index: {}]   ;;  %s4703_s8 = inlined_call_operand.vmem [shape: f32[9,4,4], index: 8, kind: input, shape index: {}]   ;;  %s4704_s9 = inlined_call_operand.vmem [shape: f32[4,1], index: 9, kind: input, shape index: {}]   ;;  %s4705_s10 = inlined_call_operand.vmem [shape: f32[2,4,324], index: 10, kind: output, shape index: {}]  }
   0x1 LB: > { %s2797_s14 = sadd.s32 4294967295, %s2991_s13   ;;  %p2801_p0 = scmp.ge.s32.totalorder %s2991_s13, 1  ;;  %s2991_s13 = sphi %s3066_s13, %s20_s13  }
   0x2   : > { %p322_p1 = scmp.lt.s32.totalorder %s2991_s13, 3 }
   0x4   : > { %p323_p2 = pnand %p2801_p0, %p322_p1 }
   0x6   : > { %326 = sbr.rel (%p323_p2) target bundleno = 1430 (0x596), region = 60 }
   0xb   : > { %v3077_v0 = vld [vmem:[%s4698_s3] sm:$0x3]  ;;  %v4714_v1 = vmov 2   ;;  %v4720_v2 = vmov 0   ;;  %v2805_v3 = vld [vmem:[%s4698_s3 + $0x2] sm:$0x3]  ;;  %v393_v20 = vlaneseq }
   0xc   : > { %2860 = vset.pattern.permute.xlu1 %v4714_v1  ;;  %2859 = vset.pattern.permute.xlu0 %v4720_v2  ;;  %v4712_v4 = vmov 3   ;;  %v2806_v5 = vld [vmem:[%s4698_s3 + $0x4] sm:$0x3]  ;;  %v4710_v6 = vmov 4   ;;  %v2807_v7 = vld [vmem:[%s4698_s3 + $0x6] sm:$0x3] }
   0xd   : > { %431 = vperm.xlu1 %2860, %v3077_v0   ;;  %390 = vperm.xlu0 %2859, %v3077_v0   ;;  %v2808_v8 = vld [vmem:[%s4698_s3 + $0x8] sm:$0x3]  ;;  %v4706_v9 = vmov 6   ;;  %v4718_v10 = vmov 7   ;;  %v4716_v11 = vmov 1   ;;  %v4708_v13 = vmov 5  }
   0xe   : > { %v3110_v12 = vld [vmem:[%s4698_s3 + $0xa] sm:$0x3]  ;;  %p365_p3 = scmp.lt.s32.totalorder %s2797_s14, 1  ;;  %v3158_v23 = vshrl.u32 %v393_v20, 7  ;;  %s3001_s11 = smov 127   ;;  %vm651_vm0 = vcmask 1039360  }
   0xf   : > { %s3002_s12 = smov 126   ;;  %s3003_s15 = smov 110   ;;  %vm749_vm1 = vcmask 1031168   ;;  %vm847_vm2 = vcmask 900096   ;;  %vm945_vm3 = vcmask 891904   ;;  %vm1043_vm4 = vcmask 883712  }
  0x10   : > { %s4868_s14 = smov (!%p365_p3, %s2797_s14), 1  ;;  %v3167_v25 = vsub.s32 0, %v3158_v23  ;;  %v3170_v26 = vsub.s32 1, %v3158_v23  ;;  %v3205_v38 = vsub.s32 2, %v3158_v23  ;;  %v3210_v41 = vsub.s32 3, %v3158_v23  ;;  %s3004_s16 = smov 109  }
  0x11   : > { %2861 = vset.pattern.permute.xlu1 %v4712_v4  ;;  %566 = vperm.xlu0 %2859, %v2805_v3   ;;  %s2832_s27 = smul.u32 24, %s4868_s14  ;;  %v3241_v54 = vsub.s32 4, %v3158_v23  ;;  %s3005_s17 = smov 108   ;;  %vm1141_vm5 = vcmask 752640   ;;  %vm1239_vm6 = vcmask 744448   ;;  %vm1337_vm7 = vcmask 736256  }
  0x12   : > { %453 = vperm.xlu1 %2861, %v3077_v0   ;;  %4774 = vst [vmem:[#allocation8_spill] sm:$0xff] %v3167_v25  ;;  %4775 = vst [vmem:[#allocation9_spill] sm:$0xff] %v3170_v26  ;;  %s3006_s24 = smov 92   ;;  %s3007_s25 = smov 91   ;;  %vm380_vm8 = vcmask 150528   ;;  %vm382_vm9 = vcmask 863928  }
  0x13   : > { %s374_s30 = scalar_lea.vmem %s4696_s1, %s2832_s27  ;;  %4782 = vst [vmem:[#allocation16_spill] sm:$0xff] %v3205_v38  ;;  %4783 = vst [vmem:[#allocation17_spill] sm:$0xff] %v3210_v41  ;;  %s3008_s26 = smov 90   ;;  %vm1433_vm10 = vcmask 1043608   ;;  %vm1434_vm11 = vcmask 1047556   ;;  %vm1428_vm12 = vcmask 154624  }
  0x14   : > { %v3174_v28 = vld [vmem:[%s374_s30] sm:$0xff]  ;;  %v3176_v30 = vld [vmem:[%s374_s30 + $0x8] sm:$0xff]  ;;  %v3186_v33 = vld [vmem:[%s374_s30 + $0x10] sm:$0xff]  ;;  %4787 = vst [vmem:[#allocation21_spill] sm:$0xff] %v3241_v54  ;;  %s2831_s22 = smul.u32 12, %s4868_s14  ;;  %s3010_s29 = smov 19  }
  0x15   : > { %664 = vperm.xlu0 %2859, %v2806_v5   ;;  %v3180_v31 = vrot.slane %v3174_v28, %v3167_v25  ;;  %v3184_v32 = vrot.slane %v3174_v28, %v3170_v26  ;;  %v3190_v34 = vrot.slane %v3176_v30, %v3167_v25  ;;  %v3194_v35 = vrot.slane %v3176_v30, %v3170_v26  ;;  %vm3875_vm13 = vmor %vm1434_vm11, %vm1433_vm10 }
  0x16   : > { %2862 = vset.pattern.permute.xlu1 %v4710_v6  ;;  %v3198_v36 = vrot.slane %v3186_v33, %v3167_v25  ;;  %v3202_v37 = vrot.slane %v3186_v33, %v3170_v26  ;;  %v3220_v48 = vrot.slane %v3174_v28, %v3205_v38  ;;  %v3224_v49 = vrot.slane %v3176_v30, %v3205_v38  ;;  %s369_s28 = scalar_lea.vmem %s4695_s0, %s2831_s22 }
  0x17   : > { %475 = vperm.xlu1 %2862, %v3077_v0   ;;  %4777 = vst [vmem:[#allocation11_spill] sm:$0xff] %v3180_v31  ;;  %4778 = vst [vmem:[#allocation12_spill] sm:$0xff] %v3190_v34  ;;  %v3228_v50 = vrot.slane %v3186_v33, %v3205_v38  ;;  %v3234_v52 = vrot.slane %v3174_v28, %v3210_v41  ;;  %v3238_v53 = vrot.slane %v3176_v30, %v3210_v41  ;;  %vm1437_vm14 = vcmask 707584  }
  0x18   : > { %4779 = vst [vmem:[#allocation13_spill] sm:$0xff] %v3194_v35  ;;  %4780 = vst [vmem:[#allocation14_spill] sm:$0xff] %v3198_v36  ;;  %v3248_v61 = vrot.slane %v3186_v33, %v3210_v41  ;;  %v3259_v20 = vrot.slane %v3174_v28, %v3241_v54  ;;  %vm2728_vm15 = vcmask 551936  }
  0x19   : > { %762 = vperm.xlu0 %2859, %v2807_v7   ;;  %4781 = vst [vmem:[#allocation15_spill] sm:$0xff] %v3202_v37  ;;  %4784 = vst [vmem:[#allocation18_spill] sm:$0xff] %v3220_v48 }
  0x1a   : > { %4785 = vst [vmem:[#allocation19_spill] sm:$0xff] %v3224_v49  ;;  %4786 = vst [vmem:[#allocation20_spill] sm:$0xff] %v3228_v50 }
  0x1b   : > { %2863 = vset.pattern.permute.xlu1 %v4706_v9 }
  0x1c   : > { %519 = vperm.xlu1 %2863, %v3077_v0  }
  0x1d   : > { %860 = vperm.xlu0 %2859, %v2808_v8  }
  0x20   : > { %2864 = vset.pattern.permute.xlu1 %v4718_v10 }
  0x21   : > { %541 = vperm.xlu1 %2864, %v3077_v0   ;;  %2880 = vset.pattern.permute.xlu0 %v4712_v4 }
  0x22   : > { %593 = vperm.xlu0 %2880, %v2805_v3  }
  0x25   : > { %2865 = vset.pattern.permute.xlu1 %v4716_v11 }
  0x26   : > { %573 = vperm.xlu1 %2865, %v2805_v3   ;;  %691 = vperm.xlu0 %2880, %v2806_v5  }
  0x2a   : > { %2866 = vset.pattern.permute.xlu1 %v4714_v1  ;;  %789 = vperm.xlu0 %2880, %v2807_v7  }
  0x2b   : > { %583 = vperm.xlu1 %2866, %v2805_v3  }
  0x2e   : > { %887 = vperm.xlu0 %2880, %v2808_v8  }
  0x2f   : > { %2867 = vset.pattern.permute.xlu1 %v4710_v6 }
  0x30   : > { %603 = vperm.xlu1 %2867, %v2805_v3  }
  0x32   : > { %985 = vperm.xlu0 %2880, %v3110_v12  }
  0x34   : > { %2868 = vset.pattern.permute.xlu1 %v4708_v13 }
  0x35   : > { %613 = vperm.xlu1 %2868, %v2805_v3  }
  0x36   : > { %2888 = vset.pattern.permute.xlu0 %v4706_v9 }
  0x37   : > { %623 = vperm.xlu0 %2888, %v2805_v3  }
  0x39   : > { %2869 = vset.pattern.permute.xlu1 %v4718_v10 }
  0x3a   : > { %633 = vperm.xlu1 %2869, %v2805_v3   ;;  %v3252_v3 = vsub.s32 5, %v3158_v23 }
  0x3b   : > { %721 = vperm.xlu0 %2888, %v2806_v5  }
  0x3c   : > { %4788 = vst [vmem:[#allocation22_spill] sm:$0xff] %v3252_v3 }
  0x3e   : > { %2870 = vset.pattern.permute.xlu1 %v4716_v11 }
  0x3f   : > { %671 = vperm.xlu1 %2870, %v2806_v5   ;;  %819 = vperm.xlu0 %2888, %v2807_v7  }
  0x43   : > { %2871 = vset.pattern.permute.xlu1 %v4714_v1  ;;  %917 = vperm.xlu0 %2888, %v2808_v8  }
  0x44   : > { %681 = vperm.xlu1 %2871, %v2806_v5  }
  0x48   : > { %2872 = vset.pattern.permute.xlu1 %v4710_v6 }
  0x49   : > { %701 = vperm.xlu1 %2872, %v2806_v5  }
  0x4d   : > { %2873 = vset.pattern.permute.xlu1 %v4708_v13 }
  0x4e   : > { %711 = vperm.xlu1 %2873, %v2806_v5  }
  0x52   : > { %2874 = vset.pattern.permute.xlu1 %v4718_v10 }
  0x53   : > { %731 = vperm.xlu1 %2874, %v2806_v5  }
  0x57   : > { %2875 = vset.pattern.permute.xlu1 %v4716_v11 }
  0x58   : > { %769 = vperm.xlu1 %2875, %v2807_v7  }
  0x5c   : > { %2876 = vset.pattern.permute.xlu1 %v4714_v1 }
  0x5d   : > { %779 = vperm.xlu1 %2876, %v2807_v7  }
  0x61   : > { %2877 = vset.pattern.permute.xlu1 %v4710_v6 }
  0x62   : > { %799 = vperm.xlu1 %2877, %v2807_v7  }
  0x66   : > { %2878 = vset.pattern.permute.xlu1 %v4708_v13 }
  0x67   : > { %809 = vperm.xlu1 %2878, %v2807_v7  }
  0x6b   : > { %2879 = vset.pattern.permute.xlu1 %v4718_v10 }
  0x6c   : > { %829 = vperm.xlu1 %2879, %v2807_v7  }
  0x70   : > { %2881 = vset.pattern.permute.xlu1 %v4716_v11 }
  0x71   : > { %867 = vperm.xlu1 %2881, %v2808_v8  }
  0x75   : > { %2882 = vset.pattern.permute.xlu1 %v4714_v1 }
  0x76   : > { %877 = vperm.xlu1 %2882, %v2808_v8  }
  0x7a   : > { %2883 = vset.pattern.permute.xlu1 %v4710_v6 }
  0x7b   : > { %897 = vperm.xlu1 %2883, %v2808_v8  }
  0x7f   : > { %2884 = vset.pattern.permute.xlu1 %v4708_v13 }
  0x80   : > { %907 = vperm.xlu1 %2884, %v2808_v8  }
  0x84   : > { %2885 = vset.pattern.permute.xlu1 %v4718_v10 }
  0x85   : > { %927 = vperm.xlu1 %2885, %v2808_v8  }
  0x88   : > { %v3131_v14 = vpop.permute.xlu1 %431  ;;  %v3133_v15 = vpop.permute.xlu0 %390 }
  0x89   : > { %4769 = vst [vmem:[#allocation3_spill] sm:$0xff] %v3131_v14  ;;  %4770 = vst [vmem:[#allocation4_spill] sm:$0xff] %v3133_v15  ;;  %2886 = vset.pattern.permute.xlu1 %v4716_v11 }
  0x8a   : > { %965 = vperm.xlu1 %2886, %v3110_v12  }
  0x8c   : > { %v567_v16 = vpop.permute.xlu0 %566 }
  0x8d   : > { %v3137_v17 = vpop.permute.xlu1 %453  ;;  %v569_v42 = vmul.f32 %v567_v16, %v3180_v31  ;;  %v570_v44 = vmul.f32 %v567_v16, %v3190_v34  ;;  %v571_v46 = vmul.f32 %v567_v16, %v3198_v36 }
  0x8e   : > { %4771 = vst [vmem:[#allocation5_spill] sm:$0xff] %v3137_v17  ;;  %2887 = vset.pattern.permute.xlu1 %v4714_v1 }
  0x8f   : > { %975 = vperm.xlu1 %2887, %v3110_v12  }
  0x90   : > { %v3143_v18 = vpop.permute.xlu0 %664 }
  0x92   : > { %v3149_v19 = vpop.permute.xlu1 %475 }
  0x93   : > { %4772 = vst [vmem:[#allocation6_spill] sm:$0xff] %v3149_v19  ;;  %2889 = vset.pattern.permute.xlu1 %v4710_v6 }
  0x94   : > { %v3152_v21 = vpop.permute.xlu0 %762  ;;  %995 = vperm.xlu1 %2889, %v3110_v12  }
  0x97   : > { %v3156_v22 = vpop.permute.xlu1 %519 }
  0x98   : > { %4773 = vst [vmem:[#allocation7_spill] sm:$0xff] %v3156_v22  ;;  %v3160_v24 = vpop.permute.xlu0 %860  ;;  %2890 = vset.pattern.permute.xlu1 %v4708_v13 }
  0x9c   : > { %v3172_v27 = vpop.permute.xlu1 %541 }
  0x9d   : > { %4776 = vst [vmem:[#allocation10_spill] sm:$0xff] %v3172_v27  ;;  %v594_v29 = vpop.permute.xlu0 %593 }
  0x9e   : > { %v596_v62 = vmul.f32 %v594_v29, %v3234_v52  ;;  %v597_v5 = vmul.f32 %v594_v29, %v3238_v53 }
  0xa1   : > { %v574_v39 = vpop.permute.xlu1 %573  ;;  %v3207_v40 = vpop.permute.xlu0 %691 }
  0xa2   : > { %v576_v43 = vmul.f32 %v574_v39, %v3184_v32  ;;  %v577_v45 = vmul.f32 %v574_v39, %v3194_v35  ;;  %v578_v47 = vmul.f32 %v574_v39, %v3202_v37  ;;  %v598_v39 = vmul.f32 %v594_v29, %v3248_v61 }
  0xa4   : > { %v579_v55 = vadd.f32 %v576_v43, %v569_v42  ;;  %v580_v57 = vadd.f32 %v577_v45, %v570_v44  ;;  %v581_v63 = vadd.f32 %v578_v47, %v571_v46  ;;  %v3264_v43 = vrot.slane %v3176_v30, %v3241_v54 }
  0xa5   : > { %v3230_v51 = vpop.permute.xlu0 %789  ;;  %v3267_v44 = vsub.s32 6, %v3158_v23  ;;  %v3271_v46 = vrot.slane %v3186_v33, %v3241_v54 }
  0xa6   : > { %v584_v56 = vpop.permute.xlu1 %583 }
  0xa7   : > { %v586_v58 = vmul.f32 %v584_v56, %v3220_v48  ;;  %v587_v59 = vmul.f32 %v584_v56, %v3224_v49  ;;  %v588_v60 = vmul.f32 %v584_v56, %v3228_v50  ;;  %4789 = vst [vmem:[#allocation23_spill] sm:$0xff] %v3267_v44  ;;  %v3276_v56 = vrot.slane %v3174_v28, %v3252_v3 }
  0xa9   : > { %v589_v7 = vadd.f32 %v586_v58, %v579_v55  ;;  %v590_v8 = vadd.f32 %v587_v59, %v580_v57  ;;  %v3255_v16 = vpop.permute.xlu0 %887  ;;  %v591_v42 = vadd.f32 %v588_v60, %v581_v63  ;;  %v3283_v59 = vrot.slane %v3176_v30, %v3252_v3 }
  0xaa   : > { %v3287_v60 = vrot.slane %v3186_v33, %v3252_v3 }
  0xab   : > { %v604_v45 = vpop.permute.xlu1 %603  ;;  %v599_v47 = vadd.f32 %v596_v62, %v589_v7  ;;  %v600_v29 = vadd.f32 %v597_v5, %v590_v8  ;;  %v601_v62 = vadd.f32 %v598_v39, %v591_v42  ;;  %v3291_v7 = vsub.s32 7, %v3158_v23 }
  0xac   : > { %v606_v55 = vmul.f32 %v604_v45, %v3259_v20  ;;  %v607_v57 = vmul.f32 %v604_v45, %v3264_v43  ;;  %v608_v63 = vmul.f32 %v604_v45, %v3271_v46  ;;  %v3295_v5 = vrot.slane %v3174_v28, %v3267_v44 }
  0xad   : > { %v3279_v58 = vpop.permute.xlu0 %985  ;;  %4790 = vst [vmem:[#allocation24_spill] sm:$0xff] %v3291_v7  ;;  %v3302_v39 = vrot.slane %v3176_v30, %v3267_v44  ;;  %v3306_v23 = vrot.slane %v3186_v33, %v3267_v44 }
  0xae   : > { %v609_v8 = vadd.f32 %v606_v55, %v599_v47  ;;  %v610_v13 = vadd.f32 %v607_v57, %v600_v29  ;;  %v611_v42 = vadd.f32 %v608_v63, %v601_v62  ;;  %v3310_v47 = vrot.slane %v3174_v28, %v3291_v7 }
  0xaf   : > { %v3321_v63 = vrot.slane %v3186_v33, %v3291_v7  ;;  %v667_v33 = vmul.f32 %v3143_v18, %v3180_v31 }
  0xb0   : > { %v614_v9 = vpop.permute.xlu1 %613 }
  0xb1   : > { %v616_v6 = vmul.f32 %v614_v9, %v3276_v56  ;;  %v617_v4 = vmul.f32 %v614_v9, %v3283_v59  ;;  %v618_v1 = vmul.f32 %v614_v9, %v3287_v60  ;;  %v3315_v9 = vrot.slane %v3176_v30, %v3291_v7 }
  0xb2   : > { %v624_v45 = vpop.permute.xlu0 %623 }
  0xb3   : > { %v619_v55 = vadd.f32 %v616_v6, %v609_v8  ;;  %v620_v29 = vadd.f32 %v617_v4, %v610_v13  ;;  %v626_v57 = vmul.f32 %v624_v45, %v3295_v5  ;;  %v621_v11 = vadd.f32 %v618_v1, %v611_v42 }
  0xb4   : > { %v627_v10 = vmul.f32 %v624_v45, %v3302_v39  ;;  %v628_v2 = vmul.f32 %v624_v45, %v3306_v23 }
  0xb5   : > { %v634_v41 = vpop.permute.xlu1 %633  ;;  %v629_v62 = vadd.f32 %v626_v57, %v619_v55  ;;  %v668_v55 = vmul.f32 %v3143_v18, %v3190_v34 }
  0xb6   : > { %v636_v6 = vmul.f32 %v634_v41, %v3310_v47  ;;  %v637_v4 = vmul.f32 %v634_v41, %v3315_v9  ;;  %v630_v13 = vadd.f32 %v627_v10, %v620_v29  ;;  %v638_v28 = vmul.f32 %v634_v41, %v3321_v63  ;;  %v722_v7 = vpop.permute.xlu0 %721 }
  0xb7   : > { %v631_v1 = vadd.f32 %v628_v2, %v621_v11  ;;  %v669_v2 = vmul.f32 %v3143_v18, %v3198_v36  ;;  %v695_v18 = vmul.f32 %v3207_v40, %v3238_v53 }
  0xb8   : > { %v640_v30 = vadd.f32 %v637_v4, %v630_v13  ;;  %v639_v8 = vadd.f32 %v636_v6, %v629_v62 }
  0xb9   : > { %v641_v41 = vadd.f32 %v638_v28, %v631_v1 }
  0xba   : > { %v672_v42 = vpop.permute.xlu1 %671  ;;  %647 = vrot.lane.b32.xlu0 %v640_v30, %s3001_s11  ;;  %645 = vrot.lane.b32.xlu1 %v639_v8, %s3001_s11  ;;  %v694_v30 = vmul.f32 %v3207_v40, %v3234_v52 }
  0xbb   : > { %v674_v45 = vmul.f32 %v672_v42, %v3184_v32  ;;  %v675_v10 = vmul.f32 %v672_v42, %v3194_v35  ;;  %v676_v11 = vmul.f32 %v672_v42, %v3202_v37  ;;  %v696_v42 = vmul.f32 %v3207_v40, %v3248_v61 }
  0xbd   : > { %v677_v29 = vadd.f32 %v674_v45, %v667_v33  ;;  %v678_v62 = vadd.f32 %v675_v10, %v668_v55  ;;  %v679_v28 = vadd.f32 %v676_v11, %v669_v2 }
  0xbe   : > { %649 = vrot.lane.b32.xlu1 %v641_v41, %s3001_s11 }
  0xbf   : > { %v682_v57 = vpop.permute.xlu1 %681 }
  0xc0   : > { %v684_v6 = vmul.f32 %v682_v57, %v3220_v48  ;;  %v685_v4 = vmul.f32 %v682_v57, %v3224_v49  ;;  %v686_v13 = vmul.f32 %v682_v57, %v3228_v50 }
  0xc2   : > { %v687_v8 = vadd.f32 %v684_v6, %v677_v29  ;;  %v688_v1 = vadd.f32 %v685_v4, %v678_v62  ;;  %v689_v33 = vadd.f32 %v686_v13, %v679_v28  ;;  %v724_v29 = vmul.f32 %v722_v7, %v3295_v5 }
  0xc3   : > { %v725_v62 = vmul.f32 %v722_v7, %v3302_v39 }
  0xc4   : > { %v702_v45 = vpop.permute.xlu1 %701  ;;  %v697_v55 = vadd.f32 %v694_v30, %v687_v8  ;;  %v698_v41 = vadd.f32 %v695_v18, %v688_v1  ;;  %v699_v44 = vadd.f32 %v696_v42, %v689_v33  ;;  %v726_v1 = vmul.f32 %v722_v7, %v3306_v23 }
  0xc5   : > { %v704_v10 = vmul.f32 %v702_v45, %v3259_v20  ;;  %v705_v57 = vmul.f32 %v702_v45, %v3264_v43  ;;  %v706_v2 = vmul.f32 %v702_v45, %v3271_v46 }
  0xc7   : > { %v707_v11 = vadd.f32 %v704_v10, %v697_v55  ;;  %v708_v6 = vadd.f32 %v705_v57, %v698_v41  ;;  %v709_v30 = vadd.f32 %v706_v2, %v699_v44  ;;  %v765_v2 = vmul.f32 %v3152_v21, %v3180_v31 }
  0xc9   : > { %v712_v38 = vpop.permute.xlu1 %711 }
  0xca   : > { %v714_v40 = vmul.f32 %v712_v38, %v3276_v56  ;;  %v715_v4 = vmul.f32 %v712_v38, %v3283_v59  ;;  %v716_v13 = vmul.f32 %v712_v38, %v3287_v60 }
  0xcc   : > { %v717_v28 = vadd.f32 %v714_v40, %v707_v11  ;;  %v718_v18 = vadd.f32 %v715_v4, %v708_v6  ;;  %v719_v8 = vadd.f32 %v716_v13, %v709_v30 }
  0xce   : > { %v732_v42 = vpop.permute.xlu1 %731  ;;  %v728_v33 = vadd.f32 %v725_v62, %v718_v18  ;;  %v727_v45 = vadd.f32 %v724_v29, %v717_v28  ;;  %v729_v54 = vadd.f32 %v726_v1, %v719_v8  ;;  %v766_v29 = vmul.f32 %v3152_v21, %v3190_v34 }
  0xcf   : > { %v734_v55 = vmul.f32 %v732_v42, %v3310_v47  ;;  %v735_v10 = vmul.f32 %v732_v42, %v3315_v9  ;;  %v736_v41 = vmul.f32 %v732_v42, %v3321_v63  ;;  %v767_v62 = vmul.f32 %v3152_v21, %v3198_v36 }
  0xd0   : > { %v793_v28 = vmul.f32 %v3230_v51, %v3238_v53  ;;  %v794_v21 = vmul.f32 %v3230_v51, %v3248_v61 }
  0xd1   : > { %v738_v57 = vadd.f32 %v735_v10, %v728_v33  ;;  %v737_v3 = vadd.f32 %v734_v55, %v727_v45  ;;  %v739_v7 = vadd.f32 %v736_v41, %v729_v54  ;;  %v820_v41 = vpop.permute.xlu0 %819 }
  0xd3   : > { %v770_v26 = vpop.permute.xlu1 %769  ;;  %745 = vrot.lane.b32.xlu0 %v738_v57, %s3002_s12  ;;  %743 = vrot.lane.b32.xlu1 %v737_v3, %s3002_s12 }
  0xd4   : > { %v772_v38 = vmul.f32 %v770_v26, %v3184_v32  ;;  %v773_v44 = vmul.f32 %v770_v26, %v3194_v35  ;;  %v774_v11 = vmul.f32 %v770_v26, %v3202_v37  ;;  %v792_v26 = vmul.f32 %v3230_v51, %v3234_v52 }
  0xd6   : > { %v775_v6 = vadd.f32 %v772_v38, %v765_v2  ;;  %v776_v40 = vadd.f32 %v773_v44, %v766_v29  ;;  %v777_v30 = vadd.f32 %v774_v11, %v767_v62  ;;  %v822_v2 = vmul.f32 %v820_v41, %v3295_v5 }
  0xd7   : > { %747 = vrot.lane.b32.xlu1 %v739_v7, %s3002_s12  ;;  %v823_v11 = vmul.f32 %v820_v41, %v3302_v39 }
  0xd8   : > { %v780_v3 = vpop.permute.xlu1 %779 }
  0xd9   : > { %v782_v4 = vmul.f32 %v780_v3, %v3220_v48  ;;  %v783_v54 = vmul.f32 %v780_v3, %v3224_v49  ;;  %v784_v13 = vmul.f32 %v780_v3, %v3228_v50 }
  0xdb   : > { %v785_v18 = vadd.f32 %v782_v4, %v775_v6  ;;  %v786_v8 = vadd.f32 %v783_v54, %v776_v40  ;;  %v787_v1 = vadd.f32 %v784_v13, %v777_v30  ;;  %v824_v13 = vmul.f32 %v820_v41, %v3306_v23 }
  0xdd   : > { %v800_v42 = vpop.permute.xlu1 %799  ;;  %v795_v33 = vadd.f32 %v792_v26, %v785_v18  ;;  %v796_v55 = vadd.f32 %v793_v28, %v786_v8  ;;  %v797_v57 = vadd.f32 %v794_v21, %v787_v1 }
  0xde   : > { %v802_v45 = vmul.f32 %v800_v42, %v3259_v20  ;;  %v803_v10 = vmul.f32 %v800_v42, %v3264_v43  ;;  %v804_v38 = vmul.f32 %v800_v42, %v3271_v46 }
  0xe0   : > { %v805_v44 = vadd.f32 %v802_v45, %v795_v33  ;;  %v806_v29 = vadd.f32 %v803_v10, %v796_v55  ;;  %v807_v3 = vadd.f32 %v804_v38, %v797_v57  ;;  %v863_v57 = vmul.f32 %v3160_v24, %v3180_v31 }
  0xe2   : > { %v810_v7 = vpop.permute.xlu1 %809 }
  0xe3   : > { %v812_v51 = vmul.f32 %v810_v7, %v3276_v56  ;;  %v813_v62 = vmul.f32 %v810_v7, %v3283_v59  ;;  %v814_v6 = vmul.f32 %v810_v7, %v3287_v60  ;;  %v865_v7 = vmul.f32 %v3160_v24, %v3198_v36 }
  0xe5   : > { %v815_v40 = vadd.f32 %v812_v51, %v805_v44  ;;  %v816_v4 = vadd.f32 %v813_v62, %v806_v29  ;;  %v817_v54 = vadd.f32 %v814_v6, %v807_v3  ;;  %v864_v44 = vmul.f32 %v3160_v24, %v3190_v34 }
  0xe7   : > { %v830_v26 = vpop.permute.xlu1 %829  ;;  %v826_v30 = vadd.f32 %v823_v11, %v816_v4  ;;  %v825_v28 = vadd.f32 %v822_v2, %v815_v40  ;;  %v827_v33 = vadd.f32 %v824_v13, %v817_v54  ;;  %v890_v54 = vmul.f32 %v3255_v16, %v3234_v52 }
  0xe8   : > { %v832_v18 = vmul.f32 %v830_v26, %v3310_v47  ;;  %v833_v8 = vmul.f32 %v830_v26, %v3315_v9  ;;  %v834_v21 = vmul.f32 %v830_v26, %v3321_v63  ;;  %v891_v26 = vmul.f32 %v3255_v16, %v3238_v53 }
  0xea   : > { %v836_v1 = vadd.f32 %v833_v8, %v826_v30  ;;  %v835_v42 = vadd.f32 %v832_v18, %v825_v28  ;;  %v837_v41 = vadd.f32 %v834_v21, %v827_v33  ;;  %v892_v30 = vmul.f32 %v3255_v16, %v3248_v61  ;;  %v918_v33 = vpop.permute.xlu0 %917 }
  0xec   : > { %v868_v45 = vpop.permute.xlu1 %867  ;;  %843 = vrot.lane.b32.xlu0 %v836_v1, %s3003_s15  ;;  %841 = vrot.lane.b32.xlu1 %v835_v42, %s3003_s15 }
  0xed   : > { %v870_v55 = vmul.f32 %v868_v45, %v3184_v32  ;;  %v871_v10 = vmul.f32 %v868_v45, %v3194_v35  ;;  %v872_v38 = vmul.f32 %v868_v45, %v3202_v37 }
  0xef   : > { %v873_v2 = vadd.f32 %v870_v55, %v863_v57  ;;  %v874_v29 = vadd.f32 %v871_v10, %v864_v44  ;;  %v875_v3 = vadd.f32 %v872_v38, %v865_v7  ;;  %v920_v44 = vmul.f32 %v918_v33, %v3295_v5 }
  0xf0   : > { %845 = vrot.lane.b32.xlu1 %v837_v41, %s3003_s15  ;;  %v921_v7 = vmul.f32 %v918_v33, %v3302_v39 }
  0xf1   : > { %v878_v11 = vpop.permute.xlu1 %877 }
  0xf2   : > { %v880_v51 = vmul.f32 %v878_v11, %v3220_v48  ;;  %v881_v62 = vmul.f32 %v878_v11, %v3224_v49  ;;  %v882_v6 = vmul.f32 %v878_v11, %v3228_v50 }
  0xf4   : > { %v883_v40 = vadd.f32 %v880_v51, %v873_v2  ;;  %v884_v4 = vadd.f32 %v881_v62, %v874_v29  ;;  %v885_v13 = vadd.f32 %v882_v6, %v875_v3  ;;  %v922_v3 = vmul.f32 %v918_v33, %v3306_v23 }
  0xf6   : > { %v898_v24 = vpop.permute.xlu1 %897  ;;  %v893_v28 = vadd.f32 %v890_v54, %v883_v40  ;;  %v894_v8 = vadd.f32 %v891_v26, %v884_v4  ;;  %v895_v1 = vadd.f32 %v892_v30, %v885_v13 }
  0xf7   : > { %v900_v18 = vmul.f32 %v898_v24, %v3259_v20  ;;  %v901_v21 = vmul.f32 %v898_v24, %v3264_v43  ;;  %v902_v42 = vmul.f32 %v898_v24, %v3271_v46 }
  0xf9   : > { %v903_v45 = vadd.f32 %v900_v18, %v893_v28  ;;  %v904_v10 = vadd.f32 %v901_v21, %v894_v8  ;;  %v905_v16 = vadd.f32 %v902_v42, %v895_v1  ;;  %v4791_v28 = vmov 0  }
  0xfa   : > { %v4792_v18 = vmov 7   ;;  %v4793_v8 = vmov 1  }
  0xfb   : > { %v908_v55 = vpop.permute.xlu1 %907 }
  0xfc   : > { %v910_v41 = vmul.f32 %v908_v55, %v3276_v56  ;;  %v911_v57 = vmul.f32 %v908_v55, %v3283_v59  ;;  %v912_v38 = vmul.f32 %v908_v55, %v3287_v60 }
  0xfe   : > { %v913_v2 = vadd.f32 %v910_v41, %v903_v45  ;;  %v914_v11 = vadd.f32 %v911_v57, %v904_v10  ;;  %v915_v29 = vadd.f32 %v912_v38, %v905_v16 }
 0x100   : > { %v928_v51 = vpop.permute.xlu1 %927  ;;  %v924_v62 = vadd.f32 %v921_v7, %v914_v11  ;;  %v923_v6 = vadd.f32 %v920_v44, %v913_v2  ;;  %v925_v24 = vadd.f32 %v922_v3, %v915_v29 }
 0x101   : > { %v930_v40 = vmul.f32 %v928_v51, %v3310_v47  ;;  %v931_v4 = vmul.f32 %v928_v51, %v3315_v9  ;;  %v932_v54 = vmul.f32 %v928_v51, %v3321_v63 }
 0x103   : > { %v934_v13 = vadd.f32 %v931_v4, %v924_v62  ;;  %v933_v26 = vadd.f32 %v930_v40, %v923_v6  ;;  %v935_v30 = vadd.f32 %v932_v54, %v925_v24 }
 0x105   : > { %941 = vrot.lane.b32.xlu0 %v934_v13, %s3004_s16  ;;  %939 = vrot.lane.b32.xlu1 %v933_v26, %s3004_s16  ;;  %v966_v21 = vpop.permute.xlu1 %965 }
 0x106   : > { %v968_v29 = vmul.f32 %v966_v21, %v3184_v32  ;;  %v969_v51 = vmul.f32 %v966_v21, %v3194_v35  ;;  %v970_v6 = vmul.f32 %v966_v21, %v3202_v37  ;;  %v989_v21 = vmul.f32 %v3279_v58, %v3238_v53 }
 0x109   : > { %1015 = vperm.xlu0 %2888, %v3110_v12   ;;  %943 = vrot.lane.b32.xlu1 %v935_v30, %s3004_s16 }
 0x10a   : > { %v976_v1 = vpop.permute.xlu1 %975 }
 0x10b   : > { %v978_v13 = vmul.f32 %v976_v1, %v3220_v48  ;;  %v979_v26 = vmul.f32 %v976_v1, %v3224_v49  ;;  %v980_v24 = vmul.f32 %v976_v1, %v3228_v50 }
 0x10d   : > { %2891 = vset.pattern.permute.xlu0 %v4791_v28  ;;  %1005 = vperm.xlu1 %2890, %v3110_v12  }
 0x10e   : > { %958 = vperm.xlu0 %2891, %v3110_v12  }
 0x10f   : > { %v996_v42 = vpop.permute.xlu1 %995 }
 0x110   : > { %v1000_v1 = vmul.f32 %v996_v42, %v3271_v46 }
 0x111   : > { %2892 = vset.pattern.permute.xlu1 %v4792_v18 }
 0x112   : > { %1025 = vperm.xlu1 %2892, %v3110_v12  }
 0x116   : > { %2893 = vset.pattern.permute.xlu1 %v4793_v8 }
 0x12c   : > { %v3435_v33 = vpop.permute.xlu1 %645  ;;  %v3443_v41 = vpop.permute.xlu0 %647 }
 0x12d   : > { %4794 = vst [vmem:[#allocation25_spill] sm:$0xff] %v3435_v33  ;;  %4798 = vst [vmem:[#allocation29_spill] sm:$0xff] %v3443_v41 }
 0x130   : > { %v3437_v45 = vpop.permute.xlu1 %649 }
 0x131   : > { %4795 = vst [vmem:[#allocation26_spill] sm:$0xff] %v3437_v45 }
 0x145   : > { %v3439_v55 = vpop.permute.xlu1 %743  ;;  %v3447_v38 = vpop.permute.xlu0 %745 }
 0x146   : > { %4796 = vst [vmem:[#allocation27_spill] sm:$0xff] %v3439_v55  ;;  %4800 = vst [vmem:[#allocation31_spill] sm:$0xff] %v3447_v38 }
 0x149   : > { %v3441_v10 = vpop.permute.xlu1 %747 }
 0x14a   : > { %4797 = vst [vmem:[#allocation28_spill] sm:$0xff] %v3441_v10  ;;  %v999_v10 = vmul.f32 %v996_v42, %v3264_v43 }
 0x15e   : > { %v3445_v57 = vpop.permute.xlu1 %841  ;;  %v3449_v12 = vpop.permute.xlu0 %843 }
 0x15f   : > { %4799 = vst [vmem:[#allocation30_spill] sm:$0xff] %v3445_v57  ;;  %4801 = vst [vmem:[#allocation32_spill] sm:$0xff] %v3449_v12 }
 0x162   : > { %v3451_v16 = vpop.permute.xlu1 %845 }
 0x163   : > { %4802 = vst [vmem:[#allocation33_spill] sm:$0xff] %v3451_v16 }
 0x177   : > { %v3453_v44 = vpop.permute.xlu0 %941  ;;  %v3455_v7 = vpop.permute.xlu1 %939 }
 0x178   : > { %4803 = vst [vmem:[#allocation34_spill] sm:$0xff] %v3453_v44  ;;  %4804 = vst [vmem:[#allocation35_spill] sm:$0xff] %v3455_v7  ;;  %v988_v7 = vmul.f32 %v3279_v58, %v3234_v52  ;;  %v990_v44 = vmul.f32 %v3279_v58, %v3248_v61 }
 0x17b   : > { %v3457_v11 = vpop.permute.xlu1 %943 }
 0x17c   : > { %4805 = vst [vmem:[#allocation36_spill] sm:$0xff] %v3457_v11 }
 0x184   : > { %v1016_v2 = vpop.permute.xlu0 %1015 }
 0x188   : > { %v1006_v54 = vpop.permute.xlu1 %1005 }
 0x189   : > { %v959_v62 = vpop.permute.xlu0 %958 }
 0x18a   : > { %v961_v3 = vmul.f32 %v959_v62, %v3180_v31  ;;  %v962_v40 = vmul.f32 %v959_v62, %v3190_v34  ;;  %v963_v4 = vmul.f32 %v959_v62, %v3198_v36  ;;  %v998_v62 = vmul.f32 %v996_v42, %v3259_v20 }
 0x18c   : > { %v971_v30 = vadd.f32 %v968_v29, %v961_v3  ;;  %v972_v25 = vadd.f32 %v969_v51, %v962_v40  ;;  %v973_v11 = vadd.f32 %v970_v6, %v963_v4  ;;  %v1008_v29 = vmul.f32 %v1006_v54, %v3276_v56 }
 0x18d   : > { %v1009_v51 = vmul.f32 %v1006_v54, %v3283_v59  ;;  %v1010_v4 = vmul.f32 %v1006_v54, %v3287_v60  ;;  %v1026_v55 = vpop.permute.xlu1 %1025 }
 0x18e   : > { %v981_v16 = vadd.f32 %v978_v13, %v971_v30  ;;  %v982_v57 = vadd.f32 %v979_v26, %v972_v25  ;;  %v983_v12 = vadd.f32 %v980_v24, %v973_v11  ;;  %v1018_v25 = vmul.f32 %v1016_v2, %v3295_v5 }
 0x18f   : > { %v1019_v11 = vmul.f32 %v1016_v2, %v3302_v39  ;;  %v1028_v13 = vmul.f32 %v1026_v55, %v3310_v47  ;;  %v1029_v30 = vmul.f32 %v1026_v55, %v3315_v9 }
 0x190   : > { %v991_v6 = vadd.f32 %v988_v7, %v981_v16  ;;  %v992_v3 = vadd.f32 %v989_v21, %v982_v57  ;;  %v993_v40 = vadd.f32 %v990_v44, %v983_v12  ;;  %v1020_v57 = vmul.f32 %v1016_v2, %v3306_v23  ;;  %v2812_v21 = vld [vmem:[%s4698_s3 + $0x10] sm:$0x3] }
 0x191   : > { %v1030_v44 = vmul.f32 %v1026_v55, %v3321_v63  ;;  %v2811_v55 = vld [vmem:[%s4698_s3 + $0xe] sm:$0x3]  ;;  %v4806_v2 = vmov 2  }
 0x192   : > { %v1001_v58 = vadd.f32 %v998_v62, %v991_v6  ;;  %v1002_v38 = vadd.f32 %v999_v10, %v992_v3  ;;  %v1003_v45 = vadd.f32 %v1000_v1, %v993_v40  ;;  %v4807_v62 = vmov 3  }
 0x193   : > { %v4808_v1 = vmov 4  }
 0x194   : > { %v1011_v42 = vadd.f32 %v1008_v29, %v1001_v58  ;;  %v1012_v26 = vadd.f32 %v1009_v51, %v1002_v38  ;;  %v1013_v24 = vadd.f32 %v1010_v4, %v1003_v45  ;;  %v2810_v45 = vld [vmem:[%s4698_s3 + $0xc] sm:$0x3]  ;;  %v4809_v29 = vmov 5  }
 0x195   : > { %v4810_v51 = vmov 6  }
 0x196   : > { %v1022_v12 = vadd.f32 %v1019_v11, %v1012_v26  ;;  %v1021_v16 = vadd.f32 %v1018_v25, %v1011_v42  ;;  %v1023_v54 = vadd.f32 %v1020_v57, %v1013_v24 }
 0x198   : > { %v1032_v7 = vadd.f32 %v1029_v30, %v1022_v12  ;;  %v1031_v10 = vadd.f32 %v1028_v13, %v1021_v16  ;;  %v1033_v38 = vadd.f32 %v1030_v44, %v1023_v54 }
 0x19a   : > { %1039 = vrot.lane.b32.xlu0 %v1032_v7, %s3005_s17  ;;  %1037 = vrot.lane.b32.xlu1 %v1031_v10, %s3005_s17 }
 0x19e   : > { %1056 = vperm.xlu0 %2891, %v2810_v45   ;;  %1041 = vrot.lane.b32.xlu1 %v1033_v38, %s3005_s17 }
 0x1a2   : > { %1154 = vperm.xlu0 %2891, %v2811_v55   ;;  %1063 = vperm.xlu1 %2893, %v2810_v45  }
 0x1a6   : > { %2895 = vset.pattern.permute.xlu0 %v4793_v8  ;;  %2894 = vset.pattern.permute.xlu1 %v4806_v2 }
 0x1a7   : > { %409 = vperm.xlu0 %2895, %v3077_v0   ;;  %1073 = vperm.xlu1 %2894, %v2810_v45  }
 0x1ab   : > { %1259 = vperm.xlu0 %2895, %v2812_v21   ;;  %2896 = vset.pattern.permute.xlu1 %v4793_v8 }
 0x1ac   : > { %1161 = vperm.xlu1 %2896, %v2811_v55  }
 0x1af   : > { %2901 = vset.pattern.permute.xlu0 %v4806_v2 }
 0x1b0   : > { %1269 = vperm.xlu0 %2901, %v2812_v21   ;;  %2897 = vset.pattern.permute.xlu1 %v4806_v2 }
 0x1b1   : > { %1171 = vperm.xlu1 %2897, %v2811_v55  }
 0x1b4   : > { %2902 = vset.pattern.permute.xlu0 %v4807_v62 }
 0x1b5   : > { %1083 = vperm.xlu0 %2902, %v2810_v45   ;;  %2898 = vset.pattern.permute.xlu1 %v4791_v28 }
 0x1b6   : > { %1252 = vperm.xlu1 %2898, %v2812_v21  }
 0x1b9   : > { %1279 = vperm.xlu0 %2902, %v2812_v21  }
 0x1ba   : > { %2899 = vset.pattern.permute.xlu1 %v4808_v1 }
 0x1bb   : > { %1093 = vperm.xlu1 %2899, %v2810_v45  }
 0x1bd   : > { %2907 = vset.pattern.permute.xlu0 %v4808_v1 }
 0x1be   : > { %1289 = vperm.xlu0 %2907, %v2812_v21  }
 0x1bf   : > { %2900 = vset.pattern.permute.xlu1 %v4807_v62 }
 0x1c0   : > { %1181 = vperm.xlu1 %2900, %v2811_v55  }
 0x1c2   : > { %2908 = vset.pattern.permute.xlu0 %v4809_v29 }
 0x1c3   : > { %497 = vperm.xlu0 %2908, %v3077_v0  }
 0x1c4   : > { %2903 = vset.pattern.permute.xlu1 %v4809_v29 }
 0x1c5   : > { %1103 = vperm.xlu1 %2903, %v2810_v45  }
 0x1c7   : > { %1299 = vperm.xlu0 %2908, %v2812_v21  }
 0x1c9   : > { %2904 = vset.pattern.permute.xlu1 %v4808_v1 }
 0x1ca   : > { %1191 = vperm.xlu1 %2904, %v2811_v55  }
 0x1cb   : > { %2913 = vset.pattern.permute.xlu0 %v4792_v18 }
 0x1cc   : > { %1319 = vperm.xlu0 %2913, %v2812_v21  }
 0x1ce   : > { %2905 = vset.pattern.permute.xlu1 %v4810_v51 }
 0x1cf   : > { %1113 = vperm.xlu1 %2905, %v2810_v45  }
 0x1d0   : > { %2915 = vset.pattern.permute.xlu0 %v4793_v8 }
 0x1d3   : > { %2906 = vset.pattern.permute.xlu1 %v4809_v29 }
 0x1d4   : > { %1201 = vperm.xlu1 %2906, %v2811_v55  }
 0x1d8   : > { %2909 = vset.pattern.permute.xlu1 %v4792_v18 }
 0x1d9   : > { %1123 = vperm.xlu1 %2909, %v2810_v45  }
 0x1dd   : > { %2910 = vset.pattern.permute.xlu1 %v4810_v51 }
 0x1de   : > { %1211 = vperm.xlu1 %2910, %v2811_v55  }
 0x1e2   : > { %2911 = vset.pattern.permute.xlu1 %v4792_v18 }
 0x1e3   : > { %1221 = vperm.xlu1 %2911, %v2811_v55  }
 0x1e7   : > { %2912 = vset.pattern.permute.xlu1 %v4810_v51 }
 0x1e8   : > { %1309 = vperm.xlu1 %2912, %v2812_v21  }
 0x1ec   : > { %2914 = vset.pattern.permute.xlu1 %v4791_v28 }
 0x20c   : > { %v3522_v0 = vpop.permute.xlu1 %1037  ;;  %v3526_v4 = vpop.permute.xlu0 %1039 }
 0x20d   : > { %4811 = vst [vmem:[#allocation37_spill] sm:$0xff] %v3522_v0  ;;  %4813 = vst [vmem:[#allocation39_spill] sm:$0xff] %v3526_v4 }
 0x210   : > { %v3524_v6 = vpop.permute.xlu1 %1041 }
 0x211   : > { %4812 = vst [vmem:[#allocation38_spill] sm:$0xff] %v3524_v6 }
 0x219   : > { %v1057_v58 = vpop.permute.xlu0 %1056 }
 0x21a   : > { %v1059_v54 = vmul.f32 %v1057_v58, %v3180_v31  ;;  %v1060_v45 = vmul.f32 %v1057_v58, %v3190_v34  ;;  %v1061_v38 = vmul.f32 %v1057_v58, %v3198_v36 }
 0x21d   : > { %v1064_v3 = vpop.permute.xlu1 %1063  ;;  %v1155_v13 = vpop.permute.xlu0 %1154 }
 0x21e   : > { %v1066_v16 = vmul.f32 %v1064_v3, %v3184_v32  ;;  %v1067_v44 = vmul.f32 %v1064_v3, %v3194_v35  ;;  %v1068_v7 = vmul.f32 %v1064_v3, %v3202_v37  ;;  %v1157_v41 = vmul.f32 %v1155_v13, %v3180_v31 }
 0x21f   : > { %v1158_v58 = vmul.f32 %v1155_v13, %v3190_v34  ;;  %v1159_v27 = vmul.f32 %v1155_v13, %v3198_v36 }
 0x220   : > { %v1069_v51 = vadd.f32 %v1066_v16, %v1059_v54  ;;  %v1070_v0 = vadd.f32 %v1067_v44, %v1060_v45  ;;  %v1071_v3 = vadd.f32 %v1068_v7, %v1061_v38 }
 0x222   : > { %v1074_v40 = vpop.permute.xlu1 %1073  ;;  %v3528_v18 = vpop.permute.xlu0 %409 }
 0x223   : > { %v1076_v55 = vmul.f32 %v1074_v40, %v3220_v48  ;;  %v1077_v21 = vmul.f32 %v1074_v40, %v3224_v49  ;;  %v1078_v1 = vmul.f32 %v1074_v40, %v3228_v50 }
 0x225   : > { %v1079_v22 = vadd.f32 %v1076_v55, %v1069_v51  ;;  %v1080_v19 = vadd.f32 %v1077_v21, %v1070_v0  ;;  %v1081_v40 = vadd.f32 %v1078_v1, %v1071_v3 }
 0x226   : > { %v1260_v24 = vpop.permute.xlu0 %1259 }
 0x227   : > { %v1162_v25 = vpop.permute.xlu1 %1161  ;;  %v1262_v17 = vmul.f32 %v1260_v24, %v3184_v32  ;;  %v1263_v44 = vmul.f32 %v1260_v24, %v3194_v35  ;;  %v1264_v7 = vmul.f32 %v1260_v24, %v3202_v37 }
 0x228   : > { %v1164_v6 = vmul.f32 %v1162_v25, %v3184_v32  ;;  %v1165_v4 = vmul.f32 %v1162_v25, %v3194_v35  ;;  %v1166_v33 = vmul.f32 %v1162_v25, %v3202_v37 }
 0x22a   : > { %v1167_v54 = vadd.f32 %v1164_v6, %v1157_v41  ;;  %v1168_v38 = vadd.f32 %v1165_v4, %v1158_v58  ;;  %v1169_v14 = vadd.f32 %v1166_v33, %v1159_v27 }
 0x22b   : > { %v1270_v57 = vpop.permute.xlu0 %1269 }
 0x22c   : > { %v1172_v11 = vpop.permute.xlu1 %1171  ;;  %v1272_v0 = vmul.f32 %v1270_v57, %v3220_v48  ;;  %v1273_v6 = vmul.f32 %v1270_v57, %v3224_v49  ;;  %v1274_v24 = vmul.f32 %v1270_v57, %v3228_v50 }
 0x22d   : > { %v1174_v45 = vmul.f32 %v1172_v11, %v3220_v48  ;;  %v1175_v55 = vmul.f32 %v1172_v11, %v3224_v49  ;;  %v1176_v21 = vmul.f32 %v1172_v11, %v3228_v50 }
 0x22f   : > { %v1177_v33 = vadd.f32 %v1174_v45, %v1167_v54  ;;  %v1178_v49 = vadd.f32 %v1175_v55, %v1168_v38  ;;  %v1179_v37 = vadd.f32 %v1176_v21, %v1169_v14 }
 0x230   : > { %v1084_v10 = vpop.permute.xlu0 %1083 }
 0x231   : > { %v1253_v42 = vpop.permute.xlu1 %1252  ;;  %v1086_v15 = vmul.f32 %v1084_v10, %v3234_v52  ;;  %v1088_v13 = vmul.f32 %v1084_v10, %v3248_v61  ;;  %v1087_v41 = vmul.f32 %v1084_v10, %v3238_v53 }
 0x232   : > { %v1255_v4 = vmul.f32 %v1253_v42, %v3180_v31  ;;  %v1256_v51 = vmul.f32 %v1253_v42, %v3190_v34  ;;  %v1257_v3 = vmul.f32 %v1253_v42, %v3198_v36 }
 0x233   : > { %v1089_v58 = vadd.f32 %v1086_v15, %v1079_v22  ;;  %v1091_v48 = vadd.f32 %v1088_v13, %v1081_v40  ;;  %v1090_v35 = vadd.f32 %v1087_v41, %v1080_v19 }
 0x234   : > { %v1280_v16 = vpop.permute.xlu0 %1279  ;;  %v1265_v22 = vadd.f32 %v1262_v17, %v1255_v4  ;;  %v1266_v42 = vadd.f32 %v1263_v44, %v1256_v51  ;;  %v1267_v40 = vadd.f32 %v1264_v7, %v1257_v3 }
 0x235   : > { %v1282_v36 = vmul.f32 %v1280_v16, %v3234_v52  ;;  %v1283_v38 = vmul.f32 %v1280_v16, %v3238_v53 }
 0x236   : > { %v1094_v26 = vpop.permute.xlu1 %1093 }
 0x237   : > { %v1096_v1 = vmul.f32 %v1094_v26, %v3259_v20  ;;  %v1098_v27 = vmul.f32 %v1094_v26, %v3271_v46  ;;  %v1097_v54 = vmul.f32 %v1094_v26, %v3264_v43 }
 0x239   : > { %v1290_v11 = vpop.permute.xlu0 %1289  ;;  %v1099_v45 = vadd.f32 %v1096_v1, %v1089_v58  ;;  %v1101_v31 = vadd.f32 %v1098_v27, %v1091_v48  ;;  %v1100_v55 = vadd.f32 %v1097_v54, %v1090_v35  ;;  %v1275_v27 = vadd.f32 %v1272_v0, %v1265_v22 }
 0x23a   : > { %v1277_v22 = vadd.f32 %v1274_v24, %v1267_v40  ;;  %v1294_v24 = vmul.f32 %v1290_v11, %v3271_v46 }
 0x23b   : > { %v3530_v30 = vpop.permute.xlu1 %1181 }
 0x23c   : > { %v1184_v48 = vmul.f32 %v3530_v30, %v3234_v52  ;;  %v1185_v26 = vmul.f32 %v3530_v30, %v3238_v53 }
 0x23e   : > { %v3584_v7 = vpop.permute.xlu0 %497  ;;  %v1188_v54 = vadd.f32 %v1185_v26, %v1178_v49  ;;  %v1293_v26 = vmul.f32 %v1290_v11, %v3264_v43 }
 0x240   : > { %v3532_v12 = vpop.permute.xlu1 %1103 }
 0x241   : > { %v1106_v10 = vmul.f32 %v3532_v12, %v3276_v56  ;;  %v1108_v57 = vmul.f32 %v3532_v12, %v3287_v60  ;;  %v1107_v13 = vmul.f32 %v3532_v12, %v3283_v59 }
 0x243   : > { %v1109_v14 = vadd.f32 %v1106_v10, %v1099_v45  ;;  %v1111_v19 = vadd.f32 %v1108_v57, %v1101_v31  ;;  %v1284_v31 = vmul.f32 %v1280_v16, %v3248_v61  ;;  %v1110_v35 = vadd.f32 %v1107_v13, %v1100_v55 }
 0x244   : > { %v1186_v10 = vmul.f32 %v3530_v30, %v3248_v61  ;;  %v1187_v57 = vadd.f32 %v1184_v48, %v1177_v33  ;;  %v1285_v13 = vadd.f32 %v1282_v36, %v1275_v27  ;;  %v1300_v30 = vpop.permute.xlu0 %1299  ;;  %v1292_v48 = vmul.f32 %v1290_v11, %v3259_v20 }
 0x245   : > { %v3543_v29 = vpop.permute.xlu1 %1191 }
 0x246   : > { %v1194_v4 = vmul.f32 %v3543_v29, %v3259_v20  ;;  %v1195_v51 = vmul.f32 %v3543_v29, %v3264_v43 }
 0x248   : > { %v1198_v33 = vadd.f32 %v1195_v51, %v1188_v54  ;;  %v1320_v51 = vpop.permute.xlu0 %1319 }
 0x24a   : > { %v1114_v25 = vpop.permute.xlu1 %1113 }
 0x24b   : > { %v1116_v34 = vmul.f32 %v1114_v25, %v3295_v5  ;;  %v1118_v15 = vmul.f32 %v1114_v25, %v3306_v23  ;;  %v1117_v17 = vmul.f32 %v1114_v25, %v3302_v39 }
 0x24d   : > { %v1119_v21 = vadd.f32 %v1116_v34, %v1109_v14  ;;  %v1121_v1 = vadd.f32 %v1118_v15, %v1111_v19  ;;  %v1276_v34 = vadd.f32 %v1273_v6, %v1266_v42  ;;  %v1120_v0 = vadd.f32 %v1117_v17, %v1110_v35 }
 0x24e   : > { %v1196_v6 = vmul.f32 %v3543_v29, %v3271_v46  ;;  %v1197_v42 = vadd.f32 %v1194_v4, %v1187_v57  ;;  %v1189_v17 = vadd.f32 %v1186_v10, %v1179_v37  ;;  %v1287_v35 = vadd.f32 %v1284_v31, %v1277_v22 }
 0x24f   : > { %v1202_v50 = vpop.permute.xlu1 %1201  ;;  %v1286_v55 = vadd.f32 %v1283_v38, %v1276_v34  ;;  %v1304_v57 = vmul.f32 %v1300_v30, %v3287_v60 }
 0x250   : > { %v1204_v16 = vmul.f32 %v1202_v50, %v3276_v56  ;;  %v1205_v45 = vmul.f32 %v1202_v50, %v3283_v59  ;;  %v1206_v36 = vmul.f32 %v1202_v50, %v3287_v60  ;;  %v1295_v50 = vadd.f32 %v1292_v48, %v1285_v13 }
 0x251   : > { %v1296_v4 = vadd.f32 %v1293_v26, %v1286_v55  ;;  %v1297_v10 = vadd.f32 %v1294_v24, %v1287_v35  ;;  %v1392_v24 = vld [vmem:[%s4700_s5] sm:$0xf]  ;;  %v4816_v35 = vld [vmem:[#allocation4_spill] sm:$0xff] }
 0x252   : > { %v1207_v40 = vadd.f32 %v1204_v16, %v1197_v42  ;;  %v1208_v29 = vadd.f32 %v1205_v45, %v1198_v33  ;;  %v1322_v45 = vmul.f32 %v1320_v51, %v3310_v47 }
 0x254   : > { %v1124_v44 = vpop.permute.xlu1 %1123 }
 0x255   : > { %v1126_v12 = vmul.f32 %v1124_v44, %v3310_v47  ;;  %v1128_v41 = vmul.f32 %v1124_v44, %v3321_v63  ;;  %v1127_v25 = vmul.f32 %v1124_v44, %v3315_v9  ;;  %v1302_v44 = vmul.f32 %v1300_v30, %v3276_v56 }
 0x257   : > { %v1131_v3 = vadd.f32 %v1128_v41, %v1121_v1  ;;  %v1129_v58 = vadd.f32 %v1126_v12, %v1119_v21  ;;  %v1130_v19 = vadd.f32 %v1127_v25, %v1120_v0  ;;  %v1303_v21 = vmul.f32 %v1300_v30, %v3283_v59 }
 0x258   : > { %v1199_v12 = vadd.f32 %v1196_v6, %v1189_v17  ;;  %v1305_v54 = vadd.f32 %v1302_v44, %v1295_v50  ;;  %v1323_v6 = vmul.f32 %v1320_v51, %v3315_v9  ;;  %v1307_v30 = vadd.f32 %v1304_v57, %v1297_v10  ;;  %v1349_v17 = vld [vmem:[%s4699_s4] sm:$0xf]  ;;  %v3653_v44 = vld [vmem:[%s4701_s6 + $0x10] sm:$0xf] }
 0x259   : > { %1139 = vrot.lane.b32.xlu0 %v1131_v3, %s3006_s24  ;;  %1135 = vrot.lane.b32.xlu1 %v1129_v58, %s3006_s24  ;;  %v1212_v15 = vpop.permute.xlu1 %1211  ;;  %v1306_v0 = vadd.f32 %v1303_v21, %v1296_v4  ;;  %v2815_v21 = vld [vmem:[%s4701_s6 + $0xc] sm:$0xf] }
 0x25a   : > { %v1214_v49 = vmul.f32 %v1212_v15, %v3295_v5  ;;  %v1215_v14 = vmul.f32 %v1212_v15, %v3302_v39  ;;  %v1216_v38 = vmul.f32 %v1212_v15, %v3306_v23  ;;  %v1209_v25 = vadd.f32 %v1206_v36, %v1199_v12  ;;  %v1439_v36 = vld [vmem:[%s4701_s6] sm:$0xf]  ;;  %v3670_v12 = vld [vmem:[%s4701_s6 + $0x18] sm:$0xf]  ;;  %v4817_v50 = vld [vmem:[#allocation11_spill] sm:$0xff] }
 0x25b   : > { %v405_v4 = vmul.f32 %v4817_v50, %v4816_v35  ;;  %v4820_v57 = vld [vmem:[#allocation3_spill] sm:$0xff] }
 0x25c   : > { %v1217_v1 = vadd.f32 %v1214_v49, %v1207_v40  ;;  %v1218_v11 = vadd.f32 %v1215_v14, %v1208_v29  ;;  %v1219_v16 = vadd.f32 %v1216_v38, %v1209_v25  ;;  %v1324_v14 = vmul.f32 %v1320_v51, %v3321_v63  ;;  %v3641_v40 = vld [vmem:[%s4701_s6 + $0x8] sm:$0xf]  ;;  %v3648_v29 = vld [vmem:[%s4701_s6 + $0x4] sm:$0xf]  ;;  %v3686_v38 = vld [vmem:[%s4701_s6 + $0x14] sm:$0xf] }
 0x25d   : > { %1137 = vrot.lane.b32.xlu1 %v1130_v19, %s3006_s24  ;;  %v4818_v51 = vld [vmem:[#allocation12_spill] sm:$0xff] }
 0x25e   : > { %v1222_v41 = vpop.permute.xlu1 %1221  ;;  %v406_v25 = vmul.f32 %v4818_v51, %v4816_v35 }
 0x25f   : > { %v1224_v27 = vmul.f32 %v1222_v41, %v3310_v47  ;;  %v1225_v37 = vmul.f32 %v1222_v41, %v3315_v9  ;;  %v1226_v3 = vmul.f32 %v1222_v41, %v3321_v63  ;;  %v424_v41 = vmul.f32 %v3184_v32, %v3528_v18 }
 0x261   : > { %v1228_v58 = vadd.f32 %v1225_v37, %v1218_v11  ;;  %v1227_v34 = vadd.f32 %v1224_v27, %v1217_v1  ;;  %v1229_v42 = vadd.f32 %v1226_v3, %v1219_v16  ;;  %v4814_v1 = vld [vmem:[#allocation13_spill] sm:$0xff]  ;;  %v4815_v37 = vld [vmem:[#allocation15_spill] sm:$0xff]  ;;  %v4819_v3 = vld [vmem:[#allocation14_spill] sm:$0xff] }
 0x262   : > { %v425_v27 = vmul.f32 %v4814_v1, %v3528_v18  ;;  %v426_v11 = vmul.f32 %v4815_v37, %v3528_v18  ;;  %v4822_v18 = vld [vmem:[#allocation19_spill] sm:$0xff] }
 0x263   : > { %1235 = vrot.lane.b32.xlu0 %v1228_v58, %s3007_s25  ;;  %1233 = vrot.lane.b32.xlu1 %v1227_v34, %s3007_s25  ;;  %v1310_v31 = vpop.permute.xlu1 %1309  ;;  %v407_v58 = vmul.f32 %v4819_v3, %v4816_v35  ;;  %v427_v34 = vadd.f32 %v424_v41, %v405_v4  ;;  %v447_v16 = vmul.f32 %v4822_v18, %v4820_v57  ;;  %v4829_v3 = vld [vmem:[#allocation25_spill] sm:$0xff] }
 0x264   : > { %v1312_v15 = vmul.f32 %v1310_v31, %v3295_v5  ;;  %v1313_v22 = vmul.f32 %v1310_v31, %v3302_v39  ;;  %v1314_v13 = vmul.f32 %v1310_v31, %v3306_v23  ;;  %v428_v10 = vadd.f32 %v425_v27, %v406_v25  ;;  %v4823_v31 = vld [vmem:[#allocation20_spill] sm:$0xff]  ;;  %v4828_v25 = vld [vmem:[#allocation29_spill] sm:$0xff] }
 0x265   : > { %v429_v32 = vadd.f32 %v426_v11, %v407_v58  ;;  %v4830_v58 = vld [vmem:[#allocation26_spill] sm:$0xff] }
 0x266   : > { %v1316_v33 = vadd.f32 %v1313_v22, %v1306_v0  ;;  %v1315_v49 = vadd.f32 %v1312_v15, %v1305_v54  ;;  %v1317_v48 = vadd.f32 %v1314_v13, %v1307_v30  ;;  %v4821_v54 = vld [vmem:[#allocation18_spill] sm:$0xff]  ;;  %v450_v22 = vadd.f32 %v447_v16, %v428_v10 }
 0x267   : > { %1237 = vrot.lane.b32.xlu1 %v1229_v42, %s3007_s25  ;;  %v446_v0 = vmul.f32 %v4821_v54, %v4820_v57  ;;  %v4833_v54 = vld [vmem:[#allocation28_spill] sm:$0xff] }
 0x268   : > { %v1325_v19 = vadd.f32 %v1322_v45, %v1315_v49  ;;  %v1326_v55 = vadd.f32 %v1323_v6, %v1316_v33  ;;  %v1327_v26 = vadd.f32 %v1324_v14, %v1317_v48  ;;  %v448_v45 = vmul.f32 %v4823_v31, %v4820_v57  ;;  %v4824_v6 = vld [vmem:[#allocation5_spill] sm:$0xff] }
 0x269   : > { %v449_v15 = vadd.f32 %v446_v0, %v427_v34  ;;  %v468_v42 = vmul.f32 %v3234_v52, %v4824_v6  ;;  %v469_v30 = vmul.f32 %v3238_v53, %v4824_v6  ;;  %v470_v33 = vmul.f32 %v3248_v61, %v4824_v6  ;;  %v4836_v6 = vld [vmem:[#allocation33_spill] sm:$0xff] }
 0x26a   : > { %1331 = vrot.lane.b32.xlu0 %v1325_v19, %s3008_s26  ;;  %v451_v13 = vadd.f32 %v448_v45, %v429_v32  ;;  %v512_v52 = vmul.f32 %v3276_v56, %v3584_v7  ;;  %v513_v53 = vmul.f32 %v3283_v59, %v3584_v7  ;;  %v4826_v56 = vld [vmem:[#allocation7_spill] sm:$0xff]  ;;  %v653_v34 = vsel %vm651_vm0, %v4828_v25, %v4830_v58 }
 0x26b   : > { %1333 = vrot.lane.b32.xlu1 %v1326_v55, %s3008_s26  ;;  %v472_v49 = vadd.f32 %v469_v30, %v450_v22  ;;  %v471_v14 = vadd.f32 %v468_v42, %v449_v15  ;;  %v4825_v55 = vld [vmem:[#allocation6_spill] sm:$0xff]  ;;  %v534_v1 = vmul.f32 %v3295_v5, %v4826_v56  ;;  %v535_v59 = vmul.f32 %v3302_v39, %v4826_v56  ;;  %v4831_v32 = vld [vmem:[#allocation31_spill] sm:$0xff]  ;;  %v4834_v15 = vld [vmem:[#allocation32_spill] sm:$0xff] }
 0x26c   : > { %v473_v19 = vadd.f32 %v470_v33, %v451_v13  ;;  %v490_v48 = vmul.f32 %v3259_v20, %v4825_v55  ;;  %v492_v61 = vmul.f32 %v3271_v46, %v4825_v55  ;;  %v536_v46 = vmul.f32 %v3306_v23, %v4826_v56  ;;  %v4835_v22 = vld [vmem:[#allocation30_spill] sm:$0xff] }
 0x26d   : > { %v652_v23 = vsel %vm651_vm0, %v4829_v3, %v4828_v25  ;;  %v751_v0 = vsel %vm749_vm1, %v4831_v32, %v4833_v54  ;;  %v848_v13 = vsel %vm847_vm2, %v4835_v22, %v4834_v15  ;;  %v849_v42 = vsel %vm847_vm2, %v4834_v15, %v4836_v6  ;;  %v4842_v56 = vld [vmem:[#allocation38_spill] sm:$0xff] }
 0x26e   : > { %1335 = vrot.lane.b32.xlu0 %v1327_v26, %s3008_s26  ;;  %v491_v26 = vmul.f32 %v3264_v43, %v4825_v55  ;;  %v495_v20 = vadd.f32 %v492_v61, %v473_v19  ;;  %v4837_v55 = vld [vmem:[#allocation34_spill] sm:$0xff] }
 0x26f   : > { %1352 = vperm.xlu1 %2914, %v1349_v17  }
 0x272   : > { %1371 = vperm.xlu0 %2915, %v1349_v17   ;;  %v514_v17 = vmul.f32 %v3287_v60, %v3584_v7  ;;  %v4827_v7 = vld [vmem:[#allocation10_spill] sm:$0xff] }
 0x273   : > { %1395 = vperm.xlu1 %2914, %v1392_v24   ;;  %v494_v24 = vadd.f32 %v491_v26, %v472_v49  ;;  %v556_v11 = vmul.f32 %v3310_v47, %v4827_v7  ;;  %v557_v35 = vmul.f32 %v3315_v9, %v4827_v7  ;;  %v558_v50 = vmul.f32 %v3321_v63, %v4827_v7  ;;  %v4832_v63 = vld [vmem:[#allocation27_spill] sm:$0xff] }
 0x274   : > { %v517_v43 = vadd.f32 %v514_v17, %v495_v20  ;;  %v750_v57 = vsel %vm749_vm1, %v4832_v63, %v4831_v32 }
 0x275   : > { %v516_v41 = vadd.f32 %v513_v53, %v494_v24 }
 0x276   : > { %2917 = vset.pattern.permute.xlu0 %v4807_v62  ;;  %v539_v60 = vadd.f32 %v536_v46, %v517_v43 }
 0x277   : > { %1444 = vperm.xlu1 %2914, %v1439_v36   ;;  %1554 = vperm.xlu0 %2917, %v1439_v36   ;;  %v538_v37 = vadd.f32 %v535_v59, %v516_v41  ;;  %v4841_v41 = vld [vmem:[#allocation37_spill] sm:$0xff] }
 0x278   : > { %v561_v51 = vadd.f32 %v558_v50, %v539_v60 }
 0x279   : > { %v560_v4 = vadd.f32 %v557_v35, %v538_v37 }
 0x27a   : > { %v659_v9 = vadd.f32 %v4830_v58, %v561_v51 }
 0x27b   : > { %2916 = vset.pattern.permute.xlu1 %v4806_v2  ;;  %1678 = vperm.xlu0 %2917, %v3641_v40   ;;  %v658_v10 = vadd.f32 %v653_v34, %v560_v4 }
 0x27c   : > { %1517 = vperm.xlu1 %2916, %v1439_v36   ;;  %v757_v45 = vadd.f32 %v4833_v54, %v659_v9 }
 0x27d   : > { %v756_v18 = vadd.f32 %v751_v0, %v658_v10  ;;  %v4843_v0 = vld [vmem:[#allocation8_spill] sm:$0xff] }
 0x27e   : > { %v855_v19 = vadd.f32 %v4836_v6, %v757_v45 }
 0x27f   : > { %1792 = vperm.xlu0 %2917, %v3653_v44   ;;  %v854_v33 = vadd.f32 %v849_v42, %v756_v18 }
 0x280   : > { %2918 = vset.pattern.permute.xlu1 %v4791_v28 }
 0x281   : > { %1594 = vperm.xlu1 %2918, %v3648_v29  }
 0x283   : > { %2929 = vset.pattern.permute.xlu0 %v4793_v8 }
 0x284   : > { %1480 = vperm.xlu0 %2929, %v1439_v36   ;;  %v493_v36 = vadd.f32 %v490_v48, %v471_v14  ;;  %v4838_v48 = vld [vmem:[#allocation35_spill] sm:$0xff] }
 0x285   : > { %2919 = vset.pattern.permute.xlu1 %v4793_v8  ;;  %v946_v26 = vsel %vm945_vm3, %v4838_v48, %v4837_v55 }
 0x286   : > { %1601 = vperm.xlu1 %2919, %v3648_v29  }
 0x288   : > { %1715 = vperm.xlu0 %2929, %v2815_v21  }
 0x28a   : > { %2920 = vset.pattern.permute.xlu1 %v4807_v62 }
 0x28b   : > { %1621 = vperm.xlu1 %2920, %v3648_v29  }
 0x28c   : > { %1772 = vperm.xlu0 %2929, %v3653_v44  }
 0x28f   : > { %2921 = vset.pattern.permute.xlu1 %v4793_v8 }
 0x290   : > { %1658 = vperm.xlu1 %2921, %v3641_v40   ;;  %1886 = vperm.xlu0 %2929, %v3670_v12  }
 0x294   : > { %2922 = vset.pattern.permute.xlu1 %v4806_v2  ;;  %2932 = vset.pattern.permute.xlu0 %v4791_v28 }
 0x295   : > { %1668 = vperm.xlu1 %2922, %v3641_v40  }
 0x299   : > { %2923 = vset.pattern.permute.xlu1 %v4791_v28 }
 0x29a   : > { %1708 = vperm.xlu1 %2923, %v2815_v21  }
 0x29e   : > { %2924 = vset.pattern.permute.xlu1 %v4806_v2 }
 0x29f   : > { %1725 = vperm.xlu1 %2924, %v2815_v21  }
 0x2a3   : > { %2925 = vset.pattern.permute.xlu1 %v4791_v28 }
 0x2a4   : > { %1765 = vperm.xlu1 %2925, %v3653_v44  }
 0x2a8   : > { %2926 = vset.pattern.permute.xlu1 %v4807_v62 }
 0x2a9   : > { %1735 = vperm.xlu1 %2926, %v2815_v21   ;;  %v515_v21 = vadd.f32 %v512_v52, %v493_v36  ;;  %v4839_v52 = vld [vmem:[#allocation36_spill] sm:$0xff] }
 0x2aa   : > { %v947_v53 = vsel %vm945_vm3, %v4837_v55, %v4839_v52  ;;  %v953_v20 = vadd.f32 %v4839_v52, %v855_v19 }
 0x2ab   : > { %v537_v27 = vadd.f32 %v534_v1, %v515_v21  ;;  %v952_v17 = vadd.f32 %v947_v53, %v854_v33  ;;  %v4840_v21 = vld [vmem:[#allocation39_spill] sm:$0xff] }
 0x2ac   : > { %v1044_v43 = vsel %vm1043_vm4, %v4841_v41, %v4840_v21  ;;  %v1045_v1 = vsel %vm1043_vm4, %v4840_v21, %v4842_v56  ;;  %v3009_v21 = vmov 0.0  }
 0x2ad   : > { %2927 = vset.pattern.permute.xlu1 %v4791_v28  ;;  %v559_v5 = vadd.f32 %v556_v11, %v537_v27  ;;  %v1050_v37 = vadd.f32 %v1045_v1, %v952_v17  ;;  %v1051_v11 = vadd.f32 %v4842_v56, %v953_v20  ;;  %381 = vst.msk [vmem:[#allocation2] sm:$0xf] %vm380_vm8, %v3009_v21 }
 0x2ae   : > { %1822 = vperm.xlu1 %2927, %v3686_v38   ;;  %383 = vst.msk [vmem:[#allocation2 + $0x8] sm:$0xf] %vm382_vm9, %v3009_v21  ;;  %v4852_v21 = vld [vmem:[#allocation16_spill] sm:$0xff] }
 0x2af   : > { %v657_v47 = vadd.f32 %v652_v23, %v559_v5 }
 0x2b1   : > { %v755_v31 = vadd.f32 %v750_v57, %v657_v47 }
 0x2b2   : > { %2928 = vset.pattern.permute.xlu1 %v4793_v8 }
 0x2b3   : > { %1829 = vperm.xlu1 %2928, %v3686_v38   ;;  %v853_v49 = vadd.f32 %v848_v13, %v755_v31  ;;  %v4844_v31 = vld [vmem:[#allocation9_spill] sm:$0xff] }
 0x2b5   : > { %v951_v24 = vadd.f32 %v946_v26, %v853_v49 }
 0x2b7   : > { %2930 = vset.pattern.permute.xlu1 %v4806_v2  ;;  %v1049_v60 = vadd.f32 %v1044_v43, %v951_v24 }
 0x2b8   : > { %1839 = vperm.xlu1 %2930, %v3686_v38  }
 0x2bc   : > { %2931 = vset.pattern.permute.xlu1 %v4791_v28 }
 0x2bd   : > { %1879 = vperm.xlu1 %2931, %v3670_v12  }
 0x2c1   : > { %2933 = vset.pattern.permute.xlu1 %v4807_v62 }
 0x2cb   : > { %v1136_v39 = vpop.permute.xlu1 %1135  ;;  %v1140_v30 = vpop.permute.xlu0 %1139 }
 0x2cc   : > { %v1149_v51 = vadd.f32 %v1140_v30, %v1051_v11  ;;  %v1413_v11 = vld [vmem:[%s369_s28] sm:$0xff] }
 0x2cf   : > { %v1138_v16 = vpop.permute.xlu1 %1137 }
 0x2d0   : > { %v1142_v59 = vsel %vm1141_vm5, %v1136_v39, %v1138_v16  ;;  %v1143_v46 = vsel %vm1141_vm5, %v1138_v16, %v1140_v30 }
 0x2d1   : > { %v1147_v5 = vadd.f32 %v1142_v59, %v1049_v60  ;;  %v1148_v4 = vadd.f32 %v1143_v46, %v1050_v37  ;;  %v1414_v60 = vld [vmem:[%s369_s28 + $0x8] sm:$0xf] }
 0x2d5   : > { %v1234_v14 = vpop.permute.xlu1 %1233  ;;  %v1236_v61 = vpop.permute.xlu0 %1235 }
 0x2d6   : > { %v1240_v35 = vsel %vm1239_vm6, %v1234_v14, %v1236_v61 }
 0x2d7   : > { %v1245_v39 = vadd.f32 %v1240_v35, %v1147_v5 }
 0x2d9   : > { %v1238_v36 = vpop.permute.xlu1 %1237 }
 0x2da   : > { %v1241_v50 = vsel %vm1239_vm6, %v1236_v61, %v1238_v36  ;;  %v1247_v34 = vadd.f32 %v1238_v36, %v1149_v51 }
 0x2db   : > { %v1246_v23 = vadd.f32 %v1241_v50, %v1148_v4  ;;  %v2819_v4 = vld [vmem:[%s4701_s6 + $0x1c] sm:$0xf] }
 0x2dc   : > { %v1332_v27 = vpop.permute.xlu0 %1331 }
 0x2dd   : > { %v1334_v7 = vpop.permute.xlu1 %1333 }
 0x2de   : > { %v1338_v25 = vsel %vm1337_vm7, %v1332_v27, %v1334_v7 }
 0x2df   : > { %v1343_v47 = vadd.f32 %v1338_v25, %v1245_v39 }
 0x2e0   : > { %v1336_v3 = vpop.permute.xlu0 %1335 }
 0x2e1   : > { %v1339_v58 = vsel %vm1337_vm7, %v1334_v7, %v1336_v3  ;;  %v1345_v9 = vadd.f32 %v1336_v3, %v1247_v34  ;;  %v1346_v32 = vmax.f32 %v1343_v47, 0.0 }
 0x2e2   : > { %v1344_v10 = vadd.f32 %v1339_v58, %v1246_v23 }
 0x2e3   : > { %v1348_v57 = vmax.f32 %v1345_v9, 0.0  ;;  %v1358_v18 = vrot.slane %v1346_v32, %v4843_v0  ;;  %v1377_v45 = vrot.slane %v1346_v32, %v4844_v31 }
 0x2e4   : > { %v1347_v63 = vmax.f32 %v1344_v10, 0.0 }
 0x2e5   : > { %v1366_v15 = vrot.slane %v1348_v57, %v4843_v0  ;;  %v1385_v13 = vrot.slane %v1348_v57, %v4844_v31 }
 0x2e6   : > { %v1362_v16 = vrot.slane %v1347_v63, %v4843_v0  ;;  %v1381_v22 = vrot.slane %v1347_v63, %v4844_v31 }
 0x2ea   : > { %v1353_v54 = vpop.permute.xlu1 %1352 }
 0x2eb   : > { %v1367_v6 = vmul.f32 %v1358_v18, %v1353_v54  ;;  %v1368_v42 = vmul.f32 %v1362_v16, %v1353_v54  ;;  %v1369_v33 = vmul.f32 %v1366_v15, %v1353_v54 }
 0x2ed   : > { %v1372_v30 = vpop.permute.xlu0 %1371 }
 0x2ee   : > { %v1386_v49 = vmul.f32 %v1377_v45, %v1372_v30  ;;  %v1387_v14 = vmul.f32 %v1381_v22, %v1372_v30  ;;  %v1388_v19 = vmul.f32 %v1385_v13, %v1372_v30  ;;  %v1396_v52 = vpop.permute.xlu1 %1395 }
 0x2f0   : > { %v1390_v55 = vadd.f32 %v1387_v14, %v1368_v42  ;;  %v1391_v48 = vadd.f32 %v1388_v19, %v1369_v33  ;;  %v1389_v26 = vadd.f32 %v1386_v49, %v1367_v6  ;;  %v4847_v6 = vmov 0 }
 0x2f1   : > { %v4848_v6 = vsel %vm3875_vm13, 4294967295, %v4847_v6 }
 0x2f2   : > { %v1398_v53 = vadd.f32 %v1396_v52, %v1389_v26  ;;  %v1399_v61 = vadd.f32 %v1396_v52, %v1390_v55  ;;  %v1400_v17 = vadd.f32 %v1396_v52, %v1391_v48  ;;  %v3849_v34 = vpop.permute.xlu0 %1554  ;;  %4849 = vst [vmem:[#allocation4_spill] sm:$0xff] %v4848_v6  ;;  %v4850_v26 = vld [vmem:[#allocation21_spill] sm:$0xff] }
 0x2f4   : > { %v1401_v24 = vmul.f32 0.5, %v1398_v53  ;;  %v1402_v36 = vmul.f32 0.5, %v1399_v61  ;;  %v1403_v20 = vmul.f32 0.5, %v1400_v17  ;;  %v4851_v61 = vld [vmem:[#allocation22_spill] sm:$0xff] }
 0x2f6   : > { %2973 = vtanh.f32 %v1401_v24  ;;  %v3853_v10 = vpop.permute.xlu0 %1678 }
 0x2f7   : > { %2975 = vtanh.f32 %v1402_v36 }
 0x2f8   : > { %2977 = vtanh.f32 %v1403_v20 }
 0x2fa   : > { %v3857_v32 = vpop.permute.xlu0 %1792 }
 0x2ff   : > { %v3861_v57 = vpop.permute.xlu0 %1480 }
 0x303   : > { %v2974_v41 = vpop.eup %2973  ;;  %v3865_v18 = vpop.permute.xlu0 %1715 }
 0x304   : > { %v2976_v43 = vpop.eup %2975  ;;  %v1407_v56 = vadd.f32 1.0, %v2974_v41 }
 0x305   : > { %v2978_v1 = vpop.eup %2977  ;;  %v1408_v59 = vadd.f32 1.0, %v2976_v43 }
 0x306   : > { %v1410_v46 = vmul.f32 0.5, %v1407_v56  ;;  %v1409_v27 = vadd.f32 1.0, %v2978_v1  ;;  %v4853_v1 = vld [vmem:[#allocation23_spill] sm:$0xff] }
 0x307   : > { %v1411_v37 = vmul.f32 0.5, %v1408_v59  ;;  %v3869_v45 = vpop.permute.xlu0 %1772 }
 0x308   : > { %v1412_v7 = vmul.f32 0.5, %v1409_v27 }
 0x309   : > { %v1417_v35 = vcombine.low %v1410_v46, %v1411_v37 }
 0x30a   : > { %v3798_v50 = vmul.f32 %v1414_v60, %v1412_v7 }
 0x30b   : > { %v3800_v5 = vmul.f32 %v1417_v35, %v1413_v11  ;;  %v3873_v22 = vpop.permute.xlu0 %1886  ;;  %v4854_v35 = vld [vmem:[#allocation24_spill] sm:$0xff] }
 0x30c   : > { %4845 = vst [vmem:[#allocation13_spill] sm:$0xff] %v3798_v50  ;;  %1425 = vrot.lane.b32.xlu0 %v3798_v50, %s3010_s29 }
 0x30d   : > { %4846 = vst [vmem:[#allocation15_spill] sm:$0xff] %v3800_v5  ;;  %1423 = vrot.lane.b32.xlu1 %v3800_v5, %s3010_s29 }
 0x310   : > { %1651 = vperm.xlu0 %2932, %v3641_v40   ;;  %v2820_v40 = vld [vmem:[%s4701_s6 + $0x20] sm:$0xf] }
 0x311   : > { %1849 = vperm.xlu1 %2933, %v3686_v38   ;;  %v2046_v38 = vld [vmem:[%s4702_s7] sm:$0xf] }
 0x314   : > { %1936 = vperm.xlu0 %2932, %v2819_v4  }
 0x315   : > { %2934 = vset.pattern.permute.xlu1 %v4806_v2 }
 0x316   : > { %1896 = vperm.xlu1 %2934, %v3670_v12  }
 0x318   : > { %2935 = vset.pattern.permute.xlu0 %v4806_v2 }
 0x319   : > { %1611 = vperm.xlu0 %2935, %v3648_v29   ;;  %v3824_v29 = vpop.permute.xlu1 %1444 }
 0x31a   : > { %2936 = vset.pattern.permute.xlu1 %v4793_v8 }
 0x31b   : > { %1943 = vperm.xlu1 %2936, %v2819_v4  }
 0x31d   : > { %1782 = vperm.xlu0 %2935, %v3653_v44   ;;  %v3827_v44 = vpop.permute.xlu1 %1517 }
 0x31f   : > { %2937 = vset.pattern.permute.xlu1 %v4807_v62 }
 0x320   : > { %1906 = vperm.xlu1 %2937, %v3670_v12  }
 0x321   : > { %1953 = vperm.xlu0 %2935, %v2819_v4   ;;  %v3830_v12 = vpop.permute.xlu1 %1594 }
 0x324   : > { %2938 = vset.pattern.permute.xlu1 %v4791_v28 }
 0x325   : > { %2940 = vset.pattern.permute.xlu0 %v4807_v62  ;;  %1993 = vperm.xlu1 %2938, %v2820_v40   ;;  %v3836_v51 = vpop.permute.xlu1 %1601 }
 0x326   : > { %1963 = vperm.xlu0 %2940, %v2819_v4  }
 0x329   : > { %2939 = vset.pattern.permute.xlu1 %v4793_v8  ;;  %v3839_v25 = vpop.permute.xlu1 %1621 }
 0x32a   : > { %2000 = vperm.xlu1 %2939, %v2820_v40  }
 0x32d   : > { %v3841_v3 = vpop.permute.xlu1 %1658 }
 0x32e   : > { %2941 = vset.pattern.permute.xlu1 %v4806_v2 }
 0x32f   : > { %2010 = vperm.xlu1 %2941, %v2820_v40  }
 0x331   : > { %v3843_v39 = vpop.permute.xlu1 %1668 }
 0x333   : > { %2942 = vset.pattern.permute.xlu1 %v4807_v62 }
 0x334   : > { %2020 = vperm.xlu1 %2942, %v2820_v40  }
 0x335   : > { %v3845_v23 = vpop.permute.xlu1 %1708 }
 0x338   : > { %2943 = vset.pattern.permute.xlu1 %v4791_v28 }
 0x339   : > { %2049 = vperm.xlu1 %2943, %v2046_v38   ;;  %v3847_v58 = vpop.permute.xlu1 %1725 }
 0x33d   : > { %v3851_v47 = vpop.permute.xlu1 %1765 }
 0x341   : > { %v3855_v9 = vpop.permute.xlu1 %1735 }
 0x345   : > { %v3859_v63 = vpop.permute.xlu1 %1822 }
 0x349   : > { %v3863_v54 = vpop.permute.xlu1 %1829 }
 0x34d   : > { %v3867_v16 = vpop.permute.xlu1 %1839 }
 0x351   : > { %v3871_v15 = vpop.permute.xlu1 %1879 }
 0x37e   : > { %v1426_v30 = vpop.permute.xlu0 %1425 }
 0x37f   : > { %v1424_v13 = vpop.permute.xlu1 %1423 }
 0x380   : > { %v1427_v42 = vrot.slane %v1424_v13, 4 }
 0x382   : > { %v1429_v33 = vsel %vm1428_vm12, %v1427_v42, %v1424_v13  ;;  %v1430_v49 = vsel %vm1428_vm12, %v1427_v42, %v1426_v30  ;;  %v4855_v13 = vld [vmem:[#allocation17_spill] sm:$0xff] }
 0x383   : > { %1436 = vst.msk [vmem:[#allocation2] sm:$0xff] %vm3875_vm13, %v1429_v33 }
 0x384   : > { %1438 = vst.msk [vmem:[#allocation2 + $0x8] sm:$0xf] %vm1437_vm14, %v1430_v49 }
 0x38a   : > { %v1440_v19 = vld [vmem:[#allocation2] sm:$0xff] }
 0x38b   : > { %v1652_v14 = vpop.permute.xlu0 %1651  ;;  %v1441_v55 = vld [vmem:[#allocation2 + $0x8] sm:$0xf]  ;;  %v1452_v48 = vrot.slane %v1440_v19, %v4843_v0  ;;  %v1456_v52 = vrot.slane %v1440_v19, %v4850_v26  ;;  %v1486_v53 = vrot.slane %v1440_v19, %v4844_v31  ;;  %v1490_v17 = vrot.slane %v1440_v19, %v4851_v61 }
 0x38c   : > { %v1494_v36 = vrot.slane %v1441_v55, %v4844_v31  ;;  %v1460_v20 = vrot.slane %v1441_v55, %v4843_v0  ;;  %v1523_v41 = vrot.slane %v1440_v19, %v4852_v21  ;;  %v1527_v59 = vrot.slane %v1440_v19, %v4853_v1  ;;  %v1850_v6 = vpop.permute.xlu1 %1849 }
 0x38d   : > { %v3894_v43 = vrot.slane %v1452_v48, %v4843_v0  ;;  %v3897_v56 = vrot.slane %v1456_v52, %v4843_v0  ;;  %v3901_v46 = vrot.slane %v1486_v53, %v4844_v31  ;;  %v3904_v27 = vrot.slane %v1490_v17, %v4844_v31 }
 0x38e   : > { %v3907_v37 = vrot.slane %v1460_v20, %v4843_v0  ;;  %v3910_v60 = vrot.slane %v1494_v36, %v4844_v31  ;;  %v1531_v7 = vrot.slane %v1441_v55, %v4852_v21  ;;  %v3914_v11 = vrot.slane %v1523_v41, %v4852_v21 }
 0x38f   : > { %v3888_v24 = vpop.permute.xlu0 %1936  ;;  %v1564_v4 = vrot.slane %v1440_v19, %v4854_v35  ;;  %v3918_v38 = vrot.slane %v1527_v59, %v4852_v21  ;;  %v1560_v42 = vrot.slane %v1440_v19, %v4855_v13  ;;  %v1597_v30 = vmul.f32 %v3830_v12, %v3894_v43 }
 0x390   : > { %v1598_v33 = vmul.f32 %v3830_v12, %v3897_v56  ;;  %v1604_v49 = vmul.f32 %v3836_v51, %v3901_v46  ;;  %v1605_v48 = vmul.f32 %v3836_v51, %v3904_v27  ;;  %v1656_v52 = vmul.f32 %v1652_v14, %v3907_v37 }
 0x391   : > { %v1663_v53 = vmul.f32 %v3841_v3, %v3910_v60  ;;  %v3935_v36 = vrot.slane %v1531_v7, %v4852_v21  ;;  %v1568_v20 = vrot.slane %v1441_v55, %v4855_v13  ;;  %v3939_v41 = vrot.slane %v1564_v4, %v4855_v13 }
 0x392   : > { %v1608_v59 = vadd.f32 %v1605_v48, %v1598_v33  ;;  %v3942_v5 = vrot.slane %v1560_v42, %v4855_v13  ;;  %v1599_v50 = vmul.f32 %v3830_v12, %v3907_v37  ;;  %v1606_v35 = vmul.f32 %v3836_v51, %v3910_v60 }
 0x393   : > { %v1607_v1 = vadd.f32 %v1604_v49, %v1597_v30  ;;  %v1654_v7 = vmul.f32 %v1652_v14, %v3894_v43  ;;  %v1666_v26 = vadd.f32 %v1663_v53, %v1656_v52  ;;  %v1655_v33 = vmul.f32 %v1652_v14, %v3897_v56 }
 0x394   : > { %v1612_v40 = vpop.permute.xlu0 %1611  ;;  %v1661_v42 = vmul.f32 %v3841_v3, %v3901_v46  ;;  %v1662_v12 = vmul.f32 %v3841_v3, %v3904_v27  ;;  %v1625_v51 = vmul.f32 %v3839_v25, %v3939_v41  ;;  %v1673_v30 = vmul.f32 %v3843_v39, %v3935_v36  ;;  %v3965_v3 = vpop.permute.xlu1 %1896 }
 0x395   : > { %v1614_v17 = vmul.f32 %v1612_v40, %v3914_v11  ;;  %v1615_v19 = vmul.f32 %v1612_v40, %v3918_v38  ;;  %v1616_v55 = vmul.f32 %v1612_v40, %v3935_v36  ;;  %v3960_v49 = vrot.slane %v1568_v20, %v4855_v13 }
 0x396   : > { %v1609_v48 = vadd.f32 %v1606_v35, %v1599_v50  ;;  %v1676_v40 = vadd.f32 %v1673_v30, %v1666_v26  ;;  %v1672_v26 = vmul.f32 %v3843_v39, %v3918_v38  ;;  %v1681_v30 = vmul.f32 %v3853_v10, %v3942_v5 }
 0x397   : > { %v1618_v61 = vadd.f32 %v1615_v19, %v1608_v59  ;;  %v1617_v4 = vadd.f32 %v1614_v17, %v1607_v1  ;;  %v1624_v1 = vmul.f32 %v3839_v25, %v3942_v5  ;;  %v1664_v17 = vadd.f32 %v1661_v42, %v1654_v7 }
 0x398   : > { %v1619_v52 = vadd.f32 %v1616_v55, %v1609_v48  ;;  %v1665_v19 = vadd.f32 %v1662_v12, %v1655_v33  ;;  %v1683_v20 = vmul.f32 %v3853_v10, %v3960_v49  ;;  %v1626_v50 = vmul.f32 %v3839_v25, %v3960_v49 }
 0x399   : > { %v1628_v14 = vadd.f32 %v1625_v51, %v1618_v61  ;;  %v1627_v53 = vadd.f32 %v1624_v1, %v1617_v4  ;;  %v1671_v61 = vmul.f32 %v3843_v39, %v3914_v11  ;;  %v3977_v4 = vmul.f32 %v1850_v6, %v3942_v5 }
 0x39a   : > { %v1686_v35 = vadd.f32 %v1683_v20, %v1676_v40  ;;  %v1629_v59 = vadd.f32 %v1626_v50, %v1619_v52  ;;  %v1675_v55 = vadd.f32 %v1672_v26, %v1665_v19  ;;  %v3980_v33 = vmul.f32 %v1850_v6, %v3939_v41  ;;  %v4013_v40 = vpop.permute.xlu1 %1943  ;;  %v1783_v19 = vpop.permute.xlu0 %1782 }
 0x39b   : > { %1635 = vrot.lane.b32.xlu0 %v1628_v14, %s3001_s11  ;;  %1633 = vrot.lane.b32.xlu1 %v1627_v53, %s3001_s11  ;;  %v1674_v7 = vadd.f32 %v1671_v61, %v1664_v17  ;;  %v3984_v42 = vmul.f32 %v3871_v15, %v3894_v43  ;;  %v1711_v25 = vmul.f32 %v3845_v23, %v3894_v43 }
 0x39c   : > { %v3992_v39 = vmul.f32 %v3871_v15, %v3897_v56  ;;  %v3996_v12 = vmul.f32 %v3871_v15, %v3907_v37  ;;  %v1718_v51 = vmul.f32 %v3865_v18, %v3901_v46  ;;  %v4003_v48 = vmul.f32 %v1850_v6, %v3960_v49 }
 0x39d   : > { %v4007_v1 = vmul.f32 %v3873_v22, %v3901_v46  ;;  %v4011_v14 = vmul.f32 %v3873_v22, %v3904_v27  ;;  %v1713_v15 = vmul.f32 %v3845_v23, %v3907_v37  ;;  %v1728_v53 = vmul.f32 %v3847_v58, %v3914_v11 }
 0x39e   : > { %v1721_v52 = vadd.f32 %v1718_v51, %v1711_v25  ;;  %v1684_v17 = vadd.f32 %v1681_v30, %v1674_v7  ;;  %v1720_v6 = vmul.f32 %v3865_v18, %v3910_v60  ;;  %v1768_v20 = vmul.f32 %v3851_v47, %v3894_v43 }
 0x39f   : > { %1694 = vrot.lane.b32.xlu0 %v1686_v35, %s3002_s12  ;;  %1637 = vrot.lane.b32.xlu1 %v1629_v59, %s3001_s11  ;;  %v1769_v50 = vmul.f32 %v3851_v47, %v3897_v56  ;;  %v1776_v61 = vmul.f32 %v3869_v45, %v3904_v27  ;;  %v1738_v26 = vmul.f32 %v3855_v9, %v3942_v5 }
 0x3a0   : > { %v1731_v35 = vadd.f32 %v1728_v53, %v1721_v52  ;;  %v1723_v59 = vadd.f32 %v1720_v6, %v1713_v15  ;;  %v1730_v7 = vmul.f32 %v3847_v58, %v3935_v36  ;;  %v1682_v25 = vmul.f32 %v3853_v10, %v3939_v41 }
 0x3a1   : > { %v1770_v51 = vmul.f32 %v3851_v47, %v3907_v37  ;;  %v1775_v30 = vmul.f32 %v3869_v45, %v3901_v46  ;;  %v1712_v13 = vmul.f32 %v3845_v23, %v3897_v56  ;;  %v1719_v52 = vmul.f32 %v3865_v18, %v3904_v27  ;;  %v4046_v47 = vpop.permute.xlu1 %1906 }
 0x3a2   : > { %v1786_v15 = vmul.f32 %v1783_v19, %v3918_v38  ;;  %v1741_v53 = vadd.f32 %v1738_v26, %v1731_v35  ;;  %v1685_v6 = vadd.f32 %v1682_v25, %v1675_v55  ;;  %v1777_v10 = vmul.f32 %v3869_v45, %v3910_v60 }
 0x3a3   : > { %1690 = vrot.lane.b32.xlu1 %v1684_v17, %s3002_s12  ;;  %v1733_v17 = vadd.f32 %v1730_v7, %v1723_v59  ;;  %v1785_v31 = vmul.f32 %v1783_v19, %v3914_v11  ;;  %v1722_v21 = vadd.f32 %v1719_v52, %v1712_v13  ;;  %v1729_v0 = vmul.f32 %v3847_v58, %v3918_v38 }
 0x3a4   : > { %v1779_v23 = vadd.f32 %v1776_v61, %v1769_v50  ;;  %1747 = vrot.lane.b32.xlu0 %v1741_v53, %s3003_s15  ;;  %v1740_v18 = vmul.f32 %v3855_v9, %v3960_v49  ;;  %v1825_v55 = vmul.f32 %v3859_v63, %v3894_v43  ;;  %v1778_v45 = vadd.f32 %v1775_v30, %v1768_v20 }
 0x3a5   : > { %v1787_v26 = vmul.f32 %v1783_v19, %v3935_v36  ;;  %v1732_v35 = vadd.f32 %v1729_v0, %v1722_v21  ;;  %v1739_v13 = vmul.f32 %v3855_v9, %v3939_v41  ;;  %v4061_v58 = vmul.f32 %v3873_v22, %v3910_v60  ;;  %v4074_v52 = vpop.permute.xlu1 %1993 }
 0x3a6   : > { %v1789_v50 = vadd.f32 %v1786_v15, %v1779_v23  ;;  %v1743_v61 = vadd.f32 %v1740_v18, %v1733_v17  ;;  %v1832_v59 = vmul.f32 %v3863_v54, %v3901_v46  ;;  %v1780_v7 = vadd.f32 %v1777_v10, %v1770_v51 }
 0x3a7   : > { %1692 = vrot.lane.b32.xlu1 %v1685_v6, %s3002_s12  ;;  %v1788_v25 = vadd.f32 %v1785_v31, %v1778_v45  ;;  %v1796_v20 = vmul.f32 %v3857_v32, %v3939_v41  ;;  %v1742_v30 = vadd.f32 %v1739_v13, %v1732_v35  ;;  %v1842_v9 = vmul.f32 %v3867_v16, %v3914_v11 }
 0x3a8   : > { %1751 = vrot.lane.b32.xlu0 %v1743_v61, %s3003_s15  ;;  %v1835_v0 = vadd.f32 %v1832_v59, %v1825_v55  ;;  %v1827_v22 = vmul.f32 %v3859_v63, %v3907_v37  ;;  %v1834_v21 = vmul.f32 %v3863_v54, %v3910_v60  ;;  %v1790_v19 = vadd.f32 %v1787_v26, %v1780_v7 }
 0x3a9   : > { %v1795_v31 = vmul.f32 %v3857_v32, %v3942_v5  ;;  %v1826_v51 = vmul.f32 %v3859_v63, %v3897_v56  ;;  %v1833_v15 = vmul.f32 %v3863_v54, %v3904_v27  ;;  %v1899_v53 = vmul.f32 %v3965_v3, %v3914_v11  ;;  %v4110_v7 = vpop.permute.xlu1 %2000 }
 0x3aa   : > { %v1799_v17 = vadd.f32 %v1796_v20, %v1789_v50  ;;  %v1845_v6 = vadd.f32 %v1842_v9, %v1835_v0  ;;  %v1837_v10 = vadd.f32 %v1834_v21, %v1827_v22  ;;  %v1892_v23 = vadd.f32 %v4007_v1, %v3984_v42  ;;  %v1954_v42 = vpop.permute.xlu0 %1953 }
 0x3ab   : > { %1749 = vrot.lane.b32.xlu1 %v1742_v30, %s3003_s15  ;;  %v1798_v18 = vadd.f32 %v1795_v31, %v1788_v25  ;;  %v1797_v55 = vmul.f32 %v3857_v32, %v3960_v49  ;;  %v1836_v45 = vadd.f32 %v1833_v15, %v1826_v51  ;;  %v1893_v63 = vadd.f32 %v4011_v14, %v3992_v39 }
 0x3ac   : > { %v1900_v54 = vmul.f32 %v3965_v3, %v3918_v38  ;;  %1806 = vrot.lane.b32.xlu0 %v1799_v17, %s3004_s16  ;;  %v1844_v26 = vmul.f32 %v3867_v16, %v3935_v36  ;;  %v1476_v35 = vmul.f32 %v3894_v43, %v3824_v29  ;;  %v1855_v32 = vadd.f32 %v3977_v4, %v1845_v6 }
 0x3ad   : > { %v1800_v1 = vadd.f32 %v1797_v55, %v1790_v19  ;;  %v1843_v39 = vmul.f32 %v3867_v16, %v3918_v38  ;;  %v1510_v14 = vmul.f32 %v3901_v46, %v3861_v57  ;;  %v1477_v50 = vmul.f32 %v3897_v56, %v3824_v29 }
 0x3ae   : > { %v1847_v13 = vadd.f32 %v1844_v26, %v1837_v10  ;;  %v1478_v61 = vmul.f32 %v3907_v37, %v3824_v29  ;;  %v1511_v59 = vmul.f32 %v3904_v27, %v3861_v57  ;;  %v1547_v16 = vmul.f32 %v3914_v11, %v3827_v44  ;;  %v1964_v6 = vpop.permute.xlu0 %1963 }
 0x3af   : > { %1804 = vrot.lane.b32.xlu1 %v1798_v18, %s3004_s16  ;;  %v1846_v4 = vadd.f32 %v1843_v39, %v1836_v45  ;;  %v1513_v25 = vadd.f32 %v1510_v14, %v1476_v35  ;;  %v1512_v20 = vmul.f32 %v3910_v60, %v3861_v57  ;;  %v1946_v30 = vmul.f32 %v4013_v40, %v3901_v46  ;;  %v2011_v39 = vpop.permute.xlu1 %2010 }
 0x3b0   : > { %v1909_v0 = vmul.f32 %v4046_v47, %v3942_v5  ;;  %1861 = vrot.lane.b32.xlu0 %v1855_v32, %s3005_s17  ;;  %v1514_v29 = vadd.f32 %v1511_v59, %v1477_v50  ;;  %v1548_v9 = vmul.f32 %v3918_v38, %v3827_v44  ;;  %v1584_v21 = vmul.f32 %v3942_v5, %v3849_v34 }
 0x3b1   : > { %v1550_v22 = vadd.f32 %v1547_v16, %v1513_v25  ;;  %v1515_v19 = vadd.f32 %v1512_v20, %v1478_v61  ;;  %v1549_v57 = vmul.f32 %v3935_v36, %v3827_v44  ;;  %v1910_v31 = vmul.f32 %v4046_v47, %v3939_v41 }
 0x3b2   : > { %v1857_v51 = vadd.f32 %v4003_v48, %v1847_v13  ;;  %v1551_v15 = vadd.f32 %v1548_v9, %v1514_v29  ;;  %v1585_v17 = vmul.f32 %v3939_v41, %v3849_v34  ;;  %v1856_v10 = vadd.f32 %v3980_v33, %v1846_v4 }
 0x3b3   : > { %1808 = vrot.lane.b32.xlu1 %v1800_v1, %s3004_s16  ;;  %v4134_v18 = vadd.f32 %v1584_v21, %v1550_v22  ;;  %v1552_v55 = vadd.f32 %v1549_v57, %v1515_v19  ;;  %v1586_v45 = vmul.f32 %v3960_v49, %v3849_v34  ;;  %v1939_v44 = vmul.f32 %v3888_v24, %v3894_v43  ;;  %v2021_v29 = vpop.permute.xlu1 %2020 }
 0x3b4   : > { %v1903_v26 = vadd.f32 %v1900_v54, %v1893_v63  ;;  %v1956_v35 = vmul.f32 %v1954_v42, %v3914_v11  ;;  %1865 = vrot.lane.b32.xlu0 %v1857_v51, %s3005_s17  ;;  %v4142_v48 = vadd.f32 %v1585_v17, %v1551_v15  ;;  %v1894_v32 = vadd.f32 %v4061_v58, %v3996_v12 }
 0x3b5   : > { %v1901_v33 = vmul.f32 %v3965_v3, %v3935_v36  ;;  %v1902_v1 = vadd.f32 %v1899_v53, %v1892_v23  ;;  %v4149_v34 = vadd.f32 %v1586_v45, %v1552_v55  ;;  %v1948_v63 = vmul.f32 %v4013_v40, %v3910_v60  ;;  %v4215_v45 = vld [vmem:[%s4703_s8 + $0x18] sm:$0xf] }
 0x3b6   : > { %v1949_v54 = vadd.f32 %v1946_v30, %v1939_v44  ;;  %v1966_v14 = vmul.f32 %v1964_v6, %v3942_v5  ;;  %v1913_v13 = vadd.f32 %v1910_v31, %v1903_v26  ;;  %v1947_v50 = vmul.f32 %v4013_v40, %v3904_v27  ;;  %v2822_v44 = vld [vmem:[%s4703_s8 + $0x8] sm:$0xf]  ;;  %v2825_v26 = vld [vmem:[%s4703_s8 + $0x14] sm:$0xf] }
 0x3b7   : > { %1863 = vrot.lane.b32.xlu1 %v1856_v10, %s3005_s17  ;;  %v1911_v12 = vmul.f32 %v4046_v47, %v3960_v49  ;;  %v1912_v3 = vadd.f32 %v1909_v0, %v1902_v1  ;;  %v1941_v58 = vmul.f32 %v3888_v24, %v3907_v37  ;;  %v1958_v53 = vmul.f32 %v1954_v42, %v3935_v36 }
 0x3b8   : > { %v1959_v23 = vadd.f32 %v1956_v35, %v1949_v54  ;;  %1920 = vrot.lane.b32.xlu0 %v1913_v13, %s3006_s24  ;;  %v1940_v61 = vmul.f32 %v3888_v24, %v3897_v56  ;;  %v1904_v59 = vadd.f32 %v1901_v33, %v1894_v32  ;;  %v1957_v4 = vmul.f32 %v1954_v42, %v3918_v38  ;;  %v4235_v35 = vpop.permute.xlu1 %2049 }
 0x3b9   : > { %v1951_v40 = vadd.f32 %v1948_v63, %v1941_v58  ;;  %v1968_v47 = vmul.f32 %v1964_v6, %v3960_v49  ;;  %v2003_v16 = vmul.f32 %v4110_v7, %v3901_v46  ;;  %v1967_v30 = vmul.f32 %v1964_v6, %v3939_v41 }
 0x3ba   : > { %v1969_v25 = vadd.f32 %v1966_v14, %v1959_v23  ;;  %v1950_v20 = vadd.f32 %v1947_v50, %v1940_v61  ;;  %v2004_v0 = vmul.f32 %v4110_v7, %v3904_v27  ;;  %v1914_v24 = vadd.f32 %v1911_v12, %v1904_v59 }
 0x3bb   : > { %1918 = vrot.lane.b32.xlu1 %v1912_v3, %s3006_s24  ;;  %v1961_v9 = vadd.f32 %v1958_v53, %v1951_v40  ;;  %v1996_v42 = vmul.f32 %v4074_v52, %v3894_v43  ;;  %v2013_v22 = vmul.f32 %v2011_v39, %v3914_v11  ;;  %v1997_v46 = vmul.f32 %v4074_v52, %v3897_v56 }
 0x3bc   : > { %1975 = vrot.lane.b32.xlu0 %v1969_v25, %s3007_s25  ;;  %v1960_v21 = vadd.f32 %v1957_v4, %v1950_v20  ;;  %v2014_v19 = vmul.f32 %v2011_v39, %v3918_v38  ;;  %v2005_v27 = vmul.f32 %v4110_v7, %v3910_v60  ;;  %v2023_v51 = vmul.f32 %v2021_v29, %v3942_v5 }
 0x3bd   : > { %v1971_v57 = vadd.f32 %v1968_v47, %v1961_v9  ;;  %v2006_v31 = vadd.f32 %v2003_v16, %v1996_v42  ;;  %v2007_v15 = vadd.f32 %v2004_v0, %v1997_v46  ;;  %v2024_v11 = vmul.f32 %v2021_v29, %v3939_v41 }
 0x3be   : > { %v1970_v43 = vadd.f32 %v1967_v30, %v1960_v21  ;;  %v1998_v17 = vmul.f32 %v4074_v52, %v3907_v37  ;;  %v2015_v56 = vmul.f32 %v2011_v39, %v3935_v36  ;;  %v2025_v60 = vmul.f32 %v2021_v29, %v3960_v49  ;;  %v2093_v37 = vld [vmem:[%s4703_s8] sm:$0xf]  ;;  %v2821_v36 = vld [vmem:[%s4703_s8 + $0x4] sm:$0xf]  ;;  %v4202_v49 = vld [vmem:[%s4703_s8 + $0x10] sm:$0xf] }
 0x3bf   : > { %1922 = vrot.lane.b32.xlu1 %v1914_v24, %s3006_s24  ;;  %v2016_v6 = vadd.f32 %v2013_v22, %v2006_v31  ;;  %v2017_v38 = vadd.f32 %v2014_v19, %v2007_v15  ;;  %v2823_v52 = vld [vmem:[%s4703_s8 + $0xc] sm:$0xf] }
 0x3c0   : > { %1979 = vrot.lane.b32.xlu0 %v1971_v57, %s3007_s25  ;;  %v2008_v10 = vadd.f32 %v2005_v27, %v1998_v17 }
 0x3c1   : > { %v2026_v7 = vadd.f32 %v2023_v51, %v2016_v6  ;;  %v2027_v5 = vadd.f32 %v2024_v11, %v2017_v38 }
 0x3c2   : > { %v2018_v55 = vadd.f32 %v2015_v56, %v2008_v10 }
 0x3c3   : > { %1977 = vrot.lane.b32.xlu1 %v1970_v43, %s3007_s25 }
 0x3c4   : > { %2032 = vrot.lane.b32.xlu0 %v2026_v7, %s3008_s26  ;;  %v2028_v41 = vadd.f32 %v2025_v60, %v2018_v55 }
 0x3c7   : > { %2034 = vrot.lane.b32.xlu1 %v2027_v5, %s3008_s26 }
 0x3c8   : > { %2036 = vrot.lane.b32.xlu0 %v2028_v41, %s3008_s26 }
 0x3cb   : > { %2098 = vperm.xlu1 %2943, %v2093_v37  }
 0x3cc   : > { %2275 = vperm.xlu0 %2940, %v2821_v36  }
 0x3cf   : > { %2944 = vset.pattern.permute.xlu1 %v4806_v2 }
 0x3d0   : > { %2171 = vperm.xlu1 %2944, %v2093_v37   ;;  %2446 = vperm.xlu0 %2940, %v4202_v49  }
 0x3d4   : > { %2945 = vset.pattern.permute.xlu1 %v4807_v62  ;;  %2957 = vset.pattern.permute.xlu0 %v4793_v8 }
 0x3d5   : > { %2208 = vperm.xlu1 %2945, %v2093_v37   ;;  %2134 = vperm.xlu0 %2957, %v2093_v37  }
 0x3d9   : > { %2946 = vset.pattern.permute.xlu1 %v4793_v8  ;;  %2369 = vperm.xlu0 %2957, %v2823_v52  }
 0x3da   : > { %2255 = vperm.xlu1 %2946, %v2821_v36  }
 0x3dd   : > { %2540 = vperm.xlu0 %2957, %v4215_v45  }
 0x3de   : > { %2947 = vset.pattern.permute.xlu1 %v4806_v2 }
 0x3df   : > { %2265 = vperm.xlu1 %2947, %v2821_v36  }
 0x3e1   : > { %2960 = vset.pattern.permute.xlu0 %v4791_v28 }
 0x3e2   : > { %2248 = vperm.xlu0 %2960, %v2821_v36  }
 0x3e3   : > { %2948 = vset.pattern.permute.xlu1 %v4793_v8 }
 0x3e4   : > { %2312 = vperm.xlu1 %2948, %v2822_v44  }
 0x3e6   : > { %2305 = vperm.xlu0 %2960, %v2822_v44  }
 0x3e8   : > { %2949 = vset.pattern.permute.xlu1 %v4806_v2 }
 0x3e9   : > { %2322 = vperm.xlu1 %2949, %v2822_v44  }
 0x3ea   : > { %2419 = vperm.xlu0 %2960, %v4202_v49  }
 0x3ed   : > { %2950 = vset.pattern.permute.xlu1 %v4791_v28 }
 0x3ee   : > { %2362 = vperm.xlu1 %2950, %v2823_v52  }
 0x3f2   : > { %2951 = vset.pattern.permute.xlu1 %v4807_v62 }
 0x3f3   : > { %2332 = vperm.xlu1 %2951, %v2822_v44  }
 0x3f7   : > { %2952 = vset.pattern.permute.xlu1 %v4806_v2 }
 0x3f8   : > { %2379 = vperm.xlu1 %2952, %v2823_v52  }
 0x3fc   : > { %2953 = vset.pattern.permute.xlu1 %v4793_v8 }
 0x3fd   : > { %2426 = vperm.xlu1 %2953, %v4202_v49  }
 0x401   : > { %2954 = vset.pattern.permute.xlu1 %v4807_v62 }
 0x402   : > { %2389 = vperm.xlu1 %2954, %v2823_v52  }
 0x406   : > { %2955 = vset.pattern.permute.xlu1 %v4791_v28 }
 0x407   : > { %2476 = vperm.xlu1 %2955, %v2825_v26  }
 0x40b   : > { %2956 = vset.pattern.permute.xlu1 %v4793_v8 }
 0x40c   : > { %2483 = vperm.xlu1 %2956, %v2825_v26  }
 0x40d   : > { %v1634_v32 = vpop.permute.xlu1 %1633  ;;  %v1636_v33 = vpop.permute.xlu0 %1635 }
 0x40e   : > { %v1639_v4 = vsel %vm651_vm0, %v1634_v32, %v1636_v33  ;;  %v2058_v32 = vld [vmem:[%s4697_s2] sm:$0x7] }
 0x40f   : > { %v1644_v25 = vadd.f32 %v1639_v4, %v4134_v18 }
 0x410   : > { %2958 = vset.pattern.permute.xlu1 %v4806_v2 }
 0x411   : > { %v1638_v1 = vpop.permute.xlu1 %1637  ;;  %2493 = vperm.xlu1 %2958, %v2825_v26   ;;  %v1695_v39 = vpop.permute.xlu0 %1694 }
 0x412   : > { %v1646_v61 = vadd.f32 %v1638_v1, %v4149_v34  ;;  %v1640_v16 = vsel %vm651_vm0, %v1636_v33, %v1638_v1 }
 0x413   : > { %v1645_v34 = vadd.f32 %v1640_v16, %v4142_v48 }
 0x414   : > { %v1703_v20 = vadd.f32 %v1695_v39, %v1646_v61 }
 0x415   : > { %v1691_v63 = vpop.permute.xlu1 %1690  ;;  %2959 = vset.pattern.permute.xlu1 %v4791_v28 }
 0x416   : > { %2533 = vperm.xlu1 %2959, %v4215_v45   ;;  %v1748_v54 = vpop.permute.xlu0 %1747 }
 0x419   : > { %v1693_v14 = vpop.permute.xlu1 %1692 }
 0x41a   : > { %2961 = vset.pattern.permute.xlu1 %v4807_v62  ;;  %v1752_v13 = vpop.permute.xlu0 %1751  ;;  %v1696_v40 = vsel %vm749_vm1, %v1691_v63, %v1693_v14  ;;  %v1697_v24 = vsel %vm749_vm1, %v1693_v14, %v1695_v39 }
 0x41b   : > { %2503 = vperm.xlu1 %2961, %v2825_v26   ;;  %v1760_v29 = vadd.f32 %v1752_v13, %v1703_v20  ;;  %v1701_v9 = vadd.f32 %v1696_v40, %v1644_v25  ;;  %v1702_v57 = vadd.f32 %v1697_v24, %v1645_v34  ;;  %v2828_v24 = vld [vmem:[%s4703_s8 + $0x20] sm:$0xf] }
 0x41d   : > { %v1750_v50 = vpop.permute.xlu1 %1749 }
 0x41e   : > { %v1807_v12 = vpop.permute.xlu0 %1806  ;;  %v1753_v0 = vsel %vm847_vm2, %v1748_v54, %v1750_v50  ;;  %v1754_v21 = vsel %vm847_vm2, %v1750_v50, %v1752_v13  ;;  %v4856_v50 = vld [vmem:[#allocation8_spill] sm:$0xff] }
 0x41f   : > { %2962 = vset.pattern.permute.xlu1 %v4806_v2  ;;  %v1758_v46 = vadd.f32 %v1753_v0, %v1701_v9  ;;  %v1759_v43 = vadd.f32 %v1754_v21, %v1702_v57 }
 0x421   : > { %v1805_v3 = vpop.permute.xlu1 %1804 }
 0x422   : > { %v1862_v58 = vpop.permute.xlu0 %1861  ;;  %v1810_v42 = vsel %vm945_vm3, %v1805_v3, %v1807_v12 }
 0x423   : > { %v1815_v31 = vadd.f32 %v1810_v42, %v1758_v46  ;;  %v2700_v42 = vld [vmem:[%s4704_s9] sm:$0xf] }
 0x425   : > { %v1809_v53 = vpop.permute.xlu1 %1808 }
 0x426   : > { %v1866_v23 = vpop.permute.xlu0 %1865  ;;  %v1817_v19 = vadd.f32 %v1809_v53, %v1760_v29  ;;  %v1811_v51 = vsel %vm945_vm3, %v1807_v12, %v1809_v53  ;;  %v2063_v12 = vrot.slane %v2058_v32, %v4856_v50  ;;  %v2827_v29 = vld [vmem:[%s4703_s8 + $0x1c] sm:$0xf] }
 0x427   : > { %v1816_v38 = vadd.f32 %v1811_v51, %v1759_v43 }
 0x428   : > { %v1874_v56 = vadd.f32 %v1866_v23, %v1817_v19 }
 0x429   : > { %v1864_v59 = vpop.permute.xlu1 %1863 }
 0x42a   : > { %v1921_v47 = vpop.permute.xlu0 %1920  ;;  %v1867_v27 = vsel %vm1043_vm4, %v1862_v58, %v1864_v59  ;;  %v1868_v48 = vsel %vm1043_vm4, %v1864_v59, %v1866_v23  ;;  %v4857_v58 = vld [vmem:[#allocation16_spill] sm:$0xff]  ;;  %v4858_v59 = vld [vmem:[#allocation9_spill] sm:$0xff] }
 0x42b   : > { %v1872_v17 = vadd.f32 %v1867_v27, %v1815_v31  ;;  %v1873_v55 = vadd.f32 %v1868_v48, %v1816_v38  ;;  %v2071_v53 = vrot.slane %v2058_v32, %v4857_v58  ;;  %v2067_v4 = vrot.slane %v2058_v32, %v4858_v59 }
 0x42d   : > { %v1919_v30 = vpop.permute.xlu1 %1918 }
 0x42e   : > { %v1976_v22 = vpop.permute.xlu0 %1975  ;;  %v1924_v15 = vsel %vm1141_vm5, %v1919_v30, %v1921_v47 }
 0x42f   : > { %v1929_v60 = vadd.f32 %v1924_v15, %v1872_v17 }
 0x431   : > { %v1923_v18 = vpop.permute.xlu1 %1922 }
 0x432   : > { %v1980_v11 = vpop.permute.xlu0 %1979  ;;  %v1925_v7 = vsel %vm1141_vm5, %v1921_v47, %v1923_v18  ;;  %v1931_v5 = vadd.f32 %v1923_v18, %v1874_v56 }
 0x433   : > { %v1930_v44 = vadd.f32 %v1925_v7, %v1873_v55 }
 0x434   : > { %v1988_v33 = vadd.f32 %v1980_v11, %v1931_v5 }
 0x435   : > { %v1978_v6 = vpop.permute.xlu1 %1977 }
 0x436   : > { %v1981_v10 = vsel %vm1239_vm6, %v1976_v22, %v1978_v6  ;;  %v2033_v41 = vpop.permute.xlu0 %2032  ;;  %v1982_v37 = vsel %vm1239_vm6, %v1978_v6, %v1980_v11 }
 0x437   : > { %v1986_v36 = vadd.f32 %v1981_v10, %v1929_v60  ;;  %v1987_v39 = vadd.f32 %v1982_v37, %v1930_v44  ;;  %v4860_v37 = vld [vmem:[#allocation21_spill] sm:$0xff] }
 0x439   : > { %v2035_v52 = vpop.permute.xlu1 %2034 }
 0x43a   : > { %v2038_v26 = vsel %vm1337_vm7, %v2033_v41, %v2035_v52  ;;  %v2037_v63 = vpop.permute.xlu0 %2036 }
 0x43b   : > { %v2043_v1 = vadd.f32 %v2038_v26, %v1986_v36  ;;  %v2045_v54 = vadd.f32 %v2037_v63, %v1988_v33  ;;  %v2039_v14 = vsel %vm1337_vm7, %v2035_v52, %v2037_v63  ;;  %v4861_v52 = vld [vmem:[#allocation22_spill] sm:$0xff] }
 0x43c   : > { %v2044_v3 = vadd.f32 %v2039_v14, %v1987_v39 }
 0x43d   : > { %v2052_v13 = vadd.f32 %v4235_v35, %v2043_v1  ;;  %v2054_v23 = vadd.f32 %v4235_v35, %v2045_v54  ;;  %v4862_v1 = vld [vmem:[#allocation23_spill] sm:$0xff] }
 0x43e   : > { %v2053_v40 = vadd.f32 %v4235_v35, %v2044_v3 }
 0x43f   : > { %v2055_v61 = vmax.f32 %v2052_v13, 0.0  ;;  %v2057_v47 = vmax.f32 %v2054_v23, 0.0  ;;  %v4863_v23 = vld [vmem:[#allocation24_spill] sm:$0xff] }
 0x440   : > { %v2056_v25 = vmax.f32 %v2053_v40, 0.0 }
 0x441   : > { %v2075_v16 = vmul.f32 %v2063_v12, %v2055_v61  ;;  %v2077_v20 = vmul.f32 %v2071_v53, %v2057_v47  ;;  %v4864_v47 = vld [vmem:[#allocation17_spill] sm:$0xff] }
 0x442   : > { %v2076_v30 = vmul.f32 %v2067_v4, %v2056_v25 }
 0x443   : > { %2084 = vrot.lane.b32.xlu0 %v2077_v20, %s3010_s29 }
 0x444   : > { %v2081_v0 = vcombine.low %v2075_v16, %v2076_v30 }
 0x446   : > { %2082 = vrot.lane.b32.xlu1 %v2081_v0, %s3010_s29  ;;  %v4282_v35 = vpop.permute.xlu1 %2098 }
 0x447   : > { %2590 = vperm.xlu0 %2960, %v2827_v29  }
 0x44a   : > { %2550 = vperm.xlu1 %2962, %v4215_v45  }
 0x44b   : > { %2963 = vset.pattern.permute.xlu0 %v4806_v2 }
 0x44c   : > { %2436 = vperm.xlu0 %2963, %v4202_v49   ;;  %v4290_v49 = vpop.permute.xlu1 %2171 }
 0x44e   : > { %2964 = vset.pattern.permute.xlu1 %v4793_v8 }
 0x44f   : > { %2597 = vperm.xlu1 %2964, %v2827_v29  }
 0x450   : > { %2607 = vperm.xlu0 %2963, %v2827_v29   ;;  %v4294_v9 = vpop.permute.xlu1 %2208 }
 0x453   : > { %2965 = vset.pattern.permute.xlu1 %v4807_v62 }
 0x454   : > { %2968 = vset.pattern.permute.xlu0 %v4807_v62  ;;  %2560 = vperm.xlu1 %2965, %v4215_v45  }
 0x455   : > { %2617 = vperm.xlu0 %2968, %v2827_v29   ;;  %v4297_v45 = vpop.permute.xlu1 %2255 }
 0x458   : > { %2966 = vset.pattern.permute.xlu1 %v4791_v28 }
 0x459   : > { %2647 = vperm.xlu1 %2966, %v2828_v24   ;;  %2972 = vset.pattern.permute.xlu0 %v4791_v28 }
 0x45a   : > { %v4300_v34 = vpop.permute.xlu1 %2265 }
 0x45d   : > { %2967 = vset.pattern.permute.xlu1 %v4793_v8 }
 0x45e   : > { %2654 = vperm.xlu1 %2967, %v2828_v24  }
 0x45f   : > { %v4306_v8 = vpop.permute.xlu1 %2312 }
 0x462   : > { %2969 = vset.pattern.permute.xlu1 %v4806_v2 }
 0x463   : > { %2664 = vperm.xlu1 %2969, %v2828_v24  }
 0x464   : > { %v4308_v22 = vpop.permute.xlu1 %2322 }
 0x467   : > { %2970 = vset.pattern.permute.xlu1 %v4807_v62  ;;  %v4316_v62 = vpop.permute.xlu0 %2275 }
 0x468   : > { %2674 = vperm.xlu1 %2970, %v2828_v24  }
 0x469   : > { %v4310_v2 = vpop.permute.xlu1 %2362 }
 0x46b   : > { %v4320_v18 = vpop.permute.xlu0 %2446 }
 0x46c   : > { %2971 = vset.pattern.permute.xlu1 %v4791_v28 }
 0x46d   : > { %2703 = vperm.xlu1 %2971, %v2700_v42  }
 0x46e   : > { %v4312_v21 = vpop.permute.xlu1 %2332 }
 0x46f   : > { %v4324_v28 = vpop.permute.xlu0 %2134 }
 0x473   : > { %v4314_v46 = vpop.permute.xlu1 %2379  ;;  %v4328_v31 = vpop.permute.xlu0 %2369 }
 0x477   : > { %v4332_v43 = vpop.permute.xlu0 %2540 }
 0x478   : > { %v4318_v19 = vpop.permute.xlu1 %2426 }
 0x47b   : > { %v2249_v11 = vpop.permute.xlu0 %2248 }
 0x47d   : > { %v4322_v57 = vpop.permute.xlu1 %2389 }
 0x47f   : > { %v4336_v17 = vpop.permute.xlu0 %2305 }
 0x482   : > { %v4326_v27 = vpop.permute.xlu1 %2476 }
 0x483   : > { %v4340_v6 = vpop.permute.xlu0 %2419 }
 0x487   : > { %v4330_v51 = vpop.permute.xlu1 %2483 }
 0x48c   : > { %v4334_v15 = vpop.permute.xlu1 %2493 }
 0x491   : > { %v2534_v48 = vpop.permute.xlu1 %2533 }
 0x496   : > { %v4338_v56 = vpop.permute.xlu1 %2503 }
 0x4b5   : > { %v2085_v60 = vpop.permute.xlu0 %2084 }
 0x4b8   : > { %v2083_v38 = vpop.permute.xlu1 %2082 }
 0x4b9   : > { %v2086_v10 = vrot.slane %v2083_v38, 4 }
 0x4bb   : > { %v2087_v7 = vsel %vm1428_vm12, %v2086_v10, %v2083_v38  ;;  %v2088_v5 = vsel %vm1428_vm12, %v2086_v10, %v2085_v60 }
 0x4bc   : > { %2091 = vst.msk [vmem:[#allocation2] sm:$0xff] %vm3875_vm13, %v2087_v7 }
 0x4bd   : > { %2092 = vst.msk [vmem:[#allocation2 + $0x8] sm:$0xf] %vm1437_vm14, %v2088_v5 }
 0x4c2   : > { %v4394_v7 = vpop.permute.xlu0 %2590 }
 0x4c3   : > { %v2094_v41 = vld [vmem:[#allocation2] sm:$0xff] }
 0x4c4   : > { %v2110_v36 = vrot.slane %v2094_v41, %v4860_v37  ;;  %v2144_v44 = vrot.slane %v2094_v41, %v4861_v52  ;;  %v2095_v26 = vld [vmem:[#allocation2 + $0x8] sm:$0xf]  ;;  %v2106_v32 = vrot.slane %v2094_v41, %v4856_v50  ;;  %v2140_v33 = vrot.slane %v2094_v41, %v4858_v59 }
 0x4c5   : > { %v2181_v39 = vrot.slane %v2094_v41, %v4862_v1  ;;  %v2114_v14 = vrot.slane %v2095_v26, %v4856_v50  ;;  %v2177_v13 = vrot.slane %v2094_v41, %v4857_v58  ;;  %v2218_v61 = vrot.slane %v2094_v41, %v4863_v23 }
 0x4c6   : > { %v4353_v63 = vrot.slane %v2110_v36, %v4856_v50  ;;  %v4356_v54 = vrot.slane %v2144_v44, %v4858_v59  ;;  %v4361_v12 = vrot.slane %v2106_v32, %v4856_v50  ;;  %v4364_v3 = vrot.slane %v2140_v33, %v4858_v59 }
 0x4c7   : > { %v4367_v53 = vrot.slane %v2181_v39, %v4857_v58  ;;  %v2148_v40 = vrot.slane %v2095_v26, %v4858_v59  ;;  %v2214_v25 = vrot.slane %v2094_v41, %v4864_v47  ;;  %v4376_v20 = vrot.slane %v2114_v14, %v4856_v50 }
 0x4c8   : > { %v2252_v4 = vmul.f32 %v2249_v11, %v4353_v63  ;;  %v2259_v16 = vmul.f32 %v4297_v45, %v4356_v54  ;;  %v2185_v30 = vrot.slane %v2095_v26, %v4857_v58  ;;  %v4380_v0 = vrot.slane %v2177_v13, %v4857_v58 }
 0x4c9   : > { %v4383_v29 = vrot.slane %v2218_v61, %v4864_v47  ;;  %v2269_v42 = vmul.f32 %v4300_v34, %v4367_v53  ;;  %v2251_v38 = vmul.f32 %v2249_v11, %v4361_v12  ;;  %v2258_v10 = vmul.f32 %v4297_v45, %v4364_v3 }
 0x4ca   : > { %v2262_v24 = vadd.f32 %v2259_v16, %v2252_v4  ;;  %v2222_v50 = vrot.slane %v2095_v26, %v4864_v47  ;;  %v4392_v60 = vrot.slane %v2148_v40, %v4858_v59  ;;  %v4397_v5 = vrot.slane %v2214_v25, %v4864_v47  ;;  %v4417_v26 = vpop.permute.xlu1 %2550 }
 0x4cb   : > { %v2279_v41 = vmul.f32 %v4316_v62, %v4383_v29  ;;  %v4403_v37 = vmul.f32 %v4394_v7, %v4353_v63  ;;  %v4406_v36 = vrot.slane %v2185_v30, %v4857_v58  ;;  %v4409_v52 = vmul.f32 %v2534_v48, %v4361_v12 }
 0x4cc   : > { %v2272_v55 = vadd.f32 %v2269_v42, %v2262_v24  ;;  %v4412_v59 = vmul.f32 %v2534_v48, %v4353_v63  ;;  %v4415_v44 = vmul.f32 %v2534_v48, %v4376_v20  ;;  %v2261_v33 = vadd.f32 %v2258_v10, %v2251_v38 }
 0x4cd   : > { %v2268_v1 = vmul.f32 %v4300_v34, %v4380_v0  ;;  %v2543_v58 = vmul.f32 %v4332_v43, %v4364_v3  ;;  %v4424_v39 = vrot.slane %v2222_v50, %v4864_v47  ;;  %v2308_v14 = vmul.f32 %v4336_v17, %v4361_v12 }
 0x4ce   : > { %v2282_v32 = vadd.f32 %v2279_v41, %v2272_v55  ;;  %v2315_v48 = vmul.f32 %v4306_v8, %v4364_v3  ;;  %v2278_v23 = vmul.f32 %v4316_v62, %v4397_v5  ;;  %v2253_v61 = vmul.f32 %v2249_v11, %v4376_v20  ;;  %v4456_v50 = vpop.permute.xlu1 %2597 }
 0x4cf   : > { %v2271_v13 = vadd.f32 %v2268_v1, %v2261_v33  ;;  %v2260_v4 = vmul.f32 %v4297_v45, %v4392_v60  ;;  %v4438_v40 = vmul.f32 %v4332_v43, %v4356_v54  ;;  %v4442_v47 = vmul.f32 %v4332_v43, %v4392_v60 }
 0x4d0   : > { %2289 = vrot.lane.b32.xlu1 %v2282_v32, %s3001_s11  ;;  %v2318_v25 = vadd.f32 %v2315_v48, %v2308_v14  ;;  %v2325_v16 = vmul.f32 %v4308_v22, %v4380_v0  ;;  %v2422_v30 = vmul.f32 %v4340_v6, %v4361_v12  ;;  %v2270_v45 = vmul.f32 %v4300_v34, %v4406_v36 }
 0x4d1   : > { %v2281_v24 = vadd.f32 %v2278_v23, %v2271_v13  ;;  %v2263_v11 = vadd.f32 %v2260_v4, %v2253_v61  ;;  %v2335_v38 = vmul.f32 %v4312_v21, %v4397_v5  ;;  %v2310_v43 = vmul.f32 %v4336_v17, %v4376_v20 }
 0x4d2   : > { %v2328_v42 = vadd.f32 %v2325_v16, %v2318_v25  ;;  %v2317_v10 = vmul.f32 %v4306_v8, %v4392_v60  ;;  %v2280_v41 = vmul.f32 %v4316_v62, %v4424_v39  ;;  %v2309_v34 = vmul.f32 %v4336_v17, %v4353_v63  ;;  %v2437_v16 = vpop.permute.xlu0 %2436 }
 0x4d3   : > { %2287 = vrot.lane.b32.xlu0 %v2281_v24, %s3001_s11  ;;  %v2273_v55 = vadd.f32 %v2270_v45, %v2263_v11  ;;  %v2316_v32 = vmul.f32 %v4306_v8, %v4356_v54  ;;  %v2429_v33 = vmul.f32 %v4318_v19, %v4364_v3  ;;  %v2327_v48 = vmul.f32 %v4308_v22, %v4406_v36 }
 0x4d4   : > { %v2338_v1 = vadd.f32 %v2335_v38, %v2328_v42  ;;  %v2320_v14 = vadd.f32 %v2317_v10, %v2310_v43  ;;  %v2423_v13 = vmul.f32 %v4340_v6, %v4353_v63  ;;  %v2326_v62 = vmul.f32 %v4308_v22, %v4367_v53 }
 0x4d5   : > { %v2283_v23 = vadd.f32 %v2280_v41, %v2273_v55  ;;  %v2319_v61 = vadd.f32 %v2316_v32, %v2309_v34  ;;  %v2337_v8 = vmul.f32 %v4312_v21, %v4424_v39  ;;  %v2366_v4 = vmul.f32 %v4310_v2, %v4353_v63  ;;  %v4491_v41 = vpop.permute.xlu1 %2560 }
 0x4d6   : > { %2344 = vrot.lane.b32.xlu1 %v2338_v1, %s3002_s12  ;;  %v2330_v17 = vadd.f32 %v2327_v48, %v2320_v14  ;;  %v2373_v25 = vmul.f32 %v4328_v31, %v4356_v54  ;;  %v2424_v24 = vmul.f32 %v4340_v6, %v4376_v20  ;;  %v2431_v11 = vmul.f32 %v4318_v19, %v4392_v60 }
 0x4d7   : > { %2291 = vrot.lane.b32.xlu0 %v2283_v23, %s3001_s11  ;;  %v2329_v22 = vadd.f32 %v2326_v62, %v2319_v61  ;;  %v2336_v45 = vmul.f32 %v4312_v21, %v4383_v29  ;;  %v2432_v42 = vadd.f32 %v2429_v33, %v2422_v30  ;;  %v2383_v10 = vmul.f32 %v4314_v46, %v4367_v53 }
 0x4d8   : > { %v2340_v38 = vadd.f32 %v2337_v8, %v2330_v17  ;;  %v2376_v43 = vadd.f32 %v2373_v25, %v2366_v4  ;;  %v2430_v55 = vmul.f32 %v4318_v19, %v4356_v54  ;;  %v2365_v34 = vmul.f32 %v4310_v2, %v4361_v12 }
 0x4d9   : > { %v2339_v6 = vadd.f32 %v2336_v45, %v2329_v22  ;;  %v2372_v32 = vmul.f32 %v4328_v31, %v4364_v3  ;;  %v2553_v21 = vmul.f32 %v4417_v26, %v4380_v0  ;;  %v2439_v30 = vmul.f32 %v2437_v16, %v4380_v0 }
 0x4da   : > { %2348 = vrot.lane.b32.xlu1 %v2340_v38, %s3002_s12  ;;  %v2386_v33 = vadd.f32 %v2383_v10, %v2376_v43  ;;  %v2393_v19 = vmul.f32 %v4322_v57, %v4383_v29  ;;  %v2546_v1 = vadd.f32 %v2543_v58, %v4409_v52  ;;  %v2382_v48 = vmul.f32 %v4314_v46, %v4380_v0 }
 0x4db   : > { %2346 = vrot.lane.b32.xlu0 %v2339_v6, %s3002_s12  ;;  %v2375_v14 = vadd.f32 %v2372_v32, %v2365_v34  ;;  %v2367_v23 = vmul.f32 %v4310_v2, %v4376_v20  ;;  %v2434_v61 = vadd.f32 %v2431_v11, %v2424_v24  ;;  %v2442_v62 = vadd.f32 %v2439_v30, %v2432_v42  ;;  %v4528_v42 = vpop.permute.xlu1 %2647 }
 0x4dc   : > { %v2396_v17 = vadd.f32 %v2393_v19, %v2386_v33  ;;  %v2374_v8 = vmul.f32 %v4328_v31, %v4392_v60  ;;  %v4513_v4 = vmul.f32 %v4417_v26, %v4406_v36  ;;  %v2433_v52 = vadd.f32 %v2430_v55, %v2423_v13 }
 0x4dd   : > { %v2385_v58 = vadd.f32 %v2382_v48, %v2375_v14  ;;  %v2392_v25 = vmul.f32 %v4322_v57, %v4397_v5  ;;  %v2441_v22 = vmul.f32 %v2437_v16, %v4406_v36  ;;  %v2449_v2 = vmul.f32 %v4320_v18, %v4397_v5 }
 0x4de   : > { %2403 = vrot.lane.b32.xlu1 %v2396_v17, %s3003_s15  ;;  %v2377_v24 = vadd.f32 %v2374_v8, %v2367_v23  ;;  %v2384_v31 = vmul.f32 %v4314_v46, %v4406_v36  ;;  %v4525_v11 = vadd.f32 %v4442_v47, %v4415_v44  ;;  %v2556_v13 = vadd.f32 %v2553_v21, %v2546_v1 }
 0x4df   : > { %v2440_v45 = vmul.f32 %v2437_v16, %v4367_v53  ;;  %v2395_v38 = vadd.f32 %v2392_v25, %v2385_v58  ;;  %v2444_v43 = vadd.f32 %v2441_v22, %v2434_v61  ;;  %v2452_v10 = vadd.f32 %v2449_v2, %v2442_v62  ;;  %v4558_v61 = vpop.permute.xlu1 %2654  ;;  %v4570_v22 = vpop.permute.xlu0 %2607 }
 0x4e0   : > { %v2387_v55 = vadd.f32 %v2384_v31, %v2377_v24  ;;  %v2480_v6 = vmul.f32 %v4326_v27, %v4353_v63  ;;  %v2601_v46 = vmul.f32 %v4456_v50, %v4356_v54  ;;  %v2394_v44 = vmul.f32 %v4322_v57, %v4424_v39 }
 0x4e1   : > { %v2443_v34 = vadd.f32 %v2440_v45, %v2433_v52  ;;  %2401 = vrot.lane.b32.xlu0 %v2395_v38, %s3003_s15  ;;  %v2487_v47 = vmul.f32 %v4330_v51, %v4356_v54  ;;  %v2563_v16 = vmul.f32 %v4491_v41, %v4397_v5  ;;  %v2451_v32 = vmul.f32 %v4320_v18, %v4424_v39 }
 0x4e2   : > { %2458 = vrot.lane.b32.xlu1 %v2452_v10, %s3004_s16  ;;  %v2450_v21 = vmul.f32 %v4320_v18, %v4383_v29  ;;  %v2479_v30 = vmul.f32 %v4326_v27, %v4361_v12  ;;  %v2397_v33 = vadd.f32 %v2394_v44, %v2387_v55  ;;  %v2497_v57 = vmul.f32 %v4334_v15, %v4367_v53 }
 0x4e3   : > { %v2490_v19 = vadd.f32 %v2487_v47, %v2480_v6  ;;  %v2486_v1 = vmul.f32 %v4330_v51, %v4364_v3  ;;  %v2454_v14 = vadd.f32 %v2451_v32, %v2444_v43  ;;  %v2496_v48 = vmul.f32 %v4334_v15, %v4380_v0 }
 0x4e4   : > { %v2481_v23 = vmul.f32 %v4326_v27, %v4376_v20  ;;  %v2488_v18 = vmul.f32 %v4330_v51, %v4392_v60  ;;  %v2130_v8 = vmul.f32 %v4361_v12, %v4282_v35  ;;  %v2164_v52 = vmul.f32 %v4364_v3, %v4324_v28 }
 0x4e5   : > { %2405 = vrot.lane.b32.xlu0 %v2397_v33, %s3003_s15  ;;  %v2500_v62 = vadd.f32 %v2497_v57, %v2490_v19  ;;  %v2489_v17 = vadd.f32 %v2486_v1, %v2479_v30  ;;  %v2453_v58 = vadd.f32 %v2450_v21, %v2443_v34  ;;  %v2507_v27 = vmul.f32 %v4338_v56, %v4383_v29  ;;  %v2665_v33 = vpop.permute.xlu1 %2664  ;;  %s379_s15 = scalar_lea.vmem %s4705_s10, %s2831_s22 }
 0x4e6   : > { %2462 = vrot.lane.b32.xlu1 %v2454_v14, %s3004_s16  ;;  %v2491_v25 = vadd.f32 %v2488_v18, %v2481_v23  ;;  %v2131_v51 = vmul.f32 %v4353_v63, %v4282_v35  ;;  %v2167_v24 = vadd.f32 %v2164_v52, %v2130_v8  ;;  %v2201_v31 = vmul.f32 %v4380_v0, %v4290_v49 }
 0x4e7   : > { %v2499_v2 = vadd.f32 %v2496_v48, %v2489_v17  ;;  %v2132_v45 = vmul.f32 %v4376_v20, %v4282_v35  ;;  %v2565_v38 = vmul.f32 %v4491_v41, %v4424_v39  ;;  %v2510_v43 = vadd.f32 %v2507_v27, %v2500_v62 }
 0x4e8   : > { %v2165_v10 = vmul.f32 %v4356_v54, %v4324_v28  ;;  %v2166_v55 = vmul.f32 %v4392_v60, %v4324_v28  ;;  %v2506_v6 = vmul.f32 %v4338_v56, %v4397_v5  ;;  %v2498_v34 = vmul.f32 %v4334_v15, %v4406_v36 }
 0x4e9   : > { %2460 = vrot.lane.b32.xlu0 %v2453_v58, %s3004_s16  ;;  %v2204_v44 = vadd.f32 %v2201_v31, %v2167_v24  ;;  %v2238_v35 = vmul.f32 %v4397_v5, %v4294_v9  ;;  %v2202_v21 = vmul.f32 %v4367_v53, %v4290_v49  ;;  %v2203_v28 = vmul.f32 %v4406_v36, %v4290_v49 }
 0x4ea   : > { %2517 = vrot.lane.b32.xlu1 %v2510_v43, %s3005_s17  ;;  %v2168_v47 = vadd.f32 %v2165_v10, %v2131_v51  ;;  %v2169_v32 = vadd.f32 %v2166_v55, %v2132_v45  ;;  %v2566_v30 = vadd.f32 %v2563_v16, %v2556_v13  ;;  %v2509_v19 = vadd.f32 %v2506_v6, %v2499_v2  ;;  %v2618_v16 = vpop.permute.xlu0 %2617  ;;  %v2675_v2 = vpop.permute.xlu1 %2674 }
 0x4eb   : > { %v2501_v57 = vadd.f32 %v2498_v34, %v2491_v25  ;;  %v4594_v1 = vadd.f32 %v2238_v35, %v2204_v44  ;;  %v2239_v48 = vmul.f32 %v4383_v29, %v4294_v9  ;;  %v2240_v23 = vmul.f32 %v4424_v39, %v4294_v9 }
 0x4ec   : > { %v2205_v15 = vadd.f32 %v2202_v21, %v2168_v47  ;;  %v2206_v14 = vadd.f32 %v2203_v28, %v2169_v32  ;;  %v2547_v18 = vadd.f32 %v4438_v40, %v4412_v59  ;;  %v2558_v49 = vadd.f32 %v4513_v4, %v4525_v11 }
 0x4ed   : > { %v2600_v13 = vmul.f32 %v4456_v50, %v4364_v3  ;;  %2515 = vrot.lane.b32.xlu0 %v2509_v19, %s3005_s17  ;;  %v2508_v62 = vmul.f32 %v4338_v56, %v4424_v39  ;;  %v2604_v17 = vadd.f32 %v2601_v46, %v4403_v37  ;;  %v2611_v9 = vmul.f32 %v4570_v22, %v4367_v53 }
 0x4ee   : > { %2572 = vrot.lane.b32.xlu1 %v2566_v30, %s3006_s24  ;;  %v4613_v59 = vadd.f32 %v2239_v48, %v2205_v15  ;;  %v4615_v40 = vadd.f32 %v2240_v23, %v2206_v14  ;;  %v2593_v4 = vmul.f32 %v4394_v7, %v4361_v12  ;;  %v2554_v11 = vmul.f32 %v4417_v26, %v4367_v53 }
 0x4ef   : > { %v2564_v56 = vmul.f32 %v4491_v41, %v4383_v29  ;;  %v2511_v8 = vadd.f32 %v2508_v62, %v2501_v57  ;;  %v2568_v37 = vadd.f32 %v2565_v38, %v2558_v49  ;;  %v2621_v46 = vmul.f32 %v2618_v16, %v4383_v29 }
 0x4f0   : > { %v2658_v52 = vmul.f32 %v4558_v61, %v4356_v54  ;;  %v2557_v58 = vadd.f32 %v2554_v11, %v2547_v18  ;;  %v2602_v27 = vmul.f32 %v4456_v50, %v4392_v60  ;;  %v2603_v25 = vadd.f32 %v2600_v13, %v2593_v4 }
 0x4f1   : > { %v2610_v51 = vmul.f32 %v4570_v22, %v4380_v0  ;;  %2519 = vrot.lane.b32.xlu0 %v2511_v8, %s3005_s17  ;;  %v2614_v26 = vadd.f32 %v2611_v9, %v2604_v17  ;;  %v2651_v41 = vmul.f32 %v4528_v42, %v4353_v63  ;;  %v2668_v24 = vmul.f32 %v2665_v33, %v4367_v53 }
 0x4f2   : > { %2576 = vrot.lane.b32.xlu1 %v2568_v37, %s3006_s24  ;;  %v2595_v54 = vmul.f32 %v4394_v7, %v4376_v20  ;;  %v2567_v31 = vadd.f32 %v2564_v56, %v2557_v58  ;;  %v2620_v50 = vmul.f32 %v2618_v16, %v4397_v5  ;;  %v2678_v43 = vmul.f32 %v2675_v2, %v4383_v29 }
 0x4f3   : > { %v2624_v45 = vadd.f32 %v2621_v46, %v2614_v26  ;;  %v2661_v38 = vadd.f32 %v2658_v52, %v2651_v41  ;;  %v2612_v55 = vmul.f32 %v4570_v22, %v4406_v36  ;;  %v2613_v6 = vadd.f32 %v2610_v51, %v2603_v25 }
 0x4f4   : > { %v2605_v10 = vadd.f32 %v2602_v27, %v2595_v54  ;;  %v2622_v53 = vmul.f32 %v2618_v16, %v4424_v39  ;;  %v2657_v34 = vmul.f32 %v4558_v61, %v4364_v3  ;;  %v2650_v29 = vmul.f32 %v4528_v42, %v4361_v12 }
 0x4f5   : > { %2574 = vrot.lane.b32.xlu0 %v2567_v31, %s3006_s24  ;;  %v2671_v63 = vadd.f32 %v2668_v24, %v2661_v38  ;;  %v2623_v7 = vadd.f32 %v2620_v50, %v2613_v6  ;;  %v2667_v47 = vmul.f32 %v2665_v33, %v4380_v0  ;;  %v2659_v32 = vmul.f32 %v4558_v61, %v4392_v60  ;;  %v4661_v60 = vpop.permute.xlu1 %2703 }
 0x4f6   : > { %2631 = vrot.lane.b32.xlu1 %v2624_v45, %s3007_s25  ;;  %v2615_v35 = vadd.f32 %v2612_v55, %v2605_v10  ;;  %v2660_v21 = vadd.f32 %v2657_v34, %v2650_v29  ;;  %v2677_v28 = vmul.f32 %v2675_v2, %v4397_v5  ;;  %v2652_v3 = vmul.f32 %v4528_v42, %v4376_v20 }
 0x4f7   : > { %v2681_v44 = vadd.f32 %v2678_v43, %v2671_v63  ;;  %v2669_v30 = vmul.f32 %v2665_v33, %v4406_v36  ;;  %v2679_v0 = vmul.f32 %v2675_v2, %v4424_v39 }
 0x4f8   : > { %v2625_v22 = vadd.f32 %v2622_v53, %v2615_v35  ;;  %v2670_v19 = vadd.f32 %v2667_v47, %v2660_v21  ;;  %v2662_v12 = vadd.f32 %v2659_v32, %v2652_v3 }
 0x4f9   : > { %2629 = vrot.lane.b32.xlu0 %v2623_v7, %s3007_s25 }
 0x4fa   : > { %2688 = vrot.lane.b32.xlu1 %v2681_v44, %s3008_s26  ;;  %v2680_v57 = vadd.f32 %v2677_v28, %v2670_v19  ;;  %v2672_v15 = vadd.f32 %v2669_v30, %v2662_v12 }
 0x4fc   : > { %v2682_v14 = vadd.f32 %v2679_v0, %v2672_v15 }
 0x4fd   : > { %2633 = vrot.lane.b32.xlu0 %v2625_v22, %s3007_s25 }
 0x501   : > { %2686 = vrot.lane.b32.xlu0 %v2680_v57, %s3008_s26 }
 0x505   : > { %2690 = vrot.lane.b32.xlu0 %v2682_v14, %s3008_s26 }
 0x542   : > { %v2290_v5 = vpop.permute.xlu1 %2289 }
 0x545   : > { %v2288_v61 = vpop.permute.xlu0 %2287 }
 0x546   : > { %v2293_v4 = vsel %vm651_vm0, %v2288_v61, %v2290_v5 }
 0x547   : > { %v2298_v56 = vadd.f32 %v2293_v4, %v4594_v1 }
 0x548   : > { %v2345_v20 = vpop.permute.xlu1 %2344 }
 0x549   : > { %v2292_v42 = vpop.permute.xlu0 %2291 }
 0x54a   : > { %v2294_v46 = vsel %vm651_vm0, %v2290_v5, %v2292_v42  ;;  %v2300_v27 = vadd.f32 %v2292_v42, %v4615_v40 }
 0x54b   : > { %v2299_v2 = vadd.f32 %v2294_v46, %v4613_v59 }
 0x54c   : > { %v2349_v36 = vpop.permute.xlu1 %2348 }
 0x54d   : > { %v2347_v33 = vpop.permute.xlu0 %2346  ;;  %v2357_v24 = vadd.f32 %v2349_v36, %v2300_v27 }
 0x54e   : > { %v2350_v11 = vsel %vm749_vm1, %v2345_v20, %v2347_v33  ;;  %v2351_v25 = vsel %vm749_vm1, %v2347_v33, %v2349_v36 }
 0x54f   : > { %v2355_v58 = vadd.f32 %v2350_v11, %v2298_v56  ;;  %v2356_v31 = vadd.f32 %v2351_v25, %v2299_v2  ;;  %v4866_v56 = vld [vmem:[#allocation15_spill] sm:$0xff] }
 0x550   : > { %v2404_v48 = vpop.permute.xlu1 %2403 }
 0x553   : > { %v2402_v23 = vpop.permute.xlu0 %2401 }
 0x554   : > { %v2459_v18 = vpop.permute.xlu1 %2458  ;;  %v2407_v52 = vsel %vm847_vm2, %v2402_v23, %v2404_v48 }
 0x555   : > { %v2412_v26 = vadd.f32 %v2407_v52, %v2355_v58 }
 0x557   : > { %v2406_v49 = vpop.permute.xlu0 %2405 }
 0x558   : > { %v2463_v39 = vpop.permute.xlu1 %2462  ;;  %v2408_v1 = vsel %vm847_vm2, %v2404_v48, %v2406_v49  ;;  %v2414_v38 = vadd.f32 %v2406_v49, %v2357_v24 }
 0x559   : > { %v2413_v10 = vadd.f32 %v2408_v1, %v2356_v31 }
 0x55a   : > { %v2471_v63 = vadd.f32 %v2463_v39, %v2414_v38 }
 0x55b   : > { %v2461_v13 = vpop.permute.xlu0 %2460 }
 0x55c   : > { %v2518_v16 = vpop.permute.xlu1 %2517  ;;  %v2464_v51 = vsel %vm945_vm3, %v2459_v18, %v2461_v13  ;;  %v2465_v43 = vsel %vm945_vm3, %v2461_v13, %v2463_v39 }
 0x55d   : > { %v2469_v50 = vadd.f32 %v2464_v51, %v2412_v26  ;;  %v2470_v7 = vadd.f32 %v2465_v43, %v2413_v10 }
 0x55f   : > { %v2516_v62 = vpop.permute.xlu0 %2515 }
 0x560   : > { %v2573_v17 = vpop.permute.xlu1 %2572  ;;  %v2521_v54 = vsel %vm1043_vm4, %v2516_v62, %v2518_v16 }
 0x561   : > { %v2526_v55 = vadd.f32 %v2521_v54, %v2469_v50 }
 0x563   : > { %v2520_v9 = vpop.permute.xlu0 %2519 }
 0x564   : > { %v2577_v37 = vpop.permute.xlu1 %2576  ;;  %v2522_v59 = vsel %vm1043_vm4, %v2518_v16, %v2520_v9  ;;  %v2528_v44 = vadd.f32 %v2520_v9, %v2471_v63 }
 0x565   : > { %v2527_v29 = vadd.f32 %v2522_v59, %v2470_v7 }
 0x566   : > { %v2585_v21 = vadd.f32 %v2577_v37, %v2528_v44 }
 0x567   : > { %v2575_v8 = vpop.permute.xlu0 %2574 }
 0x568   : > { %v2632_v45 = vpop.permute.xlu1 %2631  ;;  %v2578_v40 = vsel %vm1141_vm5, %v2573_v17, %v2575_v8  ;;  %v2579_v35 = vsel %vm1141_vm5, %v2575_v8, %v2577_v37 }
 0x569   : > { %v2583_v34 = vadd.f32 %v2578_v40, %v2526_v55  ;;  %v2584_v30 = vadd.f32 %v2579_v35, %v2527_v29 }
 0x56b   : > { %v2630_v41 = vpop.permute.xlu0 %2629 }
 0x56c   : > { %v2635_v53 = vsel %vm1239_vm6, %v2630_v41, %v2632_v45  ;;  %v2689_v22 = vpop.permute.xlu1 %2688 }
 0x56d   : > { %v2640_v47 = vadd.f32 %v2635_v53, %v2583_v34 }
 0x56f   : > { %v2634_v6 = vpop.permute.xlu0 %2633 }
 0x570   : > { %v2636_v28 = vsel %vm1239_vm6, %v2632_v45, %v2634_v6  ;;  %v2642_v12 = vadd.f32 %v2634_v6, %v2585_v21 }
 0x571   : > { %v2641_v0 = vadd.f32 %v2636_v28, %v2584_v30 }
 0x573   : > { %v2687_v32 = vpop.permute.xlu0 %2686 }
 0x574   : > { %v2692_v3 = vsel %vm1337_vm7, %v2687_v32, %v2689_v22 }
 0x575   : > { %v2697_v19 = vadd.f32 %v2692_v3, %v2640_v47 }
 0x577   : > { %v2706_v57 = vadd.f32 %v4661_v60, %v2697_v19  ;;  %v2691_v15 = vpop.permute.xlu0 %2690 }
 0x578   : > { %v2693_v14 = vsel %vm1337_vm7, %v2689_v22, %v2691_v15  ;;  %v2699_v5 = vadd.f32 %v2691_v15, %v2642_v12 }
 0x579   : > { %v2709_v61 = vmul.f32 0.5, %v2706_v57  ;;  %v2698_v20 = vadd.f32 %v2693_v14, %v2641_v0 }
 0x57a   : > { %v2708_v42 = vadd.f32 %v4661_v60, %v2699_v5 }
 0x57b   : > { %2979 = vtanh.f32 %v2709_v61  ;;  %v2707_v36 = vadd.f32 %v4661_v60, %v2698_v20  ;;  %v4865_v60 = vld [vmem:[#allocation13_spill] sm:$0xff] }
 0x57c   : > { %v2711_v33 = vmul.f32 0.5, %v2708_v42 }
 0x57d   : > { %v2710_v48 = vmul.f32 0.5, %v2707_v36 }
 0x57e   : > { %2981 = vtanh.f32 %v2711_v33 }
 0x57f   : > { %2983 = vtanh.f32 %v2710_v48 }
 0x588   : > { %v2980_v23 = vpop.eup %2979 }
 0x589   : > { %v2715_v49 = vadd.f32 1.0, %v2980_v23 }
 0x58b   : > { %v2982_v18 = vpop.eup %2981  ;;  %v2718_v17 = vmul.f32 0.5, %v2715_v49 }
 0x58c   : > { %v2984_v39 = vpop.eup %2983  ;;  %v2717_v13 = vadd.f32 1.0, %v2982_v18 }
 0x58d   : > { %v2716_v16 = vadd.f32 1.0, %v2984_v39 }
 0x58e   : > { %v2720_v62 = vmul.f32 0.5, %v2717_v13 }
 0x58f   : > { %v2719_v9 = vmul.f32 0.5, %v2716_v16 }
 0x590   : > { %v2726_v4 = vmul.f32 %v2720_v62, %v4865_v60 }
 0x591   : > { %v2723_v11 = vcombine.low %v2718_v17, %v2719_v9 }
 0x592   : > { %2729 = vst.msk [vmem:[%s379_s15 + $0x8] sm:$0xf] %vm2728_vm15, %v2726_v4 }
 0x593   : > { %v2725_v8 = vmul.f32 %v2723_v11, %v4866_v56 }
 0x595   : > { %2727 = vst [vmem:[%s379_s15] sm:$0xff] %v2725_v8 }
 0x596 PF: > { %s20_s13 = sadd.s32 1, %s2991_s13  }
 0x597   : > { %p17_p4 = scmp.ge.s32.totalorder %s20_s13, 4  }
 0x599   :  { %19 = sbr.rel (!%p17_p4) target bundleno = 1 (0x1), region = 117 }

</bundles_post_ra>
